<compile_context>
chip_gen: v5e
topology: v5e:2x2
jax: 0.10.0
libtpu: 0.0.40
codegen_flags: <defaults>
</compile_context>

<pallas_src>
import functools

import jax
import jax.numpy as jnp
from jax.experimental import pallas as pl
from jax.experimental.pallas import tpu as pltpu


def _round_up(x, m):
    return (x + m - 1) // m * m


def _layernorm(x, gamma, beta, eps=1e-5):
    mean = jnp.mean(x, axis=-1, keepdims=True)
    var = jnp.mean((x - mean) ** 2, axis=-1, keepdims=True)
    return (x - mean) * jax.lax.rsqrt(var + eps) * gamma + beta


def cross_modal_kernel(*refs, nhead, compute_dtype, need_weights):
    (q_ref, k_ref, mask_ref,
     wq_ref, bq_ref, wkv_ref, bkv_ref, wo_ref, bo_ref,
     w1_ref, b1_ref, w2_ref, b2_ref,
     g1_ref, be1_ref, g2_ref, be2_ref) = refs[:17]
    x_out_ref = refs[17]
    attn_out_ref = refs[18] if need_weights else None

    TB, Lq, D = q_ref.shape
    Lk = k_ref.shape[1]
    hd = D // nhead
    scale = 1.0 / (hd ** 0.5)
    cd = compute_dtype

    # Lq/Lk are padded to sublane multiples by the wrapper -> free reshapes.
    q2 = q_ref[...].reshape(TB * Lq, D)          # f32 (TB*Lq, D)
    k2 = k_ref[...].reshape(TB * Lk, D)          # f32 (TB*Lk, D)

    # --- fused input projections: 2 big matmuls (bf16 in, f32 accumulate) ---
    q_proj = jnp.dot(q2.astype(cd), wq_ref[...],
                     preferred_element_type=jnp.float32) + bq_ref[...]
    kv_proj = jnp.dot(k2.astype(cd), wkv_ref[...],
                      preferred_element_type=jnp.float32) + bkv_ref[...]

    # single cast to compute dtype; softmax scale folded into Q
    q_cd = (q_proj * scale).astype(cd).reshape(TB, Lq, D)
    k_cd = kv_proj[:, :D].astype(cd).reshape(TB, Lk, D)
    v_cd = kv_proj[:, D:].astype(cd).reshape(TB, Lk, D)

    # merge heads into the leading (batch) axis -> one continuous MXU stream,
    # one softmax pass, one head-average reduce (no per-head Python loop).
    def split_heads(x, L):
        parts = [x[:, :, h * hd:(h + 1) * hd] for h in range(nhead)]
        return jnp.stack(parts, axis=0).reshape(nhead * TB, L, hd)

    qh = split_heads(q_cd, Lq)                   # (nhead*TB, Lq, hd)
    kh = split_heads(k_cd, Lk)                   # (nhead*TB, Lk, hd)
    vh = split_heads(v_cd, Lk)                   # (nhead*TB, Lk, hd)

    s = jnp.einsum('bqe,bke->bqk', qh, kh,
                   preferred_element_type=jnp.float32)
    # additive key mask (TB,1,Lk) broadcast over heads & query rows
    s = s.reshape(nhead, TB, Lq, Lk) + mask_ref[...][None]
    s = s - jnp.max(s, axis=-1, keepdims=True)
    e = jnp.exp(s)
    denom = jnp.sum(e, axis=-1, keepdims=True)
    inv = pl.reciprocal(denom, approx=True)      # EUP slot
    inv = inv * (2.0 - denom * inv)              # one Newton step -> ~exact
    p = e * inv                                  # (nhead, TB, Lq, Lk) f32

    if need_weights:
        # averaged over heads (need_weights=True, average_attn_weights=True)
        attn_out_ref[...] = jnp.sum(p, axis=0) * (1.0 / nhead)

    o = jnp.einsum('bqk,bke->bqe',
                   p.reshape(nhead * TB, Lq, Lk).astype(cd), vh,
                   preferred_element_type=jnp.float32).astype(cd)
    o4 = o.reshape(nhead, TB, Lq, hd)
    attn_cat = jnp.concatenate([o4[h] for h in range(nhead)], axis=-1)
    attn_cat = attn_cat.reshape(TB * Lq, D)      # (TB*Lq, D) bf16

    # --- output projection: one (D, D) matmul on concat(heads) ---
    attn_out = jnp.dot(attn_cat, wo_ref[...],
                       preferred_element_type=jnp.float32) + bo_ref[...]

    # residual + LayerNorm 1 (f32)
    x = _layernorm(attn_out + q2, g1_ref[...], be1_ref[...])

    # FFN: Linear -> ReLU -> (Dropout: identity) -> Linear -> (Dropout: identity)
    h1 = jnp.dot(x.astype(cd), w1_ref[...],
                 preferred_element_type=jnp.float32) + b1_ref[...]
    h1 = jnp.maximum(h1, 0.0).astype(cd)         # hidden activation lives in bf16
    f = jnp.dot(h1, w2_ref[...],
                preferred_element_type=jnp.float32) + b2_ref[...]

    # residual + LayerNorm 2 (f32)
    x2 = _layernorm(x + f, g2_ref[...], be2_ref[...])
    x_out_ref[...] = x2.reshape(TB, Lq, D)


_F32, _BF16 = 4, 2


def _vmem_estimate(tb, Lq, Lk, D, H, nhead, need_weights):
    """Rough upper bound (bytes) of VMEM needed for one grid step."""
    Mq, Mk = tb * Lq, tb * Lk
    # Pallas-pipelined IO blocks (double buffered)
    io = 2 * (Mq * D + Mk * D + tb * Lk + Mq * D) * _F32
    if need_weights:
        io += 2 * Mq * Lk * _F32
    # resident weights (single-buffered bf16 matmul weights + f32 vectors)
    w = (4 * D * D + 2 * D * H) * _BF16 + (9 * D + H) * _F32
    # dominant in-kernel temporaries
    tmp = (Mq * D + Mk * 2 * D) * _F32               # q_proj, kv_proj
    tmp += (Mq * D + 2 * Mk * D) * 2 * _BF16         # cd copies of q/k/v (+head split)
    tmp += nhead * Mq * Lk * (2 * _F32 + _BF16)      # scores, probs, probs(bf16)
    tmp += Mq * D * (2 * _F32 + 2 * _BF16)           # o/attn_cat, x, casts
    tmp += Mq * H * (_F32 + _BF16)                   # FFN hidden (f32 acc + bf16)
    return int(1.2 * (io + w + tmp))                 # headroom for compiler scratch


def _pick_block_b(B, Lq, Lk, D, H, nhead, need_weights, budget):
    divisors = [d for d in range(1, B + 1) if B % d == 0]
    fitting = [d for d in divisors
               if _vmem_estimate(d, Lq, Lk, D, H, nhead, need_weights) <= budget]
    if not fitting:
        fitting = [1]
    best = max(fitting)
    steps = B // best
    if steps < 2 or steps % 2:
        # v7x megacore: prefer an even >=2-step grid over the "parallel" batch
        # axis, but only if the MXU M dimension stays reasonably large.
        even = [d for d in fitting
                if (B // d) >= 2 and (B // d) % 2 == 0 and d * Lq >= 256]
        if even:
            best = max(even)
    return best


def cross_modal_encoder(query, key, key_mask, params, *, nhead,
                        block_b=None, compute_dtype=jnp.bfloat16,
                        need_weights=True):
    """query: (B, Lq, D) f32, key: (B, Lk, D) f32, key_mask: (B, Lk) bool
    (True = masked out). Returns (x, attn) like CrossModalEncoder.forward
    (attn is None when need_weights=False)."""
    B, Lq, D = query.shape
    _, Lk, _ = key.shape
    H = params["w1"].shape[1]
    assert D % nhead == 0

    # Pad Lq to a sublane multiple (free in-kernel reshapes); pad Lk to a lane
    # multiple when the attention-weight output is produced so its store is
    # lane-dense (unmasked vst). Padded keys are masked out, so results match.
    Lq_p = _round_up(Lq, 8)
    Lk_p = _round_up(Lk, 128 if need_weights else 8)
    if Lq_p != Lq:
        query = jnp.pad(query, ((0, 0), (0, Lq_p - Lq), (0, 0)))
    if Lk_p != Lk:
        key = jnp.pad(key, ((0, 0), (0, Lk_p - Lk), (0, 0)))
        key_mask = jnp.pad(key_mask, ((0, 0), (0, Lk_p - Lk)),
                           constant_values=True)

    # additive key mask, (B,1,Lk): broadcast inside the kernel (not materialized)
    mask_add = jnp.where(key_mask, -1e9, 0.0).astype(jnp.float32).reshape(B, 1, Lk_p)

    # chip-aware VMEM budget (v7x: 64 MiB/TC, v5e/v6e: 128 MiB)
    try:
        vmem_cap = pltpu.get_tpu_info().vmem_capacity_bytes
    except Exception:
        vmem_cap = 64 * 1024 * 1024
    if block_b is None:
        block_b = _pick_block_b(B, Lq_p, Lk_p, D, H, nhead, need_weights,
                                budget=int(0.65 * vmem_cap))
    assert B % block_b == 0, "block_b must divide B"
    vmem_limit = min(int(0.9 * vmem_cap), 100 * 1024 * 1024)

    # matmul weights travel in compute_dtype (halves HBM/VMEM traffic on bf16);
    # biases / LN params stay f32 (they are added to f32 accumulators).
    cast = lambda w: w.astype(compute_dtype)
    weights = [cast(params["wq"]), params["bq"],
               cast(params["wkv"]), params["bkv"],
               cast(params["wo"]), params["bo"],
               cast(params["w1"]), params["b1"],
               cast(params["w2"]), params["b2"],
               params["g1"], params["be1"], params["g2"], params["be2"]]

    kernel = functools.partial(cross_modal_kernel, nhead=nhead,
                               compute_dtype=compute_dtype,
                               need_weights=need_weights)

    def build(weight_pipeline_mode):
        def weight_spec(arr):
            nd = arr.ndim
            if weight_pipeline_mode is None:
                return pl.BlockSpec(arr.shape, lambda b, nd=nd: (0,) * nd)
            return pl.BlockSpec(arr.shape, lambda b, nd=nd: (0,) * nd,
                                pipeline_mode=weight_pipeline_mode)

        in_specs = [
            pl.BlockSpec((block_b, Lq_p, D), lambda b: (b, 0, 0)),   # query block
            pl.BlockSpec((block_b, Lk_p, D), lambda b: (b, 0, 0)),   # key block
            pl.BlockSpec((block_b, 1, Lk_p), lambda b: (b, 0, 0)),   # additive mask
        ] + [weight_spec(w) for w in weights]

        x_spec = pl.BlockSpec((block_b, Lq_p, D), lambda b: (b, 0, 0))
        x_shape = jax.ShapeDtypeStruct((B, Lq_p, D), jnp.float32)
        if need_weights:
            out_specs = [x_spec,
                         pl.BlockSpec((block_b, Lq_p, Lk_p), lambda b: (b, 0, 0))]
            out_shape = (x_shape,
                         jax.ShapeDtypeStruct((B, Lq_p, Lk_p), jnp.float32))
        else:
            out_specs, out_shape = x_spec, x_shape

        return pl.pallas_call(
            kernel, out_shape=out_shape, grid=(B // block_b,),
            in_specs=in_specs, out_specs=out_specs,
            compiler_params=pltpu.CompilerParams(
                dimension_semantics=("parallel",),
                vmem_limit_bytes=vmem_limit))

    args = (query, key, mask_add, *weights)
    try:
        # grid-invariant weights: single-buffered (halves their VMEM footprint)
        result = build(pl.Buffered(1))(*args)
    except Exception:
        # graceful fallback if this JAX build rejects pipeline_mode here;
        # a genuine kernel error will re-raise from this second call.
        result = build(None)(*args)

    if need_weights:
        x, attn = result
        return x[:, :Lq, :], attn[:, :Lq, :Lk]
    return result[:, :Lq, :], None


def make_params(d_model, nhead, hidden_dim, seed=0):
    keys = jax.random.split(jax.random.PRNGKey(seed), 10)
    n = lambda k, s, sc=0.05: jax.random.normal(k, s, jnp.float32) * sc
    return dict(
        wq=n(keys[0], (d_model, d_model)),      bq=n(keys[1], (1, d_model)),
        wkv=n(keys[2], (d_model, 2 * d_model)), bkv=n(keys[3], (1, 2 * d_model)),
        wo=n(keys[4], (d_model, d_model)),      bo=n(keys[5], (1, d_model)),
        w1=n(keys[6], (d_model, hidden_dim)),   b1=n(keys[7], (1, hidden_dim)),
        w2=n(keys[8], (hidden_dim, d_model)),   b2=n(keys[9], (1, d_model)),
        g1=jnp.ones((1, d_model), jnp.float32), be1=jnp.zeros((1, d_model), jnp.float32),
        g2=jnp.ones((1, d_model), jnp.float32), be2=jnp.zeros((1, d_model), jnp.float32),
    )


def reference(query, key, key_mask, params, *, nhead, compute_dtype=jnp.bfloat16):
    """Pure-JAX reference of the same math (same bf16 matmul-input policy)."""
    B, Lq, D = query.shape
    Lk = key.shape[1]
    hd = D // nhead
    scale = 1.0 / (hd ** 0.5)
    cd = compute_dtype
    mask_add = jnp.where(key_mask, -1e9, 0.0)[:, None, :]   # (B,1,Lk)

    mm = lambda a, w: jnp.dot(a.astype(cd), w.astype(cd),
                              preferred_element_type=jnp.float32)

    q = mm(query.reshape(B * Lq, D), params["wq"]) + params["bq"]
    kv = mm(key.reshape(B * Lk, D), params["wkv"]) + params["bkv"]
    q = (q * scale).reshape(B, Lq, nhead, hd)
    k = kv[:, :D].reshape(B, Lk, nhead, hd)
    v = kv[:, D:].reshape(B, Lk, nhead, hd)

    s = jnp.einsum('bqhe,bkhe->bhqk', q.astype(cd), k.astype(cd),
                   preferred_element_type=jnp.float32) + mask_add[:, None]
    p = jax.nn.softmax(s, axis=-1)
    o = jnp.einsum('bhqk,bkhe->bqhe', p.astype(cd), v.astype(cd),
                   preferred_element_type=jnp.float32).reshape(B * Lq, D)

    attn_out = mm(o, params["wo"]) + params["bo"]
    x = _layernorm(attn_out + query.reshape(B * Lq, D), params["g1"], params["be1"])
    h1 = jnp.maximum(mm(x, params["w1"]) + params["b1"], 0.0)
    f = mm(h1, params["w2"]) + params["b2"]
    x = _layernorm(x + f, params["g2"], params["be2"])
    return x.reshape(B, Lq, D), jnp.mean(p, axis=1)


if __name__ == "__main__":
    B, Lq, Lk = 2, 8, 16
    d_model, nhead, hidden_dim = 32, 2, 64

    root = jax.random.PRNGKey(0)
    kq, kk, km = jax.random.split(root, 3)
    query = jax.random.normal(kq, (B, Lq, d_model), jnp.float32)
    key = jax.random.normal(kk, (B, Lk, d_model), jnp.float32)
    key_mask = jax.random.bernoulli(km, 0.3, (B, Lk))
    key_mask = key_mask.at[:, 0].set(False)   # keep at least one attendable key

    params = make_params(d_model, nhead, hidden_dim, seed=0)

    x, attn = cross_modal_encoder(query, key, key_mask, params, nhead=nhead)
    jax.block_until_ready((x, attn))

    x_ref, attn_ref = reference(query, key, key_mask, params, nhead=nhead)
    assert x.shape == (B, Lq, d_model) and attn.shape == (B, Lq, Lk)
    assert jnp.allclose(x, x_ref, atol=5e-3, rtol=5e-3), "x mismatch vs reference"
    assert jnp.allclose(attn, attn_ref, atol=5e-3, rtol=5e-3), "attn mismatch vs reference"

    print("KERNEL_OK")
</pallas_src>

<mosaic_0001>
module attributes {stable_mosaic.version = 11 : i64} {
  func.func @cross_modal_kernel(%arg0: i32, %arg1: memref<2x8x32xf32, #tpu.memory_space<vmem>>, %arg2: memref<2x128x32xf32, #tpu.memory_space<vmem>>, %arg3: memref<2x1x128xf32, #tpu.memory_space<vmem>>, %arg4: memref<32x32xbf16, #tpu.memory_space<vmem>>, %arg5: memref<1x32xf32, #tpu.memory_space<vmem>>, %arg6: memref<32x64xbf16, #tpu.memory_space<vmem>>, %arg7: memref<1x64xf32, #tpu.memory_space<vmem>>, %arg8: memref<32x32xbf16, #tpu.memory_space<vmem>>, %arg9: memref<1x32xf32, #tpu.memory_space<vmem>>, %arg10: memref<32x64xbf16, #tpu.memory_space<vmem>>, %arg11: memref<1x64xf32, #tpu.memory_space<vmem>>, %arg12: memref<64x32xbf16, #tpu.memory_space<vmem>>, %arg13: memref<1x32xf32, #tpu.memory_space<vmem>>, %arg14: memref<1x32xf32, #tpu.memory_space<vmem>>, %arg15: memref<1x32xf32, #tpu.memory_space<vmem>>, %arg16: memref<1x32xf32, #tpu.memory_space<vmem>>, %arg17: memref<1x32xf32, #tpu.memory_space<vmem>>, %arg18: memref<2x8x32xf32, #tpu.memory_space<vmem>>, %arg19: memref<2x8x128xf32, #tpu.memory_space<vmem>>) attributes {dimension_semantics = [#tpu.dimension_semantics<parallel>], iteration_bounds = array<i64: 1>, scalar_prefetch = 0 : i64, scratch_operands = 0 : i64, tpu.core_type = #tpu.core_type<tc>, window_params = [{transform_indices = @transform_0, window_bounds = array<i64: 2, 8, 32>}, {transform_indices = @transform_1, window_bounds = array<i64: 2, 128, 32>}, {transform_indices = @transform_2, window_bounds = array<i64: 2, 1, 128>}, {pipeline_mode = #tpu.pipeline_mode<synchronous>, transform_indices = @transform_3, window_bounds = array<i64: 32, 32>}, {pipeline_mode = #tpu.pipeline_mode<synchronous>, transform_indices = @transform_4, window_bounds = array<i64: 1, 32>}, {pipeline_mode = #tpu.pipeline_mode<synchronous>, transform_indices = @transform_5, window_bounds = array<i64: 32, 64>}, {pipeline_mode = #tpu.pipeline_mode<synchronous>, transform_indices = @transform_6, window_bounds = array<i64: 1, 64>}, {pipeline_mode = #tpu.pipeline_mode<synchronous>, transform_indices = @transform_7, window_bounds = array<i64: 32, 32>}, {pipeline_mode = #tpu.pipeline_mode<synchronous>, transform_indices = @transform_8, window_bounds = array<i64: 1, 32>}, {pipeline_mode = #tpu.pipeline_mode<synchronous>, transform_indices = @transform_9, window_bounds = array<i64: 32, 64>}, {pipeline_mode = #tpu.pipeline_mode<synchronous>, transform_indices = @transform_10, window_bounds = array<i64: 1, 64>}, {pipeline_mode = #tpu.pipeline_mode<synchronous>, transform_indices = @transform_11, window_bounds = array<i64: 64, 32>}, {pipeline_mode = #tpu.pipeline_mode<synchronous>, transform_indices = @transform_12, window_bounds = array<i64: 1, 32>}, {pipeline_mode = #tpu.pipeline_mode<synchronous>, transform_indices = @transform_13, window_bounds = array<i64: 1, 32>}, {pipeline_mode = #tpu.pipeline_mode<synchronous>, transform_indices = @transform_14, window_bounds = array<i64: 1, 32>}, {pipeline_mode = #tpu.pipeline_mode<synchronous>, transform_indices = @transform_15, window_bounds = array<i64: 1, 32>}, {pipeline_mode = #tpu.pipeline_mode<synchronous>, transform_indices = @transform_16, window_bounds = array<i64: 1, 32>}, {transform_indices = @transform_17, window_bounds = array<i64: 2, 8, 32>}, {transform_indices = @transform_18, window_bounds = array<i64: 2, 8, 128>}]} {
    %c0 = arith.constant 0 : index
    %c0_0 = arith.constant 0 : index
    %c0_1 = arith.constant 0 : index
    %0 = vector.load %arg1[%c0, %c0_0, %c0_1] : memref<2x8x32xf32, #tpu.memory_space<vmem>>, vector<2x8x32xf32>
    %1 = vector.shape_cast %0 : vector<2x8x32xf32> to vector<16x32xf32>
    %c0_2 = arith.constant 0 : index
    %c0_3 = arith.constant 0 : index
    %c0_4 = arith.constant 0 : index
    %2 = vector.load %arg2[%c0_2, %c0_3, %c0_4] : memref<2x128x32xf32, #tpu.memory_space<vmem>>, vector<2x128x32xf32>
    %3 = vector.shape_cast %2 : vector<2x128x32xf32> to vector<256x32xf32>
    %4 = arith.truncf %1 : vector<16x32xf32> to vector<16x32xbf16>
    %c0_5 = arith.constant 0 : index
    %c0_6 = arith.constant 0 : index
    %5 = vector.load %arg4[%c0_5, %c0_6] : memref<32x32xbf16, #tpu.memory_space<vmem>>, vector<32x32xbf16>
    %cst = arith.constant dense<0.000000e+00> : vector<16x32xf32>
    %6 = tpu.matmul %4, %5, %cst {dimension_numbers = #tpu.dot_dimension_numbers<[1], [0], [0], [1], [0, 0, 1, 1], [], []>} : vector<16x32xbf16>, vector<32x32xbf16>, vector<16x32xf32> -> vector<16x32xf32>
    %c0_7 = arith.constant 0 : index
    %c0_8 = arith.constant 0 : index
    %7 = vector.load %arg5[%c0_7, %c0_8] : memref<1x32xf32, #tpu.memory_space<vmem>>, vector<1x32xf32>
    %8 = vector.broadcast %7 : vector<1x32xf32> to vector<16x32xf32>
    %9 = arith.addf %6, %8 : vector<16x32xf32>
    %10 = arith.truncf %3 : vector<256x32xf32> to vector<256x32xbf16>
    %c0_9 = arith.constant 0 : index
    %c0_10 = arith.constant 0 : index
    %11 = vector.load %arg6[%c0_9, %c0_10] : memref<32x64xbf16, #tpu.memory_space<vmem>>, vector<32x64xbf16>
    %cst_11 = arith.constant dense<0.000000e+00> : vector<256x64xf32>
    %12 = tpu.matmul %10, %11, %cst_11 {dimension_numbers = #tpu.dot_dimension_numbers<[1], [0], [0], [1], [0, 0, 1, 1], [], []>} : vector<256x32xbf16>, vector<32x64xbf16>, vector<256x64xf32> -> vector<256x64xf32>
    %c0_12 = arith.constant 0 : index
    %c0_13 = arith.constant 0 : index
    %13 = vector.load %arg7[%c0_12, %c0_13] : memref<1x64xf32, #tpu.memory_space<vmem>>, vector<1x64xf32>
    %14 = vector.broadcast %13 : vector<1x64xf32> to vector<256x64xf32>
    %15 = arith.addf %12, %14 : vector<256x64xf32>
    %cst_14 = arith.constant 2.500000e-01 : f32
    %16 = vector.broadcast %cst_14 : f32 to vector<16x32xf32>
    %17 = arith.mulf %9, %16 : vector<16x32xf32>
    %18 = arith.truncf %17 : vector<16x32xf32> to vector<16x32xbf16>
    %19 = vector.shape_cast %18 : vector<16x32xbf16> to vector<2x8x32xbf16>
    %20 = vector.extract_strided_slice %15 {offsets = [0, 0], sizes = [256, 32], strides = [1, 1]} : vector<256x64xf32> to vector<256x32xf32>
    %21 = arith.truncf %20 : vector<256x32xf32> to vector<256x32xbf16>
    %22 = vector.shape_cast %21 : vector<256x32xbf16> to vector<2x128x32xbf16>
    %23 = vector.extract_strided_slice %15 {offsets = [0, 32], sizes = [256, 32], strides = [1, 1]} : vector<256x64xf32> to vector<256x32xf32>
    %24 = arith.truncf %23 : vector<256x32xf32> to vector<256x32xbf16>
    %25 = vector.shape_cast %24 : vector<256x32xbf16> to vector<2x128x32xbf16>
    %26 = vector.extract_strided_slice %19 {offsets = [0, 0, 0], sizes = [2, 8, 16], strides = [1, 1, 1]} : vector<2x8x32xbf16> to vector<2x8x16xbf16>
    %27 = vector.extract_strided_slice %19 {offsets = [0, 0, 16], sizes = [2, 8, 16], strides = [1, 1, 1]} : vector<2x8x32xbf16> to vector<2x8x16xbf16>
    %28 = vector.shape_cast %26 : vector<2x8x16xbf16> to vector<1x2x8x16xbf16>
    %29 = vector.shape_cast %27 : vector<2x8x16xbf16> to vector<1x2x8x16xbf16>
    %30 = tpu.concatenate %28, %29 in 0 : vector<1x2x8x16xbf16>, vector<1x2x8x16xbf16> -> vector<2x2x8x16xbf16>
    %31 = vector.shape_cast %30 : vector<2x2x8x16xbf16> to vector<4x8x16xbf16>
    %32 = vector.extract_strided_slice %22 {offsets = [0, 0, 0], sizes = [2, 128, 16], strides = [1, 1, 1]} : vector<2x128x32xbf16> to vector<2x128x16xbf16>
    %33 = vector.extract_strided_slice %22 {offsets = [0, 0, 16], sizes = [2, 128, 16], strides = [1, 1, 1]} : vector<2x128x32xbf16> to vector<2x128x16xbf16>
    %34 = vector.shape_cast %32 : vector<2x128x16xbf16> to vector<1x2x128x16xbf16>
    %35 = vector.shape_cast %33 : vector<2x128x16xbf16> to vector<1x2x128x16xbf16>
    %36 = tpu.concatenate %34, %35 in 0 : vector<1x2x128x16xbf16>, vector<1x2x128x16xbf16> -> vector<2x2x128x16xbf16>
    %37 = vector.shape_cast %36 : vector<2x2x128x16xbf16> to vector<4x128x16xbf16>
    %38 = vector.extract_strided_slice %25 {offsets = [0, 0, 0], sizes = [2, 128, 16], strides = [1, 1, 1]} : vector<2x128x32xbf16> to vector<2x128x16xbf16>
    %39 = vector.extract_strided_slice %25 {offsets = [0, 0, 16], sizes = [2, 128, 16], strides = [1, 1, 1]} : vector<2x128x32xbf16> to vector<2x128x16xbf16>
    %40 = vector.shape_cast %38 : vector<2x128x16xbf16> to vector<1x2x128x16xbf16>
    %41 = vector.shape_cast %39 : vector<2x128x16xbf16> to vector<1x2x128x16xbf16>
    %42 = tpu.concatenate %40, %41 in 0 : vector<1x2x128x16xbf16>, vector<1x2x128x16xbf16> -> vector<2x2x128x16xbf16>
    %43 = vector.shape_cast %42 : vector<2x2x128x16xbf16> to vector<4x128x16xbf16>
    "tpu.trace_start"() <{level = 10 : i32, message = "bqe,bke->bqk"}> : () -> ()
    %cst_15 = arith.constant dense<0.000000e+00> : vector<4x8x128xf32>
    %44 = tpu.matmul %31, %37, %cst_15 {dimension_numbers = #tpu.dot_dimension_numbers<[2], [2], [1], [1], [0, 0, 0, 1, 1, 1], [0], [0]>} : vector<4x8x16xbf16>, vector<4x128x16xbf16>, vector<4x8x128xf32> -> vector<4x8x128xf32>
    "tpu.trace_stop"() : () -> ()
    %45 = vector.shape_cast %44 : vector<4x8x128xf32> to vector<2x2x8x128xf32>
    %c0_16 = arith.constant 0 : index
    %c0_17 = arith.constant 0 : index
    %c0_18 = arith.constant 0 : index
    %46 = vector.load %arg3[%c0_16, %c0_17, %c0_18] : memref<2x1x128xf32, #tpu.memory_space<vmem>>, vector<2x1x128xf32>
    %47 = vector.shape_cast %46 : vector<2x1x128xf32> to vector<1x2x1x128xf32>
    %48 = vector.broadcast %47 : vector<1x2x1x128xf32> to vector<2x2x8x128xf32>
    %49 = arith.addf %45, %48 : vector<2x2x8x128xf32>
    %cst_19 = arith.constant dense<0xFF800000> : vector<2x2x8xf32>
    %50 = vector.multi_reduction <maximumf>, %49, %cst_19 [3] : vector<2x2x8x128xf32> to vector<2x2x8xf32>
    %51 = vector.shape_cast %50 : vector<2x2x8xf32> to vector<2x2x8x1xf32>
    %52 = vector.broadcast %51 : vector<2x2x8x1xf32> to vector<2x2x8x128xf32>
    %53 = arith.subf %49, %52 : vector<2x2x8x128xf32>
    %54 = math.exp %53 : vector<2x2x8x128xf32>
    %cst_20 = arith.constant dense<0.000000e+00> : vector<2x2x8xf32>
    %55 = vector.multi_reduction <add>, %54, %cst_20 [3] : vector<2x2x8x128xf32> to vector<2x2x8xf32>
    %56 = vector.shape_cast %55 : vector<2x2x8xf32> to vector<2x2x8x1xf32>
    %57 = tpu.reciprocal %56 {approx = true} : vector<2x2x8x1xf32> -> vector<2x2x8x1xf32>
    %58 = arith.mulf %56, %57 : vector<2x2x8x1xf32>
    %cst_21 = arith.constant 2.000000e+00 : f32
    %59 = vector.broadcast %cst_21 : f32 to vector<2x2x8x1xf32>
    %60 = arith.subf %59, %58 : vector<2x2x8x1xf32>
    %61 = arith.mulf %57, %60 : vector<2x2x8x1xf32>
    %62 = vector.broadcast %61 : vector<2x2x8x1xf32> to vector<2x2x8x128xf32>
    %63 = arith.mulf %54, %62 : vector<2x2x8x128xf32>
    %cst_22 = arith.constant dense<0.000000e+00> : vector<2x8x128xf32>
    %64 = vector.multi_reduction <add>, %63, %cst_22 [0] : vector<2x2x8x128xf32> to vector<2x8x128xf32>
    %cst_23 = arith.constant 5.000000e-01 : f32
    %65 = vector.broadcast %cst_23 : f32 to vector<2x8x128xf32>
    %66 = arith.mulf %64, %65 : vector<2x8x128xf32>
    %c0_24 = arith.constant 0 : index
    %c0_25 = arith.constant 0 : index
    %c0_26 = arith.constant 0 : index
    %67 = vector.load %arg19[%c0_24, %c0_25, %c0_26] : memref<2x8x128xf32, #tpu.memory_space<vmem>>, vector<2x8x128xf32>
    tpu.vector_store %arg19[%c0_24, %c0_25, %c0_26], %66 {strides = array<i32>} : memref<2x8x128xf32, #tpu.memory_space<vmem>>, vector<2x8x128xf32>,
    %68 = vector.shape_cast %63 : vector<2x2x8x128xf32> to vector<4x8x128xf32>
    %69 = arith.truncf %68 : vector<4x8x128xf32> to vector<4x8x128xbf16>
    "tpu.trace_start"() <{level = 10 : i32, message = "bqk,bke->bqe"}> : () -> ()
    %cst_27 = arith.constant dense<0.000000e+00> : vector<4x8x16xf32>
    %70 = tpu.matmul %69, %43, %cst_27 {dimension_numbers = #tpu.dot_dimension_numbers<[2], [1], [1], [2], [0, 0, 0, 1, 1, 2], [0], [0]>} : vector<4x8x128xbf16>, vector<4x128x16xbf16>, vector<4x8x16xf32> -> vector<4x8x16xf32>
    "tpu.trace_stop"() : () -> ()
    %71 = arith.truncf %70 : vector<4x8x16xf32> to vector<4x8x16xbf16>
    %72 = vector.shape_cast %71 : vector<4x8x16xbf16> to vector<2x2x8x16xbf16>
    %73 = vector.extract_strided_slice %72 {offsets = [0, 0, 0, 0], sizes = [1, 2, 8, 16], strides = [1, 1, 1, 1]} : vector<2x2x8x16xbf16> to vector<1x2x8x16xbf16>
    %74 = vector.shape_cast %73 : vector<1x2x8x16xbf16> to vector<2x8x16xbf16>
    %75 = vector.extract_strided_slice %72 {offsets = [1, 0, 0, 0], sizes = [1, 2, 8, 16], strides = [1, 1, 1, 1]} : vector<2x2x8x16xbf16> to vector<1x2x8x16xbf16>
    %76 = vector.shape_cast %75 : vector<1x2x8x16xbf16> to vector<2x8x16xbf16>
    %77 = tpu.concatenate %74, %76 in 2 : vector<2x8x16xbf16>, vector<2x8x16xbf16> -> vector<2x8x32xbf16>
    %78 = vector.shape_cast %77 : vector<2x8x32xbf16> to vector<16x32xbf16>
    %c0_28 = arith.constant 0 : index
    %c0_29 = arith.constant 0 : index
    %79 = vector.load %arg8[%c0_28, %c0_29] : memref<32x32xbf16, #tpu.memory_space<vmem>>, vector<32x32xbf16>
    %cst_30 = arith.constant dense<0.000000e+00> : vector<16x32xf32>
    %80 = tpu.matmul %78, %79, %cst_30 {dimension_numbers = #tpu.dot_dimension_numbers<[1], [0], [0], [1], [0, 0, 1, 1], [], []>} : vector<16x32xbf16>, vector<32x32xbf16>, vector<16x32xf32> -> vector<16x32xf32>
    %c0_31 = arith.constant 0 : index
    %c0_32 = arith.constant 0 : index
    %81 = vector.load %arg9[%c0_31, %c0_32] : memref<1x32xf32, #tpu.memory_space<vmem>>, vector<1x32xf32>
    %82 = vector.broadcast %81 : vector<1x32xf32> to vector<16x32xf32>
    %83 = arith.addf %80, %82 : vector<16x32xf32>
    %84 = arith.addf %83, %1 : vector<16x32xf32>
    %c0_33 = arith.constant 0 : index
    %c0_34 = arith.constant 0 : index
    %85 = vector.load %arg14[%c0_33, %c0_34] : memref<1x32xf32, #tpu.memory_space<vmem>>, vector<1x32xf32>
    %c0_35 = arith.constant 0 : index
    %c0_36 = arith.constant 0 : index
    %86 = vector.load %arg15[%c0_35, %c0_36] : memref<1x32xf32, #tpu.memory_space<vmem>>, vector<1x32xf32>
    %cst_37 = arith.constant dense<0.000000e+00> : vector<16xf32>
    %87 = vector.multi_reduction <add>, %84, %cst_37 [1] : vector<16x32xf32> to vector<16xf32>
    %88 = vector.shape_cast %87 : vector<16xf32> to vector<16x1xf32>
    %cst_38 = arith.constant 3.200000e+01 : f32
    %89 = vector.broadcast %cst_38 : f32 to vector<16x1xf32>
    %90 = arith.divf %88, %89 : vector<16x1xf32>
    %91 = vector.broadcast %90 : vector<16x1xf32> to vector<16x32xf32>
    %92 = arith.subf %84, %91 : vector<16x32xf32>
    %93 = arith.mulf %92, %92 : vector<16x32xf32>
    %cst_39 = arith.constant dense<0.000000e+00> : vector<16xf32>
    %94 = vector.multi_reduction <add>, %93, %cst_39 [1] : vector<16x32xf32> to vector<16xf32>
    %95 = vector.shape_cast %94 : vector<16xf32> to vector<16x1xf32>
    %cst_40 = arith.constant 3.200000e+01 : f32
    %96 = vector.broadcast %cst_40 : f32 to vector<16x1xf32>
    %97 = arith.divf %95, %96 : vector<16x1xf32>
    %98 = vector.broadcast %90 : vector<16x1xf32> to vector<16x32xf32>
    %99 = arith.subf %84, %98 : vector<16x32xf32>
    %cst_41 = arith.constant 9.99999974E-6 : f32
    %100 = vector.broadcast %cst_41 : f32 to vector<16x1xf32>
    %101 = arith.addf %97, %100 : vector<16x1xf32>
    %102 = math.rsqrt %101 : vector<16x1xf32>
    %103 = vector.broadcast %102 : vector<16x1xf32> to vector<16x32xf32>
    %104 = arith.mulf %99, %103 : vector<16x32xf32>
    %105 = vector.broadcast %85 : vector<1x32xf32> to vector<16x32xf32>
    %106 = arith.mulf %104, %105 : vector<16x32xf32>
    %107 = vector.broadcast %86 : vector<1x32xf32> to vector<16x32xf32>
    %108 = arith.addf %106, %107 : vector<16x32xf32>
    %109 = arith.truncf %108 : vector<16x32xf32> to vector<16x32xbf16>
    %c0_42 = arith.constant 0 : index
    %c0_43 = arith.constant 0 : index
    %110 = vector.load %arg10[%c0_42, %c0_43] : memref<32x64xbf16, #tpu.memory_space<vmem>>, vector<32x64xbf16>
    %cst_44 = arith.constant dense<0.000000e+00> : vector<16x64xf32>
    %111 = tpu.matmul %109, %110, %cst_44 {dimension_numbers = #tpu.dot_dimension_numbers<[1], [0], [0], [1], [0, 0, 1, 1], [], []>} : vector<16x32xbf16>, vector<32x64xbf16>, vector<16x64xf32> -> vector<16x64xf32>
    %c0_45 = arith.constant 0 : index
    %c0_46 = arith.constant 0 : index
    %112 = vector.load %arg11[%c0_45, %c0_46] : memref<1x64xf32, #tpu.memory_space<vmem>>, vector<1x64xf32>
    %113 = vector.broadcast %112 : vector<1x64xf32> to vector<16x64xf32>
    %114 = arith.addf %111, %113 : vector<16x64xf32>
    %cst_47 = arith.constant 0.000000e+00 : f32
    %115 = vector.broadcast %cst_47 : f32 to vector<16x64xf32>
    %116 = arith.maximumf %114, %115 : vector<16x64xf32>
    %117 = arith.truncf %116 : vector<16x64xf32> to vector<16x64xbf16>
    %c0_48 = arith.constant 0 : index
    %c0_49 = arith.constant 0 : index
    %118 = vector.load %arg12[%c0_48, %c0_49] : memref<64x32xbf16, #tpu.memory_space<vmem>>, vector<64x32xbf16>
    %cst_50 = arith.constant dense<0.000000e+00> : vector<16x32xf32>
    %119 = tpu.matmul %117, %118, %cst_50 {dimension_numbers = #tpu.dot_dimension_numbers<[1], [0], [0], [1], [0, 0, 1, 1], [], []>} : vector<16x64xbf16>, vector<64x32xbf16>, vector<16x32xf32> -> vector<16x32xf32>
    %c0_51 = arith.constant 0 : index
    %c0_52 = arith.constant 0 : index
    %120 = vector.load %arg13[%c0_51, %c0_52] : memref<1x32xf32, #tpu.memory_space<vmem>>, vector<1x32xf32>
    %121 = vector.broadcast %120 : vector<1x32xf32> to vector<16x32xf32>
    %122 = arith.addf %119, %121 : vector<16x32xf32>
    %123 = arith.addf %108, %122 : vector<16x32xf32>
    %c0_53 = arith.constant 0 : index
    %c0_54 = arith.constant 0 : index
    %124 = vector.load %arg16[%c0_53, %c0_54] : memref<1x32xf32, #tpu.memory_space<vmem>>, vector<1x32xf32>
    %c0_55 = arith.constant 0 : index
    %c0_56 = arith.constant 0 : index
    %125 = vector.load %arg17[%c0_55, %c0_56] : memref<1x32xf32, #tpu.memory_space<vmem>>, vector<1x32xf32>
    %cst_57 = arith.constant dense<0.000000e+00> : vector<16xf32>
    %126 = vector.multi_reduction <add>, %123, %cst_57 [1] : vector<16x32xf32> to vector<16xf32>
    %127 = vector.shape_cast %126 : vector<16xf32> to vector<16x1xf32>
    %cst_58 = arith.constant 3.200000e+01 : f32
    %128 = vector.broadcast %cst_58 : f32 to vector<16x1xf32>
    %129 = arith.divf %127, %128 : vector<16x1xf32>
    %130 = vector.broadcast %129 : vector<16x1xf32> to vector<16x32xf32>
    %131 = arith.subf %123, %130 : vector<16x32xf32>
    %132 = arith.mulf %131, %131 : vector<16x32xf32>
    %cst_59 = arith.constant dense<0.000000e+00> : vector<16xf32>
    %133 = vector.multi_reduction <add>, %132, %cst_59 [1] : vector<16x32xf32> to vector<16xf32>
    %134 = vector.shape_cast %133 : vector<16xf32> to vector<16x1xf32>
    %cst_60 = arith.constant 3.200000e+01 : f32
    %135 = vector.broadcast %cst_60 : f32 to vector<16x1xf32>
    %136 = arith.divf %134, %135 : vector<16x1xf32>
    %137 = vector.broadcast %129 : vector<16x1xf32> to vector<16x32xf32>
    %138 = arith.subf %123, %137 : vector<16x32xf32>
    %cst_61 = arith.constant 9.99999974E-6 : f32
    %139 = vector.broadcast %cst_61 : f32 to vector<16x1xf32>
    %140 = arith.addf %136, %139 : vector<16x1xf32>
    %141 = math.rsqrt %140 : vector<16x1xf32>
    %142 = vector.broadcast %141 : vector<16x1xf32> to vector<16x32xf32>
    %143 = arith.mulf %138, %142 : vector<16x32xf32>
    %144 = vector.broadcast %124 : vector<1x32xf32> to vector<16x32xf32>
    %145 = arith.mulf %143, %144 : vector<16x32xf32>
    %146 = vector.broadcast %125 : vector<1x32xf32> to vector<16x32xf32>
    %147 = arith.addf %145, %146 : vector<16x32xf32>
    %148 = vector.shape_cast %147 : vector<16x32xf32> to vector<2x8x32xf32>
    %c0_62 = arith.constant 0 : index
    %c0_63 = arith.constant 0 : index
    %c0_64 = arith.constant 0 : index
    %149 = vector.load %arg18[%c0_62, %c0_63, %c0_64] : memref<2x8x32xf32, #tpu.memory_space<vmem>>, vector<2x8x32xf32>
    tpu.vector_store %arg18[%c0_62, %c0_63, %c0_64], %148 {strides = array<i32>} : memref<2x8x32xf32, #tpu.memory_space<vmem>>, vector<2x8x32xf32>,
    return
  }
  func.func @transform_0(%arg0: i32) -> (i32, i32, i32) {
    %c0_i32 = arith.constant 0 : i32
    %c0_i32_0 = arith.constant 0 : i32
    %c0_i32_1 = arith.constant 0 : i32
    return %arg0, %c0_i32, %c0_i32_0 : i32, i32, i32
  }
  func.func @transform_1(%arg0: i32) -> (i32, i32, i32) {
    %c0_i32 = arith.constant 0 : i32
    %c0_i32_0 = arith.constant 0 : i32
    %c0_i32_1 = arith.constant 0 : i32
    return %arg0, %c0_i32, %c0_i32_0 : i32, i32, i32
  }
  func.func @transform_2(%arg0: i32) -> (i32, i32, i32) {
    %c0_i32 = arith.constant 0 : i32
    %c0_i32_0 = arith.constant 0 : i32
    %c0_i32_1 = arith.constant 0 : i32
    return %arg0, %c0_i32, %c0_i32_0 : i32, i32, i32
  }
  func.func @transform_3(%arg0: i32) -> (i32, i32) {
    %c0_i32 = arith.constant 0 : i32
    %c0_i32_0 = arith.constant 0 : i32
    %c0_i32_1 = arith.constant 0 : i32
    return %c0_i32, %c0_i32_0 : i32, i32
  }
  func.func @transform_4(%arg0: i32) -> (i32, i32) {
    %c0_i32 = arith.constant 0 : i32
    %c0_i32_0 = arith.constant 0 : i32
    %c0_i32_1 = arith.constant 0 : i32
    return %c0_i32, %c0_i32_0 : i32, i32
  }
  func.func @transform_5(%arg0: i32) -> (i32, i32) {
    %c0_i32 = arith.constant 0 : i32
    %c0_i32_0 = arith.constant 0 : i32
    %c0_i32_1 = arith.constant 0 : i32
    return %c0_i32, %c0_i32_0 : i32, i32
  }
  func.func @transform_6(%arg0: i32) -> (i32, i32) {
    %c0_i32 = arith.constant 0 : i32
    %c0_i32_0 = arith.constant 0 : i32
    %c0_i32_1 = arith.constant 0 : i32
    return %c0_i32, %c0_i32_0 : i32, i32
  }
  func.func @transform_7(%arg0: i32) -> (i32, i32) {
    %c0_i32 = arith.constant 0 : i32
    %c0_i32_0 = arith.constant 0 : i32
    %c0_i32_1 = arith.constant 0 : i32
    return %c0_i32, %c0_i32_0 : i32, i32
  }
  func.func @transform_8(%arg0: i32) -> (i32, i32) {
    %c0_i32 = arith.constant 0 : i32
    %c0_i32_0 = arith.constant 0 : i32
    %c0_i32_1 = arith.constant 0 : i32
    return %c0_i32, %c0_i32_0 : i32, i32
  }
  func.func @transform_9(%arg0: i32) -> (i32, i32) {
    %c0_i32 = arith.constant 0 : i32
    %c0_i32_0 = arith.constant 0 : i32
    %c0_i32_1 = arith.constant 0 : i32
    return %c0_i32, %c0_i32_0 : i32, i32
  }
  func.func @transform_10(%arg0: i32) -> (i32, i32) {
    %c0_i32 = arith.constant 0 : i32
    %c0_i32_0 = arith.constant 0 : i32
    %c0_i32_1 = arith.constant 0 : i32
    return %c0_i32, %c0_i32_0 : i32, i32
  }
  func.func @transform_11(%arg0: i32) -> (i32, i32) {
    %c0_i32 = arith.constant 0 : i32
    %c0_i32_0 = arith.constant 0 : i32
    %c0_i32_1 = arith.constant 0 : i32
    return %c0_i32, %c0_i32_0 : i32, i32
  }
  func.func @transform_12(%arg0: i32) -> (i32, i32) {
    %c0_i32 = arith.constant 0 : i32
    %c0_i32_0 = arith.constant 0 : i32
    %c0_i32_1 = arith.constant 0 : i32
    return %c0_i32, %c0_i32_0 : i32, i32
  }
  func.func @transform_13(%arg0: i32) -> (i32, i32) {
    %c0_i32 = arith.constant 0 : i32
    %c0_i32_0 = arith.constant 0 : i32
    %c0_i32_1 = arith.constant 0 : i32
    return %c0_i32, %c0_i32_0 : i32, i32
  }
  func.func @transform_14(%arg0: i32) -> (i32, i32) {
    %c0_i32 = arith.constant 0 : i32
    %c0_i32_0 = arith.constant 0 : i32
    %c0_i32_1 = arith.constant 0 : i32
    return %c0_i32, %c0_i32_0 : i32, i32
  }
  func.func @transform_15(%arg0: i32) -> (i32, i32) {
    %c0_i32 = arith.constant 0 : i32
    %c0_i32_0 = arith.constant 0 : i32
    %c0_i32_1 = arith.constant 0 : i32
    return %c0_i32, %c0_i32_0 : i32, i32
  }
  func.func @transform_16(%arg0: i32) -> (i32, i32) {
    %c0_i32 = arith.constant 0 : i32
    %c0_i32_0 = arith.constant 0 : i32
    %c0_i32_1 = arith.constant 0 : i32
    return %c0_i32, %c0_i32_0 : i32, i32
  }
  func.func @transform_17(%arg0: i32) -> (i32, i32, i32) {
    %c0_i32 = arith.constant 0 : i32
    %c0_i32_0 = arith.constant 0 : i32
    %c0_i32_1 = arith.constant 0 : i32
    return %arg0, %c0_i32, %c0_i32_0 : i32, i32, i32
  }
  func.func @transform_18(%arg0: i32) -> (i32, i32, i32) {
    %c0_i32 = arith.constant 0 : i32
    %c0_i32_0 = arith.constant 0 : i32
    %c0_i32_1 = arith.constant 0 : i32
    return %arg0, %c0_i32, %c0_i32_0 : i32, i32, i32
  }
}

module attributes {stable_mosaic.version = 11 : i64} {
  func.func @cross_modal_kernel(%arg0: i32, %arg1: memref<2x8x32xf32, #tpu.memory_space<vmem>>, %arg2: memref<2x128x32xf32, #tpu.memory_space<vmem>>, %arg3: memref<2x1x128xf32, #tpu.memory_space<vmem>>, %arg4: memref<32x32xbf16, #tpu.memory_space<vmem>>, %arg5: memref<1x32xf32, #tpu.memory_space<vmem>>, %arg6: memref<32x64xbf16, #tpu.memory_space<vmem>>, %arg7: memref<1x64xf32, #tpu.memory_space<vmem>>, %arg8: memref<32x32xbf16, #tpu.memory_space<vmem>>, %arg9: memref<1x32xf32, #tpu.memory_space<vmem>>, %arg10: memref<32x64xbf16, #tpu.memory_space<vmem>>, %arg11: memref<1x64xf32, #tpu.memory_space<vmem>>, %arg12: memref<64x32xbf16, #tpu.memory_space<vmem>>, %arg13: memref<1x32xf32, #tpu.memory_space<vmem>>, %arg14: memref<1x32xf32, #tpu.memory_space<vmem>>, %arg15: memref<1x32xf32, #tpu.memory_space<vmem>>, %arg16: memref<1x32xf32, #tpu.memory_space<vmem>>, %arg17: memref<1x32xf32, #tpu.memory_space<vmem>>, %arg18: memref<2x8x32xf32, #tpu.memory_space<vmem>>, %arg19: memref<2x8x128xf32, #tpu.memory_space<vmem>>) attributes {dimension_semantics = [#tpu.dimension_semantics<parallel>], iteration_bounds = array<i64: 1>, scalar_prefetch = 0 : i64, scratch_operands = 0 : i64, tpu.core_type = #tpu.core_type<tc>, window_params = [{transform_indices = @transform_0, window_bounds = array<i64: 2, 8, 32>}, {transform_indices = @transform_1, window_bounds = array<i64: 2, 128, 32>}, {transform_indices = @transform_2, window_bounds = array<i64: 2, 1, 128>}, {pipeline_mode = #tpu.pipeline_mode<synchronous>, transform_indices = @transform_3, window_bounds = array<i64: 32, 32>}, {pipeline_mode = #tpu.pipeline_mode<synchronous>, transform_indices = @transform_4, window_bounds = array<i64: 1, 32>}, {pipeline_mode = #tpu.pipeline_mode<synchronous>, transform_indices = @transform_5, window_bounds = array<i64: 32, 64>}, {pipeline_mode = #tpu.pipeline_mode<synchronous>, transform_indices = @transform_6, window_bounds = array<i64: 1, 64>}, {pipeline_mode = #tpu.pipeline_mode<synchronous>, transform_indices = @transform_7, window_bounds = array<i64: 32, 32>}, {pipeline_mode = #tpu.pipeline_mode<synchronous>, transform_indices = @transform_8, window_bounds = array<i64: 1, 32>}, {pipeline_mode = #tpu.pipeline_mode<synchronous>, transform_indices = @transform_9, window_bounds = array<i64: 32, 64>}, {pipeline_mode = #tpu.pipeline_mode<synchronous>, transform_indices = @transform_10, window_bounds = array<i64: 1, 64>}, {pipeline_mode = #tpu.pipeline_mode<synchronous>, transform_indices = @transform_11, window_bounds = array<i64: 64, 32>}, {pipeline_mode = #tpu.pipeline_mode<synchronous>, transform_indices = @transform_12, window_bounds = array<i64: 1, 32>}, {pipeline_mode = #tpu.pipeline_mode<synchronous>, transform_indices = @transform_13, window_bounds = array<i64: 1, 32>}, {pipeline_mode = #tpu.pipeline_mode<synchronous>, transform_indices = @transform_14, window_bounds = array<i64: 1, 32>}, {pipeline_mode = #tpu.pipeline_mode<synchronous>, transform_indices = @transform_15, window_bounds = array<i64: 1, 32>}, {pipeline_mode = #tpu.pipeline_mode<synchronous>, transform_indices = @transform_16, window_bounds = array<i64: 1, 32>}, {transform_indices = @transform_17, window_bounds = array<i64: 2, 8, 32>}, {transform_indices = @transform_18, window_bounds = array<i64: 2, 8, 128>}]} {
    %c0 = arith.constant 0 : index
    %c0_0 = arith.constant 0 : index
    %c0_1 = arith.constant 0 : index
    %0 = vector.load %arg1[%c0, %c0_0, %c0_1] : memref<2x8x32xf32, #tpu.memory_space<vmem>>, vector<2x8x32xf32>
    %1 = vector.shape_cast %0 : vector<2x8x32xf32> to vector<16x32xf32>
    %c0_2 = arith.constant 0 : index
    %c0_3 = arith.constant 0 : index
    %c0_4 = arith.constant 0 : index
    %2 = vector.load %arg2[%c0_2, %c0_3, %c0_4] : memref<2x128x32xf32, #tpu.memory_space<vmem>>, vector<2x128x32xf32>
    %3 = vector.shape_cast %2 : vector<2x128x32xf32> to vector<256x32xf32>
    %4 = arith.truncf %1 : vector<16x32xf32> to vector<16x32xbf16>
    %c0_5 = arith.constant 0 : index
    %c0_6 = arith.constant 0 : index
    %5 = vector.load %arg4[%c0_5, %c0_6] : memref<32x32xbf16, #tpu.memory_space<vmem>>, vector<32x32xbf16>
    %cst = arith.constant dense<0.000000e+00> : vector<16x32xf32>
    %6 = tpu.matmul %4, %5, %cst {dimension_numbers = #tpu.dot_dimension_numbers<[1], [0], [0], [1], [0, 0, 1, 1], [], []>} : vector<16x32xbf16>, vector<32x32xbf16>, vector<16x32xf32> -> vector<16x32xf32>
    %c0_7 = arith.constant 0 : index
    %c0_8 = arith.constant 0 : index
    %7 = vector.load %arg5[%c0_7, %c0_8] : memref<1x32xf32, #tpu.memory_space<vmem>>, vector<1x32xf32>
    %8 = vector.broadcast %7 : vector<1x32xf32> to vector<16x32xf32>
    %9 = arith.addf %6, %8 : vector<16x32xf32>
    %10 = arith.truncf %3 : vector<256x32xf32> to vector<256x32xbf16>
    %c0_9 = arith.constant 0 : index
    %c0_10 = arith.constant 0 : index
    %11 = vector.load %arg6[%c0_9, %c0_10] : memref<32x64xbf16, #tpu.memory_space<vmem>>, vector<32x64xbf16>
    %cst_11 = arith.constant dense<0.000000e+00> : vector<256x64xf32>
    %12 = tpu.matmul %10, %11, %cst_11 {dimension_numbers = #tpu.dot_dimension_numbers<[1], [0], [0], [1], [0, 0, 1, 1], [], []>} : vector<256x32xbf16>, vector<32x64xbf16>, vector<256x64xf32> -> vector<256x64xf32>
    %c0_12 = arith.constant 0 : index
    %c0_13 = arith.constant 0 : index
    %13 = vector.load %arg7[%c0_12, %c0_13] : memref<1x64xf32, #tpu.memory_space<vmem>>, vector<1x64xf32>
    %14 = vector.broadcast %13 : vector<1x64xf32> to vector<256x64xf32>
    %15 = arith.addf %12, %14 : vector<256x64xf32>
    %cst_14 = arith.constant 2.500000e-01 : f32
    %16 = vector.broadcast %cst_14 : f32 to vector<16x32xf32>
    %17 = arith.mulf %9, %16 : vector<16x32xf32>
    %18 = arith.truncf %17 : vector<16x32xf32> to vector<16x32xbf16>
    %19 = vector.shape_cast %18 : vector<16x32xbf16> to vector<2x8x32xbf16>
    %20 = vector.extract_strided_slice %15 {offsets = [0, 0], sizes = [256, 32], strides = [1, 1]} : vector<256x64xf32> to vector<256x32xf32>
    %21 = arith.truncf %20 : vector<256x32xf32> to vector<256x32xbf16>
    %22 = vector.shape_cast %21 : vector<256x32xbf16> to vector<2x128x32xbf16>
    %23 = vector.extract_strided_slice %15 {offsets = [0, 32], sizes = [256, 32], strides = [1, 1]} : vector<256x64xf32> to vector<256x32xf32>
    %24 = arith.truncf %23 : vector<256x32xf32> to vector<256x32xbf16>
    %25 = vector.shape_cast %24 : vector<256x32xbf16> to vector<2x128x32xbf16>
    %26 = vector.extract_strided_slice %19 {offsets = [0, 0, 0], sizes = [2, 8, 16], strides = [1, 1, 1]} : vector<2x8x32xbf16> to vector<2x8x16xbf16>
    %27 = vector.extract_strided_slice %19 {offsets = [0, 0, 16], sizes = [2, 8, 16], strides = [1, 1, 1]} : vector<2x8x32xbf16> to vector<2x8x16xbf16>
    %28 = vector.shape_cast %26 : vector<2x8x16xbf16> to vector<1x2x8x16xbf16>
    %29 = vector.shape_cast %27 : vector<2x8x16xbf16> to vector<1x2x8x16xbf16>
    %30 = tpu.concatenate %28, %29 in 0 : vector<1x2x8x16xbf16>, vector<1x2x8x16xbf16> -> vector<2x2x8x16xbf16>
    %31 = vector.shape_cast %30 : vector<2x2x8x16xbf16> to vector<4x8x16xbf16>
    %32 = vector.extract_strided_slice %22 {offsets = [0, 0, 0], sizes = [2, 128, 16], strides = [1, 1, 1]} : vector<2x128x32xbf16> to vector<2x128x16xbf16>
    %33 = vector.extract_strided_slice %22 {offsets = [0, 0, 16], sizes = [2, 128, 16], strides = [1, 1, 1]} : vector<2x128x32xbf16> to vector<2x128x16xbf16>
    %34 = vector.shape_cast %32 : vector<2x128x16xbf16> to vector<1x2x128x16xbf16>
    %35 = vector.shape_cast %33 : vector<2x128x16xbf16> to vector<1x2x128x16xbf16>
    %36 = tpu.concatenate %34, %35 in 0 : vector<1x2x128x16xbf16>, vector<1x2x128x16xbf16> -> vector<2x2x128x16xbf16>
    %37 = vector.shape_cast %36 : vector<2x2x128x16xbf16> to vector<4x128x16xbf16>
    %38 = vector.extract_strided_slice %25 {offsets = [0, 0, 0], sizes = [2, 128, 16], strides = [1, 1, 1]} : vector<2x128x32xbf16> to vector<2x128x16xbf16>
    %39 = vector.extract_strided_slice %25 {offsets = [0, 0, 16], sizes = [2, 128, 16], strides = [1, 1, 1]} : vector<2x128x32xbf16> to vector<2x128x16xbf16>
    %40 = vector.shape_cast %38 : vector<2x128x16xbf16> to vector<1x2x128x16xbf16>
    %41 = vector.shape_cast %39 : vector<2x128x16xbf16> to vector<1x2x128x16xbf16>
    %42 = tpu.concatenate %40, %41 in 0 : vector<1x2x128x16xbf16>, vector<1x2x128x16xbf16> -> vector<2x2x128x16xbf16>
    %43 = vector.shape_cast %42 : vector<2x2x128x16xbf16> to vector<4x128x16xbf16>
    "tpu.trace_start"() <{level = 10 : i32, message = "bqe,bke->bqk"}> : () -> ()
    %cst_15 = arith.constant dense<0.000000e+00> : vector<4x8x128xf32>
    %44 = tpu.matmul %31, %37, %cst_15 {dimension_numbers = #tpu.dot_dimension_numbers<[2], [2], [1], [1], [0, 0, 0, 1, 1, 1], [0], [0]>} : vector<4x8x16xbf16>, vector<4x128x16xbf16>, vector<4x8x128xf32> -> vector<4x8x128xf32>
    "tpu.trace_stop"() : () -> ()
    %45 = vector.shape_cast %44 : vector<4x8x128xf32> to vector<2x2x8x128xf32>
    %c0_16 = arith.constant 0 : index
    %c0_17 = arith.constant 0 : index
    %c0_18 = arith.constant 0 : index
    %46 = vector.load %arg3[%c0_16, %c0_17, %c0_18] : memref<2x1x128xf32, #tpu.memory_space<vmem>>, vector<2x1x128xf32>
    %47 = vector.shape_cast %46 : vector<2x1x128xf32> to vector<1x2x1x128xf32>
    %48 = vector.broadcast %47 : vector<1x2x1x128xf32> to vector<2x2x8x128xf32>
    %49 = arith.addf %45, %48 : vector<2x2x8x128xf32>
    %cst_19 = arith.constant dense<0xFF800000> : vector<2x2x8xf32>
    %50 = vector.multi_reduction <maximumf>, %49, %cst_19 [3] : vector<2x2x8x128xf32> to vector<2x2x8xf32>
    %51 = vector.shape_cast %50 : vector<2x2x8xf32> to vector<2x2x8x1xf32>
    %52 = vector.broadcast %51 : vector<2x2x8x1xf32> to vector<2x2x8x128xf32>
    %53 = arith.subf %49, %52 : vector<2x2x8x128xf32>
    %54 = math.exp %53 : vector<2x2x8x128xf32>
    %cst_20 = arith.constant dense<0.000000e+00> : vector<2x2x8xf32>
    %55 = vector.multi_reduction <add>, %54, %cst_20 [3] : vector<2x2x8x128xf32> to vector<2x2x8xf32>
    %56 = vector.shape_cast %55 : vector<2x2x8xf32> to vector<2x2x8x1xf32>
    %57 = tpu.reciprocal %56 {approx = true} : vector<2x2x8x1xf32> -> vector<2x2x8x1xf32>
    %58 = arith.mulf %56, %57 : vector<2x2x8x1xf32>
    %cst_21 = arith.constant 2.000000e+00 : f32
    %59 = vector.broadcast %cst_21 : f32 to vector<2x2x8x1xf32>
    %60 = arith.subf %59, %58 : vector<2x2x8x1xf32>
    %61 = arith.mulf %57, %60 : vector<2x2x8x1xf32>
    %62 = vector.broadcast %61 : vector<2x2x8x1xf32> to vector<2x2x8x128xf32>
    %63 = arith.mulf %54, %62 : vector<2x2x8x128xf32>
    %cst_22 = arith.constant dense<0.000000e+00> : vector<2x8x128xf32>
    %64 = vector.multi_reduction <add>, %63, %cst_22 [0] : vector<2x2x8x128xf32> to vector<2x8x128xf32>
    %cst_23 = arith.constant 5.000000e-01 : f32
    %65 = vector.broadcast %cst_23 : f32 to vector<2x8x128xf32>
    %66 = arith.mulf %64, %65 : vector<2x8x128xf32>
    %c0_24 = arith.constant 0 : index
    %c0_25 = arith.constant 0 : index
    %c0_26 = arith.constant 0 : index
    %67 = vector.load %arg19[%c0_24, %c0_25, %c0_26] : memref<2x8x128xf32, #tpu.memory_space<vmem>>, vector<2x8x128xf32>
    tpu.vector_store %arg19[%c0_24, %c0_25, %c0_26], %66 {strides = array<i32>} : memref<2x8x128xf32, #tpu.memory_space<vmem>>, vector<2x8x128xf32>,
    %68 = vector.shape_cast %63 : vector<2x2x8x128xf32> to vector<4x8x128xf32>
    %69 = arith.truncf %68 : vector<4x8x128xf32> to vector<4x8x128xbf16>
    "tpu.trace_start"() <{level = 10 : i32, message = "bqk,bke->bqe"}> : () -> ()
    %cst_27 = arith.constant dense<0.000000e+00> : vector<4x8x16xf32>
    %70 = tpu.matmul %69, %43, %cst_27 {dimension_numbers = #tpu.dot_dimension_numbers<[2], [1], [1], [2], [0, 0, 0, 1, 1, 2], [0], [0]>} : vector<4x8x128xbf16>, vector<4x128x16xbf16>, vector<4x8x16xf32> -> vector<4x8x16xf32>
    "tpu.trace_stop"() : () -> ()
    %71 = arith.truncf %70 : vector<4x8x16xf32> to vector<4x8x16xbf16>
    %72 = vector.shape_cast %71 : vector<4x8x16xbf16> to vector<2x2x8x16xbf16>
    %73 = vector.extract_strided_slice %72 {offsets = [0, 0, 0, 0], sizes = [1, 2, 8, 16], strides = [1, 1, 1, 1]} : vector<2x2x8x16xbf16> to vector<1x2x8x16xbf16>
    %74 = vector.shape_cast %73 : vector<1x2x8x16xbf16> to vector<2x8x16xbf16>
    %75 = vector.extract_strided_slice %72 {offsets = [1, 0, 0, 0], sizes = [1, 2, 8, 16], strides = [1, 1, 1, 1]} : vector<2x2x8x16xbf16> to vector<1x2x8x16xbf16>
    %76 = vector.shape_cast %75 : vector<1x2x8x16xbf16> to vector<2x8x16xbf16>
    %77 = tpu.concatenate %74, %76 in 2 : vector<2x8x16xbf16>, vector<2x8x16xbf16> -> vector<2x8x32xbf16>
    %78 = vector.shape_cast %77 : vector<2x8x32xbf16> to vector<16x32xbf16>
    %c0_28 = arith.constant 0 : index
    %c0_29 = arith.constant 0 : index
    %79 = vector.load %arg8[%c0_28, %c0_29] : memref<32x32xbf16, #tpu.memory_space<vmem>>, vector<32x32xbf16>
    %cst_30 = arith.constant dense<0.000000e+00> : vector<16x32xf32>
    %80 = tpu.matmul %78, %79, %cst_30 {dimension_numbers = #tpu.dot_dimension_numbers<[1], [0], [0], [1], [0, 0, 1, 1], [], []>} : vector<16x32xbf16>, vector<32x32xbf16>, vector<16x32xf32> -> vector<16x32xf32>
    %c0_31 = arith.constant 0 : index
    %c0_32 = arith.constant 0 : index
    %81 = vector.load %arg9[%c0_31, %c0_32] : memref<1x32xf32, #tpu.memory_space<vmem>>, vector<1x32xf32>
    %82 = vector.broadcast %81 : vector<1x32xf32> to vector<16x32xf32>
    %83 = arith.addf %80, %82 : vector<16x32xf32>
    %84 = arith.addf %83, %1 : vector<16x32xf32>
    %c0_33 = arith.constant 0 : index
    %c0_34 = arith.constant 0 : index
    %85 = vector.load %arg14[%c0_33, %c0_34] : memref<1x32xf32, #tpu.memory_space<vmem>>, vector<1x32xf32>
    %c0_35 = arith.constant 0 : index
    %c0_36 = arith.constant 0 : index
    %86 = vector.load %arg15[%c0_35, %c0_36] : memref<1x32xf32, #tpu.memory_space<vmem>>, vector<1x32xf32>
    %cst_37 = arith.constant dense<0.000000e+00> : vector<16xf32>
    %87 = vector.multi_reduction <add>, %84, %cst_37 [1] : vector<16x32xf32> to vector<16xf32>
    %88 = vector.shape_cast %87 : vector<16xf32> to vector<16x1xf32>
    %cst_38 = arith.constant 3.200000e+01 : f32
    %89 = vector.broadcast %cst_38 : f32 to vector<16x1xf32>
    %90 = arith.divf %88, %89 : vector<16x1xf32>
    %91 = vector.broadcast %90 : vector<16x1xf32> to vector<16x32xf32>
    %92 = arith.subf %84, %91 : vector<16x32xf32>
    %93 = arith.mulf %92, %92 : vector<16x32xf32>
    %cst_39 = arith.constant dense<0.000000e+00> : vector<16xf32>
    %94 = vector.multi_reduction <add>, %93, %cst_39 [1] : vector<16x32xf32> to vector<16xf32>
    %95 = vector.shape_cast %94 : vector<16xf32> to vector<16x1xf32>
    %cst_40 = arith.constant 3.200000e+01 : f32
    %96 = vector.broadcast %cst_40 : f32 to vector<16x1xf32>
    %97 = arith.divf %95, %96 : vector<16x1xf32>
    %98 = vector.broadcast %90 : vector<16x1xf32> to vector<16x32xf32>
    %99 = arith.subf %84, %98 : vector<16x32xf32>
    %cst_41 = arith.constant 9.99999974E-6 : f32
    %100 = vector.broadcast %cst_41 : f32 to vector<16x1xf32>
    %101 = arith.addf %97, %100 : vector<16x1xf32>
    %102 = math.rsqrt %101 : vector<16x1xf32>
    %103 = vector.broadcast %102 : vector<16x1xf32> to vector<16x32xf32>
    %104 = arith.mulf %99, %103 : vector<16x32xf32>
    %105 = vector.broadcast %85 : vector<1x32xf32> to vector<16x32xf32>
    %106 = arith.mulf %104, %105 : vector<16x32xf32>
    %107 = vector.broadcast %86 : vector<1x32xf32> to vector<16x32xf32>
    %108 = arith.addf %106, %107 : vector<16x32xf32>
    %109 = arith.truncf %108 : vector<16x32xf32> to vector<16x32xbf16>
    %c0_42 = arith.constant 0 : index
    %c0_43 = arith.constant 0 : index
    %110 = vector.load %arg10[%c0_42, %c0_43] : memref<32x64xbf16, #tpu.memory_space<vmem>>, vector<32x64xbf16>
    %cst_44 = arith.constant dense<0.000000e+00> : vector<16x64xf32>
    %111 = tpu.matmul %109, %110, %cst_44 {dimension_numbers = #tpu.dot_dimension_numbers<[1], [0], [0], [1], [0, 0, 1, 1], [], []>} : vector<16x32xbf16>, vector<32x64xbf16>, vector<16x64xf32> -> vector<16x64xf32>
    %c0_45 = arith.constant 0 : index
    %c0_46 = arith.constant 0 : index
    %112 = vector.load %arg11[%c0_45, %c0_46] : memref<1x64xf32, #tpu.memory_space<vmem>>, vector<1x64xf32>
    %113 = vector.broadcast %112 : vector<1x64xf32> to vector<16x64xf32>
    %114 = arith.addf %111, %113 : vector<16x64xf32>
    %cst_47 = arith.constant 0.000000e+00 : f32
    %115 = vector.broadcast %cst_47 : f32 to vector<16x64xf32>
    %116 = arith.maximumf %114, %115 : vector<16x64xf32>
    %117 = arith.truncf %116 : vector<16x64xf32> to vector<16x64xbf16>
    %c0_48 = arith.constant 0 : index
    %c0_49 = arith.constant 0 : index
    %118 = vector.load %arg12[%c0_48, %c0_49] : memref<64x32xbf16, #tpu.memory_space<vmem>>, vector<64x32xbf16>
    %cst_50 = arith.constant dense<0.000000e+00> : vector<16x32xf32>
    %119 = tpu.matmul %117, %118, %cst_50 {dimension_numbers = #tpu.dot_dimension_numbers<[1], [0], [0], [1], [0, 0, 1, 1], [], []>} : vector<16x64xbf16>, vector<64x32xbf16>, vector<16x32xf32> -> vector<16x32xf32>
    %c0_51 = arith.constant 0 : index
    %c0_52 = arith.constant 0 : index
    %120 = vector.load %arg13[%c0_51, %c0_52] : memref<1x32xf32, #tpu.memory_space<vmem>>, vector<1x32xf32>
    %121 = vector.broadcast %120 : vector<1x32xf32> to vector<16x32xf32>
    %122 = arith.addf %119, %121 : vector<16x32xf32>
    %123 = arith.addf %108, %122 : vector<16x32xf32>
    %c0_53 = arith.constant 0 : index
    %c0_54 = arith.constant 0 : index
    %124 = vector.load %arg16[%c0_53, %c0_54] : memref<1x32xf32, #tpu.memory_space<vmem>>, vector<1x32xf32>
    %c0_55 = arith.constant 0 : index
    %c0_56 = arith.constant 0 : index
    %125 = vector.load %arg17[%c0_55, %c0_56] : memref<1x32xf32, #tpu.memory_space<vmem>>, vector<1x32xf32>
    %cst_57 = arith.constant dense<0.000000e+00> : vector<16xf32>
    %126 = vector.multi_reduction <add>, %123, %cst_57 [1] : vector<16x32xf32> to vector<16xf32>
    %127 = vector.shape_cast %126 : vector<16xf32> to vector<16x1xf32>
    %cst_58 = arith.constant 3.200000e+01 : f32
    %128 = vector.broadcast %cst_58 : f32 to vector<16x1xf32>
    %129 = arith.divf %127, %128 : vector<16x1xf32>
    %130 = vector.broadcast %129 : vector<16x1xf32> to vector<16x32xf32>
    %131 = arith.subf %123, %130 : vector<16x32xf32>
    %132 = arith.mulf %131, %131 : vector<16x32xf32>
    %cst_59 = arith.constant dense<0.000000e+00> : vector<16xf32>
    %133 = vector.multi_reduction <add>, %132, %cst_59 [1] : vector<16x32xf32> to vector<16xf32>
    %134 = vector.shape_cast %133 : vector<16xf32> to vector<16x1xf32>
    %cst_60 = arith.constant 3.200000e+01 : f32
    %135 = vector.broadcast %cst_60 : f32 to vector<16x1xf32>
    %136 = arith.divf %134, %135 : vector<16x1xf32>
    %137 = vector.broadcast %129 : vector<16x1xf32> to vector<16x32xf32>
    %138 = arith.subf %123, %137 : vector<16x32xf32>
    %cst_61 = arith.constant 9.99999974E-6 : f32
    %139 = vector.broadcast %cst_61 : f32 to vector<16x1xf32>
    %140 = arith.addf %136, %139 : vector<16x1xf32>
    %141 = math.rsqrt %140 : vector<16x1xf32>
    %142 = vector.broadcast %141 : vector<16x1xf32> to vector<16x32xf32>
    %143 = arith.mulf %138, %142 : vector<16x32xf32>
    %144 = vector.broadcast %124 : vector<1x32xf32> to vector<16x32xf32>
    %145 = arith.mulf %143, %144 : vector<16x32xf32>
    %146 = vector.broadcast %125 : vector<1x32xf32> to vector<16x32xf32>
    %147 = arith.addf %145, %146 : vector<16x32xf32>
    %148 = vector.shape_cast %147 : vector<16x32xf32> to vector<2x8x32xf32>
    %c0_62 = arith.constant 0 : index
    %c0_63 = arith.constant 0 : index
    %c0_64 = arith.constant 0 : index
    %149 = vector.load %arg18[%c0_62, %c0_63, %c0_64] : memref<2x8x32xf32, #tpu.memory_space<vmem>>, vector<2x8x32xf32>
    tpu.vector_store %arg18[%c0_62, %c0_63, %c0_64], %148 {strides = array<i32>} : memref<2x8x32xf32, #tpu.memory_space<vmem>>, vector<2x8x32xf32>,
    return
  }
  func.func @transform_0(%arg0: i32) -> (i32, i32, i32) {
    %c0_i32 = arith.constant 0 : i32
    %c0_i32_0 = arith.constant 0 : i32
    %c0_i32_1 = arith.constant 0 : i32
    return %arg0, %c0_i32, %c0_i32_0 : i32, i32, i32
  }
  func.func @transform_1(%arg0: i32) -> (i32, i32, i32) {
    %c0_i32 = arith.constant 0 : i32
    %c0_i32_0 = arith.constant 0 : i32
    %c0_i32_1 = arith.constant 0 : i32
    return %arg0, %c0_i32, %c0_i32_0 : i32, i32, i32
  }
  func.func @transform_2(%arg0: i32) -> (i32, i32, i32) {
    %c0_i32 = arith.constant 0 : i32
    %c0_i32_0 = arith.constant 0 : i32
    %c0_i32_1 = arith.constant 0 : i32
    return %arg0, %c0_i32, %c0_i32_0 : i32, i32, i32
  }
  func.func @transform_3(%arg0: i32) -> (i32, i32) {
    %c0_i32 = arith.constant 0 : i32
    %c0_i32_0 = arith.constant 0 : i32
    %c0_i32_1 = arith.constant 0 : i32
    return %c0_i32, %c0_i32_0 : i32, i32
  }
  func.func @transform_4(%arg0: i32) -> (i32, i32) {
    %c0_i32 = arith.constant 0 : i32
    %c0_i32_0 = arith.constant 0 : i32
    %c0_i32_1 = arith.constant 0 : i32
    return %c0_i32, %c0_i32_0 : i32, i32
  }
  func.func @transform_5(%arg0: i32) -> (i32, i32) {
    %c0_i32 = arith.constant 0 : i32
    %c0_i32_0 = arith.constant 0 : i32
    %c0_i32_1 = arith.constant 0 : i32
    return %c0_i32, %c0_i32_0 : i32, i32
  }
  func.func @transform_6(%arg0: i32) -> (i32, i32) {
    %c0_i32 = arith.constant 0 : i32
    %c0_i32_0 = arith.constant 0 : i32
    %c0_i32_1 = arith.constant 0 : i32
    return %c0_i32, %c0_i32_0 : i32, i32
  }
  func.func @transform_7(%arg0: i32) -> (i32, i32) {
    %c0_i32 = arith.constant 0 : i32
    %c0_i32_0 = arith.constant 0 : i32
    %c0_i32_1 = arith.constant 0 : i32
    return %c0_i32, %c0_i32_0 : i32, i32
  }
  func.func @transform_8(%arg0: i32) -> (i32, i32) {
    %c0_i32 = arith.constant 0 : i32
    %c0_i32_0 = arith.constant 0 : i32
    %c0_i32_1 = arith.constant 0 : i32
    return %c0_i32, %c0_i32_0 : i32, i32
  }
  func.func @transform_9(%arg0: i32) -> (i32, i32) {
    %c0_i32 = arith.constant 0 : i32
    %c0_i32_0 = arith.constant 0 : i32
    %c0_i32_1 = arith.constant 0 : i32
    return %c0_i32, %c0_i32_0 : i32, i32
  }
  func.func @transform_10(%arg0: i32) -> (i32, i32) {
    %c0_i32 = arith.constant 0 : i32
    %c0_i32_0 = arith.constant 0 : i32
    %c0_i32_1 = arith.constant 0 : i32
    return %c0_i32, %c0_i32_0 : i32, i32
  }
  func.func @transform_11(%arg0: i32) -> (i32, i32) {
    %c0_i32 = arith.constant 0 : i32
    %c0_i32_0 = arith.constant 0 : i32
    %c0_i32_1 = arith.constant 0 : i32
    return %c0_i32, %c0_i32_0 : i32, i32
  }
  func.func @transform_12(%arg0: i32) -> (i32, i32) {
    %c0_i32 = arith.constant 0 : i32
    %c0_i32_0 = arith.constant 0 : i32
    %c0_i32_1 = arith.constant 0 : i32
    return %c0_i32, %c0_i32_0 : i32, i32
  }
  func.func @transform_13(%arg0: i32) -> (i32, i32) {
    %c0_i32 = arith.constant 0 : i32
    %c0_i32_0 = arith.constant 0 : i32
    %c0_i32_1 = arith.constant 0 : i32
    return %c0_i32, %c0_i32_0 : i32, i32
  }
  func.func @transform_14(%arg0: i32) -> (i32, i32) {
    %c0_i32 = arith.constant 0 : i32
    %c0_i32_0 = arith.constant 0 : i32
    %c0_i32_1 = arith.constant 0 : i32
    return %c0_i32, %c0_i32_0 : i32, i32
  }
  func.func @transform_15(%arg0: i32) -> (i32, i32) {
    %c0_i32 = arith.constant 0 : i32
    %c0_i32_0 = arith.constant 0 : i32
    %c0_i32_1 = arith.constant 0 : i32
    return %c0_i32, %c0_i32_0 : i32, i32
  }
  func.func @transform_16(%arg0: i32) -> (i32, i32) {
    %c0_i32 = arith.constant 0 : i32
    %c0_i32_0 = arith.constant 0 : i32
    %c0_i32_1 = arith.constant 0 : i32
    return %c0_i32, %c0_i32_0 : i32, i32
  }
  func.func @transform_17(%arg0: i32) -> (i32, i32, i32) {
    %c0_i32 = arith.constant 0 : i32
    %c0_i32_0 = arith.constant 0 : i32
    %c0_i32_1 = arith.constant 0 : i32
    return %arg0, %c0_i32, %c0_i32_0 : i32, i32, i32
  }
  func.func @transform_18(%arg0: i32) -> (i32, i32, i32) {
    %c0_i32 = arith.constant 0 : i32
    %c0_i32_0 = arith.constant 0 : i32
    %c0_i32_1 = arith.constant 0 : i32
    return %arg0, %c0_i32, %c0_i32_0 : i32, i32, i32
  }
}

</mosaic_0001>

<bundles_post_ra>
// kernel: tpu_custom_call.1
= control target key start
LH: loop header
LB: loop body
LE: loop exit
PB: predicated region body
PF: predicated region fallthrough
CT: control target
= control target key end

     0   :  { %s2070_s0 = inlined_call_operand.vmem [shape: f32[2,8,32], index: 0, kind: input, shape index: {}]   ;;  %s2071_s1 = inlined_call_operand.vmem [shape: f32[2,128,32], index: 1, kind: input, shape index: {}]   ;;  %s2072_s2 = inlined_call_operand.vmem [shape: f32[2,1,128], index: 2, kind: input, shape index: {}]   ;;  %s2073_s3 = inlined_call_operand.vmem [shape: bf16[32,32], index: 3, kind: input, shape index: {}]   ;;  %s2074_s4 = inlined_call_operand.vmem [shape: f32[1,32], index: 4, kind: input, shape index: {}]   ;;  %s2075_s5 = inlined_call_operand.vmem [shape: bf16[32,64], index: 5, kind: input, shape index: {}]   ;;  %s2076_s6 = inlined_call_operand.vmem [shape: f32[1,64], index: 6, kind: input, shape index: {}]   ;;  %s2077_s7 = inlined_call_operand.vmem [shape: bf16[32,32], index: 7, kind: input, shape index: {}]   ;;  %s2078_s8 = inlined_call_operand.vmem [shape: f32[1,32], index: 8, kind: input, shape index: {}]   ;;  %s2079_s9 = inlined_call_operand.vmem [shape: bf16[32,64], index: 9, kind: input, shape index: {}]   ;;  %s2080_s10 = inlined_call_operand.vmem [shape: f32[1,64], index: 10, kind: input, shape index: {}]   ;;  %s2081_s11 = inlined_call_operand.vmem [shape: bf16[64,32], index: 11, kind: input, shape index: {}]   ;;  %s2082_s12 = inlined_call_operand.vmem [shape: f32[1,32], index: 12, kind: input, shape index: {}]   ;;  %s2083_s13 = inlined_call_operand.vmem [shape: f32[1,32], index: 13, kind: input, shape index: {}]   ;;  %s2084_s14 = inlined_call_operand.vmem [shape: f32[1,32], index: 14, kind: input, shape index: {}]   ;;  %s2085_s15 = inlined_call_operand.vmem [shape: f32[1,32], index: 15, kind: input, shape index: {}]   ;;  %s2086_s16 = inlined_call_operand.vmem [shape: f32[1,32], index: 16, kind: input, shape index: {}]   ;;  %s2087_s17 = inlined_call_operand.hbm [shape: f32[2,8,32], index: 17, kind: output, shape index: {0}]   ;;  %s2088_s18 = inlined_call_operand.hbm [shape: f32[2,8,128], index: 18, kind: output, shape index: {1}]  }
   0x1   :  { %2092 = sst [smem:[#allocation8_spill]] %s2070_s0 }
   0x2   :  { %2093 = sst [smem:[#allocation9_spill]] %s2071_s1 }
   0x3   :  { %2094 = sst [smem:[#allocation10_spill]] %s2072_s2 }
   0x4   :  { %24 = vsyncpa [#allocation3], 0  ;;  %v1313_v0 = vld [vmem:[%s2075_s5 + $0x8] sm:$0xff]  ;;  %v1312_v1 = vld [vmem:[%s2075_s5] sm:$0xff]  ;;  %s2095_s1 = sld [smem:[#allocation9_spill]]  ;;  %vm116_vm0 = vcmask 261120  }
   0x5   :  { %224 = vmatpush.bf16.msra.mxu1 %v1313_v0  ;;  %1322 = vmatpush.bf16.msra.mxu2 %v1313_v0 }
   0x9   :  { %225 = vmatpush.bf16.msra.mxu1 %v1312_v1  ;;  %1323 = vmatpush.bf16.msra.mxu2 %v1312_v1 }
   0xa   :  { %v63_v2 = vld [vmem:[%s2095_s1] sm:$0xff]  ;;  %v64_v3 = vld [vmem:[%s2095_s1 + $0x8] sm:$0xff]  ;;  %v85_v4 = vld [vmem:[%s2095_s1 + $0xb0] sm:$0xff] }
   0xb   :  { %v86_v5 = vld [vmem:[%s2095_s1 + $0xb8] sm:$0xff]  ;;  %v134_v6 = vpack.c.bf16 %v64_v3, %v63_v2 }
   0xc   :  { %v145_v7 = vpack.c.bf16 %v86_v5, %v85_v4 }
   0xd   :  { %25 = vsyncpa [#allocation5], 0  ;;  %1255 = vmatmul.msk.bf16.vlgmr.msra.gmra.mxu1 %vm116_vm0, %v134_v6  ;;  %v65_v8 = vld [vmem:[%s2095_s1 + $0x10] sm:$0xff]  ;;  %v66_v9 = vld [vmem:[%s2095_s1 + $0x18] sm:$0xff]  ;;  %s2096_s20 = sld [smem:[#allocation8_spill]]  ;;  %vm469_vm1 = vcmask 130048  }
   0xe   :  { %1266 = vmatmul.msk.bf16.vlgmr.msra.gmra.mxu2 %vm116_vm0, %v145_v7  ;;  %v87_v10 = vld [vmem:[%s2095_s1 + $0xc0] sm:$0xff]  ;;  %v88_v11 = vld [vmem:[%s2095_s1 + $0xc8] sm:$0xff]  ;;  %v135_v12 = vpack.c.bf16 %v66_v9, %v65_v8  ;;  %v89_v16 = vld [vmem:[%s2095_s1 + $0xd0] sm:$0xff]  ;;  %s2097_s21 = sld [smem:[#allocation10_spill]]  ;;  %s1425_s23 = smov 16   ;;  %vm1124_vm9 = vcmask 523264  }
   0xf   :  { %v146_v13 = vpack.c.bf16 %v88_v11, %v87_v10  ;;  %v67_v14 = vld [vmem:[%s2095_s1 + $0x20] sm:$0xff]  ;;  %v68_v15 = vld [vmem:[%s2095_s1 + $0x28] sm:$0xff]  ;;  %v90_v17 = vld [vmem:[%s2095_s1 + $0xd8] sm:$0xff]  ;;  %s1221_s27 = sshll.u32 %s2088_s18, 4  ;;  %s1428_s28 = smov 128   ;;  %s1222_s27 = int_to_ptr.hbm [resolvable:$true] %s1221_s27 }
  0x10   :  { %v136_v18 = vpack.c.bf16 %v68_v15, %v67_v14  ;;  %v147_v19 = vpack.c.bf16 %v90_v17, %v89_v16  ;;  %v69_v20 = vld [vmem:[%s2095_s1 + $0x30] sm:$0xff]  ;;  %v70_v21 = vld [vmem:[%s2095_s1 + $0x38] sm:$0xff]  ;;  %v91_v22 = vld [vmem:[%s2095_s1 + $0xe0] sm:$0xff] }
  0x11   :  { %v92_v23 = vld [vmem:[%s2095_s1 + $0xe8] sm:$0xff]  ;;  %v137_v24 = vpack.c.bf16 %v70_v21, %v69_v20  ;;  %v71_v26 = vld [vmem:[%s2095_s1 + $0x40] sm:$0xff]  ;;  %v93_v28 = vld [vmem:[%s2095_s1 + $0xf0] sm:$0xff] }
  0x12   :  { %v148_v25 = vpack.c.bf16 %v92_v23, %v91_v22  ;;  %v72_v27 = vld [vmem:[%s2095_s1 + $0x48] sm:$0xff]  ;;  %v94_v29 = vld [vmem:[%s2095_s1 + $0xf8] sm:$0xff]  ;;  %v73_v32 = vld [vmem:[%s2095_s1 + $0x50] sm:$0xff] }
  0x13   :  { %v138_v30 = vpack.c.bf16 %v72_v27, %v71_v26  ;;  %v149_v31 = vpack.c.bf16 %v94_v29, %v93_v28  ;;  %v74_v33 = vld [vmem:[%s2095_s1 + $0x58] sm:$0xff]  ;;  %v75_v35 = vld [vmem:[%s2095_s1 + $0x60] sm:$0xff]  ;;  %v76_v36 = vld [vmem:[%s2095_s1 + $0x68] sm:$0xff] }
  0x14   :  { %v139_v34 = vpack.c.bf16 %v74_v33, %v73_v32  ;;  %v140_v37 = vpack.c.bf16 %v76_v36, %v75_v35  ;;  %v77_v38 = vld [vmem:[%s2095_s1 + $0x70] sm:$0xff]  ;;  %v78_v39 = vld [vmem:[%s2095_s1 + $0x78] sm:$0xff]  ;;  %v1311_v41 = vld [vmem:[%s2073_s3 + $0x8] sm:$0xff] }
  0x15   :  { %v141_v40 = vpack.c.bf16 %v78_v39, %v77_v38  ;;  %126 = vmatpush.bf16.msra.mxu0 %v1311_v41  ;;  %v79_v42 = vld [vmem:[%s2095_s1 + $0x80] sm:$0xff]  ;;  %v80_v43 = vld [vmem:[%s2095_s1 + $0x88] sm:$0xff]  ;;  %v81_v58 = vld [vmem:[%s2095_s1 + $0x90] sm:$0xff] }
  0x16   :  { %v1310_v44 = vld [vmem:[%s2073_s3] sm:$0xff]  ;;  %v62_v46 = vld [vmem:[%s2096_s20 + $0x8] sm:$0xff]  ;;  %v142_v47 = vpack.c.bf16 %v80_v43, %v79_v42  ;;  %v82_v59 = vld [vmem:[%s2095_s1 + $0x98] sm:$0xff] }
  0x17   :  { %v61_v45 = vld [vmem:[%s2096_s20] sm:$0xff]  ;;  %v143_v1 = vpack.c.bf16 %v82_v59, %v81_v58  ;;  %v84_v16 = vld [vmem:[%s2095_s1 + $0xa8] sm:$0xff] }
  0x18   :  { %v95_v48 = vpack.c.bf16 %v62_v46, %v61_v45  ;;  %v1644_v50 = vld [vmem:[%s2076_s6] ss:$0 sm:$0xff] }
  0x19   :  { %127 = vmatpush.bf16.msra.mxu0 %v1310_v44  ;;  %v83_v15 = vld [vmem:[%s2095_s1 + $0xa0] sm:$0xff]  ;;  %s1423_s1 = smov 112  }
  0x1a   :  { %v144_v22 = vpack.c.bf16 %v84_v16, %v83_v15 }
  0x1c   :  { %1246 = vmatmul.msk.bf16.vlgmr.msra.gmra.mxu0 %vm116_vm0, %v95_v48 }
  0x1d   :  { %1256 = vmatmul.msk.bf16.gmra.mxu1 %vm116_vm0, %v135_v12 }
  0x1e   :  { %1267 = vmatmul.msk.bf16.gmra.mxu2 %vm116_vm0, %v146_v13 }
  0x2d   :  { %1257 = vmatmul.msk.bf16.gmra.mxu1 %vm116_vm0, %v136_v18 }
  0x2e   :  { %1268 = vmatmul.msk.bf16.gmra.mxu2 %vm116_vm0, %v147_v19 }
  0x3d   :  { %1258 = vmatmul.msk.bf16.gmra.mxu1 %vm116_vm0, %v137_v24 }
  0x3e   :  { %1269 = vmatmul.msk.bf16.gmra.mxu2 %vm116_vm0, %v148_v25 }
  0x4d   :  { %1259 = vmatmul.msk.bf16.gmra.mxu1 %vm116_vm0, %v138_v30 }
  0x4e   :  { %1270 = vmatmul.msk.bf16.gmra.mxu2 %vm116_vm0, %v149_v31 }
  0x5d   :  { %1260 = vmatmul.msk.bf16.gmra.mxu1 %vm116_vm0, %v139_v34 }
  0x6d   :  { %1261 = vmatmul.msk.bf16.gmra.mxu1 %vm116_vm0, %v140_v37 }
  0x7d   :  { %1262 = vmatmul.msk.bf16.gmra.mxu1 %vm116_vm0, %v141_v40 }
  0x8a   :  { %v227_v49 = vpop.f32.mrf.mxu1 }
  0x8b   :  { %v228_v51 = vadd.f32 %v1644_v50, %v227_v49 }
  0x8d   :  { %1263 = vmatmul.msk.bf16.gmra.mxu1 %vm116_vm0, %v142_v47  ;;  %v1649_v54 = vpack.c.bf16 %v228_v51, %v228_v51 }
  0x8f   :  { %v445_v60 = vunpack.c.l.b16 %v1649_v54 }
  0x91   :  { %v282_v52 = vpop.f32.mrf.mxu2 }
  0x92   :  { %v229_v53 = vpop.f32.mrf.mxu1  ;;  %v283_v56 = vadd.f32 %v1644_v50, %v282_v52 }
  0x93   :  { %v230_v55 = vadd.f32 %v1644_v50, %v229_v53 }
  0x94   :  { %v1663_v63 = vpack.c.bf16 %v283_v56, %v283_v56 }
  0x95   :  { %v1653_v57 = vpack.c.bf16 %v230_v55, %v230_v55 }
  0x96   :  { %v516_v5 = vunpack.c.l.b16 %v1663_v63 }
  0x97   :  { %v446_v61 = vunpack.c.l.b16 %v1653_v57 }
  0x99   :  { %v284_v62 = vpop.f32.mrf.mxu2  ;;  %v1666_v2 = vpack.c.b16 %v446_v61, %v445_v60 }
  0x9a   :  { %v285_v0 = vadd.f32 %v1644_v50, %v284_v62  ;;  %v232_v3 = vpop.f32.mrf.mxu1 }
  0x9b   :  { %v233_v7 = vadd.f32 %v1644_v50, %v232_v3 }
  0x9c   :  { %v1668_v4 = vpack.c.bf16 %v285_v0, %v285_v0 }
  0x9d   :  { %1264 = vmatmul.msk.bf16.gmra.mxu1 %vm116_vm0, %v143_v1  ;;  %v1676_v11 = vpack.c.bf16 %v233_v7, %v233_v7 }
  0x9e   :  { %v517_v6 = vunpack.c.l.b16 %v1668_v4 }
  0x9f   :  { %v447_v17 = vunpack.c.l.b16 %v1676_v11 }
  0xa0   :  { %v1674_v9 = vpack.c.b16 %v517_v6, %v516_v5 }
  0xa1   :  { %v287_v8 = vpop.f32.mrf.mxu2 }
  0xa2   :  { %v234_v10 = vpop.f32.mrf.mxu1  ;;  %v288_v13 = vadd.f32 %v1644_v50, %v287_v8 }
  0xa3   :  { %v235_v12 = vadd.f32 %v1644_v50, %v234_v10 }
  0xa4   :  { %v1690_v20 = vpack.c.bf16 %v288_v13, %v288_v13 }
  0xa5   :  { %v1680_v14 = vpack.c.bf16 %v235_v12, %v235_v12 }
  0xa6   :  { %v518_v26 = vunpack.c.l.b16 %v1690_v20 }
  0xa7   :  { %v448_v18 = vunpack.c.l.b16 %v1680_v14 }
  0xa9   :  { %v289_v19 = vpop.f32.mrf.mxu2  ;;  %v1693_v23 = vpack.c.b16 %v448_v18, %v447_v17 }
  0xaa   :  { %v290_v21 = vadd.f32 %v1644_v50, %v289_v19  ;;  %v237_v24 = vpop.f32.mrf.mxu1 }
  0xab   :  { %v238_v28 = vadd.f32 %v1644_v50, %v237_v24 }
  0xac   :  { %v1695_v25 = vpack.c.bf16 %v290_v21, %v290_v21 }
  0xad   :  { %1265 = vmatmul.msk.bf16.gmra.mxu1 %vm116_vm0, %v144_v22  ;;  %v1704_v33 = vpack.c.bf16 %v238_v28, %v238_v28 }
  0xae   :  { %v519_v27 = vunpack.c.l.b16 %v1695_v25 }
  0xaf   :  { %v449_v37 = vunpack.c.l.b16 %v1704_v33 }
  0xb0   :  { %v1702_v31 = vpack.c.b16 %v519_v27, %v518_v26 }
  0xb1   :  { %v292_v29 = vpop.f32.mrf.mxu2 }
  0xb2   :  { %v293_v30 = vadd.f32 %v1644_v50, %v292_v29  ;;  %v239_v32 = vpop.f32.mrf.mxu1 }
  0xb3   :  { %v240_v35 = vadd.f32 %v1644_v50, %v239_v32 }
  0xb4   :  { %v1706_v34 = vpack.c.bf16 %v293_v30, %v293_v30 }
  0xb5   :  { %v1709_v36 = vpack.c.bf16 %v240_v35, %v240_v35 }
  0xb6   :  { %433 = vrot.lane.b32.xlu1 %v1706_v34, %s1423_s1  ;;  %v520_v22 = vunpack.c.l.b16 %v1706_v34 }
  0xb7   :  { %v450_v38 = vunpack.c.l.b16 %v1709_v36 }
  0xb9   :  { %v294_v39 = vpop.f32.mrf.mxu2  ;;  %v1716_v41 = vpack.c.b16 %v450_v38, %v449_v37  ;;  %v550_v38 = vsel %vm469_vm1, %v1702_v31, 0 }
  0xba   :  { %v295_v40 = vadd.f32 %v1644_v50, %v294_v39  ;;  %v242_v42 = vpop.f32.mrf.mxu1 }
  0xbb   :  { %v243_v19 = vadd.f32 %v1644_v50, %v242_v42 }
  0xbc   :  { %v338_v43 = vpack.c.bf16 %v295_v40, %v295_v40 }
  0xbd   :  { %v1753_v27 = vpack.c.bf16 %v243_v19, %v243_v19 }
  0xbe   :  { %435 = vrot.lane.b32.xlu2 %v338_v43, %s1423_s1  ;;  %v521_v24 = vunpack.c.l.b16 %v338_v43  ;;  %v547_v43 = vsel %vm469_vm1, %v1674_v9, 0 }
  0xbf   :  { %v451_v19 = vunpack.c.l.b16 %v1753_v27 }
  0xc0   :  { %v1758_v30 = vpack.c.b16 %v521_v24, %v520_v22 }
  0xc1   :  { %v297_v44 = vpop.f32.mrf.mxu2 }
  0xc2   :  { %v298_v45 = vadd.f32 %v1644_v50, %v297_v44  ;;  %v1720_v46 = vpop.f32.mrf.mxu1  ;;  %v553_v32 = vsel %vm469_vm1, %v1758_v30, 0 }
  0xc4   :  { %v339_v47 = vpack.c.bf16 %v298_v45, %v298_v45 }
  0xc6   :  { %437 = vrot.lane.b32.xlu0 %v339_v47, %s1423_s1  ;;  %v522_v6 = vunpack.c.l.b16 %v339_v47 }
  0xc9   :  { %v299_v48 = vpop.f32.mrf.mxu2 }
  0xca   :  { %v300_v49 = vadd.f32 %v1644_v50, %v299_v48  ;;  %v1724_v51 = vpop.f32.mrf.mxu1 }
  0xcc   :  { %v340_v52 = vpack.c.bf16 %v300_v49, %v300_v49 }
  0xce   :  { %439 = vrot.lane.b32.xlu1 %v340_v52, %s1423_s1  ;;  %v523_v7 = vunpack.c.l.b16 %v340_v52 }
  0xd0   :  { %v1744_v17 = vpack.c.b16 %v523_v7, %v522_v6 }
  0xd1   :  { %v302_v53 = vpop.f32.mrf.mxu2 }
  0xd2   :  { %v303_v55 = vadd.f32 %v1644_v50, %v302_v53  ;;  %v249_v56 = vpop.f32.mrf.mxu1  ;;  %v556_v21 = vsel %vm469_vm1, %v1744_v17, 0 }
  0xd3   :  { %v250_v8 = vadd.f32 %v1644_v50, %v249_v56 }
  0xd4   :  { %v341_v58 = vpack.c.bf16 %v303_v55, %v303_v55 }
  0xd5   :  { %v1741_v15 = vpack.c.bf16 %v250_v8, %v250_v8 }
  0xd6   :  { %441 = vrot.lane.b32.xlu1 %v341_v58, %s1423_s1  ;;  %v524_v62 = vunpack.c.l.b16 %v341_v58 }
  0xd9   :  { %v304_v59 = vpop.f32.mrf.mxu2 }
  0xda   :  { %v305_v60 = vadd.f32 %v1644_v50, %v304_v59  ;;  %v252_v61 = vpop.f32.mrf.mxu1 }
  0xdb   :  { %v253_v1 = vadd.f32 %v1644_v50, %v252_v61 }
  0xdc   :  { %v342_v0 = vpack.c.bf16 %v305_v60, %v305_v60 }
  0xdd   :  { %v1731_v5 = vpack.c.bf16 %v253_v1, %v253_v1 }
  0xde   :  { %v525_v3 = vunpack.c.l.b16 %v342_v0  ;;  %443 = vrot.lane.b32.xlu1 %v342_v0, %s1423_s1 }
  0xdf   :  { %401 = vrot.lane.b32.xlu2 %v1731_v5, %s1423_s1 }
  0xe0   :  { %v1737_v10 = vpack.c.b16 %v525_v3, %v524_v62  ;;  %v455_v62 = vunpack.c.l.b16 %v1731_v5  ;;  %v454_v3 = vunpack.c.l.b16 %v1741_v15 }
  0xe2   :  { %v559_v12 = vsel %vm469_vm1, %v1737_v10, 0  ;;  %v254_v13 = vpop.f32.mrf.mxu1 }
  0xe3   :  { %561 = vmatpush.bf16.xpose.msra.mxu3 %v559_v12  ;;  %v255_v16 = vadd.f32 %v1644_v50, %v254_v13  ;;  %v129_v12 = vpop.f32.mrf.mxu0 }
  0xe5   :  { %v322_v18 = vpack.c.bf16 %v255_v16, %v255_v16 }
  0xe6   :  { %399 = vrot.lane.b32.xlu1 %v1741_v15, %s1423_s1 }
  0xe7   :  { %403 = vrot.lane.b32.xlu0 %v322_v18, %s1423_s1  ;;  %v456_v61 = vunpack.c.l.b16 %v322_v18 }
  0xe9   :  { %v1798_v0 = vpack.c.b16 %v456_v61, %v455_v62 }
  0xea   :  { %v257_v26 = vpop.f32.mrf.mxu1 }
  0xeb   :  { %562 = vmatpush.bf16.xpose.msra.mxu3 %v556_v21  ;;  %v258_v28 = vadd.f32 %v1644_v50, %v257_v26  ;;  %v489_v6 = vsel %vm469_vm1, %v1798_v0, 0 }
  0xed   :  { %v323_v29 = vpack.c.bf16 %v258_v28, %v258_v28 }
  0xee   :  { %393 = vrot.lane.b32.xlu1 %v1753_v27, %s1423_s1 }
  0xef   :  { %405 = vrot.lane.b32.xlu2 %v323_v29, %s1423_s1  ;;  %v457_v58 = vunpack.c.l.b16 %v323_v29 }
  0xf2   :  { %v259_v35 = vpop.f32.mrf.mxu1 }
  0xf3   :  { %563 = vmatpush.bf16.xpose.msra.mxu3 %v553_v32  ;;  %v260_v34 = vadd.f32 %v1644_v50, %v259_v35  ;;  %v480_v32 = vsel %vm469_vm1, %v1716_v41, 0 }
  0xf5   :  { %v324_v37 = vpack.c.bf16 %v260_v34, %v260_v34 }
  0xf6   :  { %427 = vrot.lane.b32.xlu1 %v1668_v4, %s1423_s1  ;;  %v245_v4 = vadd.f32 %v1644_v50, %v1720_v46 }
  0xf7   :  { %407 = vrot.lane.b32.xlu2 %v324_v37, %s1423_s1  ;;  %v458_v53 = vunpack.c.l.b16 %v324_v37 }
  0xf8   :  { %v318_v47 = vpack.c.bf16 %v245_v4, %v245_v4 }
  0xf9   :  { %v1791_v59 = vpack.c.b16 %v458_v53, %v457_v58 }
  0xfa   :  { %v262_v39 = vpop.f32.mrf.mxu1  ;;  %v452_v15 = vunpack.c.l.b16 %v318_v47 }
  0xfb   :  { %564 = vmatpush.bf16.xpose.msra.mxu3 %v550_v38  ;;  %v263_v40 = vadd.f32 %v1644_v50, %v262_v39 }
  0xfd   :  { %v325_v42 = vpack.c.bf16 %v263_v40, %v263_v40 }
  0xfe   :  { %387 = vrot.lane.b32.xlu1 %v1680_v14, %s1423_s1  ;;  %v248_v14 = vadd.f32 %v1644_v50, %v1724_v51  ;;  %v492_v51 = vsel %vm469_vm1, %v1791_v59, 0 }
  0xff   :  { %409 = vrot.lane.b32.xlu0 %v325_v42, %s1423_s1  ;;  %429 = vrot.lane.b32.xlu2 %v1690_v20, %s1423_s1  ;;  %v459_v49 = vunpack.c.l.b16 %v325_v42 }
 0x100   :  { %v319_v56 = vpack.c.bf16 %v248_v14, %v248_v14 }
 0x102   :  { %v264_v44 = vpop.f32.mrf.mxu1  ;;  %v453_v7 = vunpack.c.l.b16 %v319_v56 }
 0x103   :  { %565 = vmatpush.bf16.xpose.msra.mxu3 %v547_v43  ;;  %v265_v45 = vadd.f32 %v1644_v50, %v264_v44  ;;  %v477_v44 = vsel %vm469_vm1, %v1693_v23, 0 }
 0x104   :  { %v1807_v5 = vpack.c.b16 %v454_v3, %v453_v7 }
 0x105   :  { %v326_v48 = vpack.c.bf16 %v265_v45, %v265_v45 }
 0x106   :  { %v486_v16 = vsel %vm469_vm1, %v1807_v5, 0 }
 0x107   :  { %v460_v52 = vunpack.c.l.b16 %v326_v48  ;;  %411 = vrot.lane.b32.xlu0 %v326_v48, %s1423_s1  ;;  %395 = vrot.lane.b32.xlu2 %v318_v47, %s1423_s1 }
 0x109   :  { %v1784_v20 = vpack.c.b16 %v460_v52, %v459_v49 }
 0x10a   :  { %v267_v46 = vpop.f32.mrf.mxu1 }
 0x10b   :  { %v495_v55 = vsel %vm469_vm1, %v1784_v20, 0  ;;  %v268_v42 = vadd.f32 %v1644_v50, %v267_v46 }
 0x10c   :  { %497 = vmatpush.bf16.xpose.msrb.mxu2 %v495_v55  ;;  %v474_v55 = vsel %vm469_vm1, %v1666_v2, 0 }
 0x10d   :  { %v327_v52 = vpack.c.bf16 %v268_v42, %v268_v42 }
 0x10f   :  { %397 = vrot.lane.b32.xlu0 %v319_v56, %s1423_s1  ;;  %389 = vrot.lane.b32.xlu2 %v1704_v33, %s1423_s1  ;;  %v510_v56 = vunpack.c.l.b16 %v327_v52 }
 0x112   :  { %v269_v60 = vpop.f32.mrf.mxu1 }
 0x113   :  { %v270_v4 = vadd.f32 %v1644_v50, %v269_v60 }
 0x114   :  { %498 = vmatpush.bf16.xpose.msrb.mxu2 %v492_v51 }
 0x117   :  { %431 = vrot.lane.b32.xlu0 %v1695_v25, %s1423_s1  ;;  %v1333_v25 = vld [vmem:[%s2074_s4] ss:$0 sm:$0xff]  ;;  %s1424_s4 = smov 96  }
 0x118   :  { %v130_v18 = vadd.f32 %v1333_v25, %v129_v12  ;;  %v1834_v39 = vpop.permute.xlu2 %435 }
 0x11a   :  { %v272_v1 = vpop.f32.mrf.mxu1  ;;  %v307_v21 = vmul.f32 0.25, %v130_v18 }
 0x11b   :  { %v273_v33 = vadd.f32 %v1644_v50, %v272_v1 }
 0x11c   :  { %499 = vmatpush.bf16.xpose.msrb.mxu2 %v489_v6  ;;  %v309_v28 = vpack.c.bf16 %v307_v21, %v307_v21 }
 0x11d   :  { %v329_v8 = vpack.c.bf16 %v273_v33, %v273_v33 }
 0x11f   :  { %425 = vrot.lane.b32.xlu0 %v1663_v63, %s1423_s1  ;;  %417 = vrot.lane.b32.xlu2 %v329_v8, %s1423_s1  ;;  %v1819_v63 = vpack.c.b16 %v452_v15, %v451_v19  ;;  %v512_v45 = vunpack.c.l.b16 %v329_v8 }
 0x121   :  { %v483_v26 = vsel %vm469_vm1, %v1819_v63, 0 }
 0x122   :  { %v274_v13 = vpop.f32.mrf.mxu1 }
 0x124   :  { %500 = vmatpush.bf16.xpose.msrb.mxu2 %v486_v16 }
 0x127   :  { %391 = vrot.lane.b32.xlu0 %v1709_v36, %s1423_s1  ;;  %383 = vrot.lane.b32.xlu2 %v1653_v57, %s1423_s1  ;;  %v275_v57 = vadd.f32 %v1644_v50, %v274_v13 }
 0x128   :  { %v1832_v38 = vpop.permute.xlu1 %433 }
 0x129   :  { %v330_v35 = vpack.c.bf16 %v275_v57, %v275_v57  ;;  %v648_v15 = vunpack.c.l.b16 %v1832_v38 }
 0x12a   :  { %v277_v22 = vpop.f32.mrf.mxu1 }
 0x12b   :  { %v278_v24 = vadd.f32 %v1644_v50, %v277_v22  ;;  %v513_v47 = vunpack.c.l.b16 %v330_v35 }
 0x12c   :  { %501 = vmatpush.bf16.xpose.msrb.mxu2 %v483_v26 }
 0x12d   :  { %v331_v29 = vpack.c.bf16 %v278_v24, %v278_v24 }
 0x12f   :  { %421 = vrot.lane.b32.xlu1 %v331_v29, %s1423_s1  ;;  %385 = vrot.lane.b32.xlu0 %v1676_v11, %s1423_s1  ;;  %v514_v34 = vunpack.c.l.b16 %v331_v29  ;;  %v131_v11 = vpop.f32.mrf.mxu0 }
 0x130   :  { %345 = vrot.lane.b32.xlu2 %v309_v28, %s1423_s1  ;;  %v132_v49 = vadd.f32 %v1333_v25, %v131_v11 }
 0x132   :  { %v279_v36 = vpop.f32.mrf.mxu1  ;;  %v308_v46 = vmul.f32 0.25, %v132_v49 }
 0x133   :  { %v280_v27 = vadd.f32 %v1644_v50, %v279_v36  ;;  %v1847_v50 = vpack.c.b16 %v513_v47, %v512_v45 }
 0x134   :  { %502 = vmatpush.bf16.xpose.msrb.mxu2 %v480_v32  ;;  %v310_v60 = vpack.c.bf16 %v308_v46, %v308_v46 }
 0x135   :  { %v332_v37 = vpack.c.bf16 %v280_v27, %v280_v27  ;;  %v541_v61 = vsel %vm469_vm1, %v1847_v50, 0 }
 0x137   :  { %v515_v40 = vunpack.c.l.b16 %v332_v37  ;;  %419 = vrot.lane.b32.xlu0 %v330_v35, %s1423_s1  ;;  %381 = vrot.lane.b32.xlu1 %v1649_v54, %s1423_s1  ;;  %v328_v54 = vpack.c.bf16 %v270_v4, %v270_v4 }
 0x138   :  { %423 = vrot.lane.b32.xlu2 %v332_v37, %s1423_s1  ;;  %v438_v6 = vpop.permute.xlu0 %437 }
 0x139   :  { %v528_v43 = vpack.c.b16 %v515_v40, %v514_v34  ;;  %v1851_v53 = vpop.permute.xlu2 %401  ;;  %v511_v58 = vunpack.c.l.b16 %v328_v54 }
 0x13a   :  { %v584_v29 = vunpack.c.l.b16 %v1851_v53 }
 0x13b   :  { %v544_v48 = vsel %vm469_vm1, %v528_v43, 0 }
 0x13c   :  { %503 = vmatpush.bf16.xpose.msrb.mxu2 %v477_v44  ;;  %566 = vmatpush.bf16.xpose.msra.mxu3 %v544_v48 }
 0x13f   :  { %413 = vrot.lane.b32.xlu0 %v327_v52, %s1423_s1  ;;  %415 = vrot.lane.b32.xlu1 %v328_v54, %s1423_s1 }
 0x140   :  { %v440_v14 = vpop.permute.xlu1 %439  ;;  %784 = vrot.lane.b32.xlu2 %v1791_v59, %s1424_s4  ;;  %v1860_v59 = vpack.c.b16 %v511_v58, %v510_v56 }
 0x141   :  { %v651_v7 = vunpack.c.l.b16 %v440_v14 }
 0x142   :  { %v538_v1 = vsel %vm469_vm1, %v1860_v59, 0 }
 0x144   :  { %504 = vmatpush.bf16.xpose.msrb.mxu2 %v474_v55  ;;  %567 = vmatpush.bf16.xpose.msra.mxu3 %v541_v61 }
 0x147   :  { %786 = vrot.lane.b32.xlu1 %v1784_v20, %s1424_s4  ;;  %347 = vrot.lane.b32.xlu0 %v310_v60, %s1423_s1  ;;  %s1429_s1 = smov 8  }
 0x148   :  { %v442_v51 = vpop.permute.xlu1 %441  ;;  %780 = vrot.lane.b32.xlu2 %v1807_v5, %s1424_s4  ;;  %v650_v5 = vunpack.c.l.b16 %v438_v6 }
 0x149   :  { %v406_v62 = vpop.permute.xlu2 %405  ;;  %v652_v3 = vunpack.c.l.b16 %v442_v51 }
 0x14a   :  { %v660_v13 = vpack.c.b16 %v651_v7, %v650_v5  ;;  %v586_v27 = vunpack.c.l.b16 %v406_v62 }
 0x14b   :  { %1271 = vmatmul.msk.bf16.vlgmr.msrb.gmra.mxu2 %vm469_vm1, %v309_v28 }
 0x14c   :  { %568 = vmatpush.bf16.xpose.msra.mxu3 %v538_v1 }
 0x14f   :  { %782 = vrot.lane.b32.xlu1 %v1798_v0, %s1424_s4  ;;  %823 = vrot.lane.b32.xlu0 %v1737_v10, %s1424_s4  ;;  %v684_v10 = vsel %vm469_vm1, %v660_v13, 0  ;;  %v649_v0 = vunpack.c.l.b16 %v1834_v39 }
 0x150   :  { %v444_v33 = vpop.permute.xlu1 %443  ;;  %778 = vrot.lane.b32.xlu2 %v1819_v63, %s1424_s4 }
 0x151   :  { %v653_v20 = vunpack.c.l.b16 %v444_v33  ;;  %v408_v25 = vpop.permute.xlu2 %407  ;;  %v659_v18 = vpack.c.b16 %v649_v0, %v648_v15 }
 0x153   :  { %v661_v8 = vpack.c.b16 %v653_v20, %v652_v3  ;;  %1272 = vmatmul.msk.bf16.vlgmr.msra.gmra.mxu3 %vm469_vm1, %v310_v60 }
 0x155   :  { %v687_v12 = vsel %vm469_vm1, %v661_v8, 0 }
 0x156   :  { %689 = vmatpush.bf16.xpose.msra.mxu2 %v687_v12 }
 0x157   :  { %821 = vrot.lane.b32.xlu0 %v1744_v17, %s1424_s4  ;;  %897 = vrot.lane.b32.xlu1 %v661_v8, %s1424_s4  ;;  %v681_v17 = vsel %vm469_vm1, %v659_v18, 0 }
 0x158   :  { %817 = vrot.lane.b32.xlu2 %v1702_v31, %s1424_s4  ;;  %v400_v28 = vpop.permute.xlu1 %399 }
 0x159   :  { %v430_v16 = vpop.permute.xlu2 %429  ;;  %v404_v31 = vpop.permute.xlu0 %403 }
 0x15a   :  { %v585_v22 = vunpack.c.l.b16 %v404_v31  ;;  %v646_v40 = vunpack.c.l.b16 %v430_v16 }
 0x15c   :  { %v595_v36 = vpack.c.b16 %v585_v22, %v584_v29 }
 0x15e   :  { %690 = vmatpush.bf16.xpose.msra.mxu2 %v684_v10  ;;  %v617_v47 = vsel %vm469_vm1, %v595_v36, 0 }
 0x15f   :  { %819 = vrot.lane.b32.xlu0 %v1758_v30, %s1424_s4 }
 0x160   :  { %776 = vrot.lane.b32.xlu2 %v1716_v41, %s1424_s4  ;;  %v394_v37 = vpop.permute.xlu1 %393 }
 0x161   :  { %v396_v19 = vpop.permute.xlu2 %395  ;;  %v580_v60 = vunpack.c.l.b16 %v394_v37 }
 0x162   :  { %v581_v55 = vunpack.c.l.b16 %v396_v19 }
 0x164   :  { %v593_v1 = vpack.c.b16 %v581_v55, %v580_v60 }
 0x166   :  { %691 = vmatpush.bf16.xpose.msra.mxu2 %v681_v17  ;;  %v611_v33 = vsel %vm469_vm1, %v593_v1, 0 }
 0x167   :  { %813 = vrot.lane.b32.xlu0 %v528_v43, %s1424_s4  ;;  %v583_v43 = vunpack.c.l.b16 %v400_v28 }
 0x168   :  { %815 = vrot.lane.b32.xlu2 %v1674_v9, %s1424_s4  ;;  %v587_v9 = vunpack.c.l.b16 %v408_v25  ;;  %v428_v49 = vpop.permute.xlu1 %427 }
 0x169   :  { %v1893_v63 = vpop.permute.xlu2 %389  ;;  %v645_v54 = vunpack.c.l.b16 %v428_v49  ;;  %v1335_v49 = vld [vmem:[%s2097_s21 + $0x1] ss:$0 sm:$0xff] }
 0x16a   :  { %v596_v34 = vpack.c.b16 %v587_v9, %v586_v27  ;;  %v578_v20 = vunpack.c.l.b16 %v1893_v63 }
 0x16c   :  { %v620_v38 = vsel %vm469_vm1, %v596_v34, 0 }
 0x170   :  { %774 = vrot.lane.b32.xlu2 %v1693_v23, %s1424_s4  ;;  %v388_v61 = vpop.permute.xlu1 %387 }
 0x171   :  { %v410_v30 = vpop.permute.xlu0 %409  ;;  %v577_v15 = vunpack.c.l.b16 %v388_v61 }
 0x172   :  { %v588_v24 = vunpack.c.l.b16 %v410_v30 }
 0x178   :  { %895 = vrot.lane.b32.xlu2 %v660_v13, %s1424_s4 }
 0x179   :  { %v412_v21 = vpop.permute.xlu0 %411  ;;  %v1896_v41 = vpop.permute.xlu2 %417 }
 0x17a   :  { %v589_v26 = vunpack.c.l.b16 %v412_v21  ;;  %v640_v17 = vunpack.c.l.b16 %v1896_v41 }
 0x17c   :  { %v597_v57 = vpack.c.b16 %v589_v26, %v588_v24 }
 0x17e   :  { %860 = vrot.lane.b32.xlu0 %v597_v57, %s1424_s4  ;;  %v623_v23 = vsel %vm469_vm1, %v597_v57, 0 }
 0x17f   :  { %625 = vmatpush.bf16.xpose.msrb.mxu0 %v623_v23 }
 0x180   :  { %856 = vrot.lane.b32.xlu2 %v595_v36, %s1424_s4 }
 0x181   :  { %v398_v32 = vpop.permute.xlu0 %397  ;;  %v1902_v35 = vpop.permute.xlu2 %383 }
 0x182   :  { %v582_v11 = vunpack.c.l.b16 %v398_v32  ;;  %v575_v26 = vunpack.c.l.b16 %v1902_v35 }
 0x184   :  { %v594_v45 = vpack.c.b16 %v583_v43, %v582_v11  ;;  %v1334_v43 = vld [vmem:[%s2097_s21] ss:$0 sm:$0xff] }
 0x186   :  { %893 = vrot.lane.b32.xlu0 %v659_v18, %s1424_s4  ;;  %v614_v56 = vsel %vm469_vm1, %v594_v45, 0 }
 0x187   :  { %626 = vmatpush.bf16.xpose.msrb.mxu0 %v620_v38 }
 0x188   :  { %858 = vrot.lane.b32.xlu2 %v596_v34, %s1424_s4 }
 0x189   :  { %v432_v39 = vpop.permute.xlu0 %431 }
 0x18a   :  { %v647_v42 = vunpack.c.l.b16 %v432_v39  ;;  %v1907_v4 = vpop.permute.xlu2 %345 }
 0x18c   :  { %v1909_v44 = vpack.c.b16 %v647_v42, %v646_v40 }
 0x18e   :  { %v678_v48 = vsel %vm469_vm1, %v1909_v44, 0 }
 0x18f   :  { %627 = vmatpush.bf16.xpose.msrb.mxu0 %v617_v47  ;;  %692 = vmatpush.bf16.xpose.msra.mxu2 %v678_v48 }
 0x190   :  { %854 = vrot.lane.b32.xlu2 %v594_v45, %s1424_s4 }
 0x191   :  { %v426_v52 = vpop.permute.xlu0 %425 }
 0x192   :  { %v644_v14 = vunpack.c.l.b16 %v426_v52  ;;  %v424_v46 = vpop.permute.xlu2 %423 }
 0x193   :  { %v643_v8 = vunpack.c.l.b16 %v424_v46 }
 0x194   :  { %v1915_v53 = vpack.c.b16 %v645_v54, %v644_v14 }
 0x196   :  { %v675_v58 = vsel %vm469_vm1, %v1915_v53, 0 }
 0x197   :  { %628 = vmatpush.bf16.xpose.msrb.mxu0 %v614_v56  ;;  %693 = vmatpush.bf16.xpose.msra.mxu2 %v675_v58 }
 0x198   :  { %811 = vrot.lane.b32.xlu2 %v1847_v50, %s1424_s4 }
 0x199   :  { %v392_v51 = vpop.permute.xlu0 %391 }
 0x19a   :  { %v785_v62 = vpop.permute.xlu2 %784  ;;  %v579_v3 = vunpack.c.l.b16 %v392_v51 }
 0x19c   :  { %v1925_v12 = vpack.c.b16 %v579_v3, %v578_v20 }
 0x19e   :  { %v608_v10 = vsel %vm469_vm1, %v1925_v12, 0 }
 0x19f   :  { %629 = vmatpush.bf16.xpose.msrb.mxu0 %v611_v33 }
 0x1a0   :  { %852 = vrot.lane.b32.xlu2 %v593_v1, %s1424_s4 }
 0x1a1   :  { %v422_v6 = vpop.permute.xlu1 %421  ;;  %v386_v7 = vpop.permute.xlu0 %385 }
 0x1a2   :  { %v642_v5 = vunpack.c.l.b16 %v422_v6  ;;  %v781_v25 = vpop.permute.xlu2 %780  ;;  %v576_v13 = vunpack.c.l.b16 %v386_v7 }
 0x1a4   :  { %v1927_v50 = vpack.c.b16 %v643_v8, %v642_v5  ;;  %v1934_v63 = vpack.c.b16 %v577_v15, %v576_v13 }
 0x1a6   :  { %v672_v0 = vsel %vm469_vm1, %v1927_v50, 0  ;;  %v605_v22 = vsel %vm469_vm1, %v1934_v63, 0 }
 0x1a7   :  { %630 = vmatpush.bf16.xpose.msrb.mxu0 %v608_v10  ;;  %694 = vmatpush.bf16.xpose.msra.mxu2 %v672_v0 }
 0x1a9   :  { %v420_v16 = vpop.permute.xlu0 %419  ;;  %v382_v18 = vpop.permute.xlu1 %381 }
 0x1aa   :  { %v641_v19 = vunpack.c.l.b16 %v420_v16  ;;  %v779_v31 = vpop.permute.xlu2 %778  ;;  %v574_v21 = vunpack.c.l.b16 %v382_v18 }
 0x1ac   :  { %v1936_v30 = vpack.c.b16 %v641_v19, %v640_v17  ;;  %v1943_v36 = vpack.c.b16 %v575_v26, %v574_v21 }
 0x1ae   :  { %v669_v24 = vsel %vm469_vm1, %v1936_v30, 0  ;;  %v602_v27 = vsel %vm469_vm1, %v1943_v36, 0 }
 0x1af   :  { %631 = vmatpush.bf16.xpose.msrb.mxu0 %v605_v22  ;;  %695 = vmatpush.bf16.xpose.msra.mxu2 %v669_v24 }
 0x1b1   :  { %v414_v28 = vpop.permute.xlu0 %413  ;;  %v416_v29 = vpop.permute.xlu1 %415 }
 0x1b2   :  { %v638_v41 = vunpack.c.l.b16 %v414_v28  ;;  %v639_v57 = vunpack.c.l.b16 %v416_v29  ;;  %v818_v9 = vpop.permute.xlu2 %817 }
 0x1b4   :  { %v1945_v23 = vpack.c.b16 %v639_v57, %v638_v41 }
 0x1b6   :  { %v666_v32 = vsel %vm469_vm1, %v1945_v23, 0 }
 0x1b7   :  { %632 = vmatpush.bf16.xpose.msrb.mxu0 %v602_v27  ;;  %696 = vmatpush.bf16.xpose.msra.mxu2 %v666_v32 }
 0x1b9   :  { %v787_v34 = vpop.permute.xlu1 %786  ;;  %v348_v37 = vpop.permute.xlu0 %347 }
 0x1ba   :  { %v777_v35 = vpop.permute.xlu2 %776  ;;  %796 = vmatpush.bf16.msrb.mxu3 %v787_v34 }
 0x1be   :  { %1273 = vmatmul.msk.bf16.vlgmr.msrb.gmra.mxu0 %vm469_vm1, %v1907_v4  ;;  %1274 = vmatmul.msk.bf16.vlgmr.msra.gmra.mxu2 %vm469_vm1, %v348_v37 }
 0x1bf   :  { %797 = vmatpush.bf16.msrb.mxu3 %v785_v62 }
 0x1c1   :  { %v783_v38 = vpop.permute.xlu1 %782  ;;  %v824_v39 = vpop.permute.xlu0 %823 }
 0x1c2   :  { %v816_v40 = vpop.permute.xlu2 %815  ;;  %833 = vmatpush.bf16.msra.mxu0 %v824_v39 }
 0x1c3   :  { %798 = vmatpush.bf16.msrb.mxu3 %v783_v38 }
 0x1c7   :  { %799 = vmatpush.bf16.msrb.mxu3 %v781_v25 }
 0x1c9   :  { %v822_v11 = vpop.permute.xlu0 %821  ;;  %v898_v62 = vpop.permute.xlu1 %897 }
 0x1ca   :  { %v775_v42 = vpop.permute.xlu2 %774  ;;  %834 = vmatpush.bf16.msra.mxu0 %v822_v11 }
 0x1cb   :  { %800 = vmatpush.bf16.msrb.mxu3 %v779_v31 }
 0x1ce   :  { %v506_v45 = vpop.f32.mrf.mxu2 }
 0x1cf   :  { %v710_v47 = vadd.f32 %v1334_v43, %v506_v45  ;;  %801 = vmatpush.bf16.msrb.mxu3 %v777_v35 }
 0x1d1   :  { %v820_v4 = vpop.permute.xlu0 %819  ;;  %714 = vmax.xlane.f32.xlu1 %v710_v47 }
 0x1d2   :  { %v1957_v48 = vpop.permute.xlu2 %895  ;;  %835 = vmatpush.bf16.msra.mxu0 %v820_v4 }
 0x1d3   :  { %802 = vmatpush.bf16.msrb.mxu3 %v775_v42 }
 0x1d6   :  { %v570_v52 = vpop.f32.mrf.mxu3  ;;  %836 = vmatpush.bf16.msra.mxu0 %v818_v9  ;;  %v508_v54 = vpop.f32.mrf.mxu2 }
 0x1d7   :  { %v711_v14 = vadd.f32 %v1335_v49, %v570_v52 }
 0x1d9   :  { %716 = vmax.xlane.f32.xlu2 %v711_v14  ;;  %v814_v55 = vpop.permute.xlu0 %813 }
 0x1da   :  { %v857_v46 = vpop.permute.xlu2 %856  ;;  %837 = vmatpush.bf16.msra.mxu0 %v816_v40 }
 0x1de   :  { %838 = vmatpush.bf16.msra.mxu0 %v814_v55  ;;  %v572_v56 = vpop.f32.mrf.mxu3 }
 0x1e2   :  { %v859_v58 = vpop.permute.xlu2 %858 }
 0x1ea   :  { %v855_v60 = vpop.permute.xlu2 %854  ;;  %772 = vrot.lane.b32.xlu1 %v1666_v2, %s1424_s4 }
 0x1f1   :  { %891 = vrot.lane.b32.xlu2 %v1909_v44, %s1424_s4 }
 0x1f2   :  { %v812_v61 = vpop.permute.xlu2 %811 }
 0x1f3   :  { %839 = vmatpush.bf16.msra.mxu0 %v812_v61 }
 0x1f9   :  { %850 = vrot.lane.b32.xlu2 %v1925_v12, %s1424_s4  ;;  %v861_v12 = vpop.permute.xlu0 %860 }
 0x1fa   :  { %v853_v44 = vpop.permute.xlu2 %852 }
 0x201   :  { %v894_v16 = vpop.permute.xlu0 %893 }
 0x23b   :  { %v634_v51 = vpop.f32.mrf.mxu0 }
 0x23c   :  { %v712_v1 = vadd.f32 %v1334_v43, %v634_v51 }
 0x23e   :  { %718 = vmax.xlane.f32.xlu0 %v712_v1 }
 0x241   :  { %v698_v3 = vpop.f32.mrf.mxu2 }
 0x242   :  { %v713_v33 = vadd.f32 %v1335_v49, %v698_v3 }
 0x243   :  { %v636_v20 = vpop.f32.mrf.mxu0 }
 0x244   :  { %v715_v6 = vpop.xlane.xlu1 %714  ;;  %720 = vmax.xlane.f32.xlu2 %v713_v33 }
 0x245   :  { %v722_v7 = vsub.f32 %v710_v47, %v715_v6 }
 0x247   :  { %v726_v8 = vmul.f32 1.442695, %v722_v7 }
 0x249   :  { %1343 = vpow2.f32 %v726_v8  ;;  %v700_v2 = vpop.f32.mrf.mxu2 }
 0x24c   :  { %v717_v13 = vpop.xlane.xlu2 %716 }
 0x24f   :  { %v1344_v5 = vpop.eup %1343 }
 0x250   :  { %734 = vadd.xlane.f32.xlu1 %v1344_v5 }
 0x252   :  { %809 = vrot.lane.b32.xlu0 %v1860_v59, %s1424_s4  ;;  %v723_v59 = vsub.f32 %v711_v14, %v717_v13 }
 0x254   :  { %v892_v10 = vpop.permute.xlu2 %891  ;;  %v728_v0 = vmul.f32 1.442695, %v723_v59 }
 0x256   :  { %1345 = vpow2.f32 %v728_v0 }
 0x25c   :  { %v773_v25 = vpop.permute.xlu1 %772  ;;  %889 = vrot.lane.b32.xlu2 %v1915_v53, %s1424_s4  ;;  %v851_v15 = vpop.permute.xlu2 %850 }
 0x25d   :  { %803 = vmatpush.bf16.msrb.mxu3 %v773_v25  ;;  %v1346_v53 = vpop.eup %1345 }
 0x261   :  { %870 = vmatpush.bf16.msra.mxu3 %v861_v12 }
 0x264   :  { %887 = vrot.lane.b32.xlu2 %v1927_v50, %s1424_s4 }
 0x265   :  { %871 = vmatpush.bf16.msra.mxu3 %v859_v58 }
 0x269   :  { %872 = vmatpush.bf16.msra.mxu3 %v857_v46 }
 0x26c   :  { %846 = vrot.lane.b32.xlu2 %v1943_v36, %s1424_s4 }
 0x26d   :  { %873 = vmatpush.bf16.msra.mxu3 %v855_v60 }
 0x271   :  { %874 = vmatpush.bf16.msra.mxu3 %v853_v44 }
 0x274   :  { %885 = vrot.lane.b32.xlu2 %v1936_v30, %s1424_s4 }
 0x275   :  { %875 = vmatpush.bf16.msra.mxu3 %v851_v15  ;;  %v1315_v15 = vld [vmem:[%s2077_s7 + $0x8] sm:$0xff] }
 0x276   :  { %974 = vmatpush.bf16.msrb.mxu2 %v1315_v15  ;;  %v1338_v15 = vld [vmem:[%s2084_s14] ss:$0 sm:$0xff] }
 0x27c   :  { %736 = vadd.xlane.f32.xlu0 %v1346_v53 }
 0x2b1   :  { %v719_v18 = vpop.xlane.xlu0 %718 }
 0x2b2   :  { %v724_v50 = vsub.f32 %v712_v1, %v719_v18 }
 0x2b4   :  { %v730_v17 = vmul.f32 1.442695, %v724_v50 }
 0x2b6   :  { %1347 = vpow2.f32 %v730_v17 }
 0x2b7   :  { %v721_v19 = vpop.xlane.xlu2 %720 }
 0x2b8   :  { %v725_v31 = vsub.f32 %v713_v33, %v721_v19 }
 0x2ba   :  { %v732_v21 = vmul.f32 1.442695, %v725_v31 }
 0x2bc   :  { %v1348_v22 = vpop.eup %1347  ;;  %1349 = vpow2.f32 %v732_v21 }
 0x2bd   :  { %738 = vadd.xlane.f32.xlu1 %v1348_v22 }
 0x2bf   :  { %v890_v24 = vpop.permute.xlu2 %889 }
 0x2c2   :  { %v1350_v26 = vpop.eup %1349 }
 0x2c3   :  { %v735_v28 = vpop.xlane.xlu1 %734  ;;  %740 = vadd.xlane.f32.xlu0 %v1350_v26 }
 0x2c4   :  { %1351 = vrcp.f32 %v735_v28  ;;  %v810_v30 = vpop.permute.xlu0 %809 }
 0x2c5   :  { %840 = vmatpush.bf16.msra.mxu0 %v810_v30 }
 0x2c7   :  { %v888_v29 = vpop.permute.xlu2 %887 }
 0x2c9   :  { %907 = vmatpush.bf16.msrb.mxu0 %v898_v62 }
 0x2ca   :  { %v1352_v41 = vpop.eup %1351 }
 0x2cb   :  { %v746_v57 = vmul.f32 %v1352_v41, %v735_v28 }
 0x2cd   :  { %908 = vmatpush.bf16.msrb.mxu0 %v1957_v48  ;;  %v750_v9 = vsub.f32 2.0, %v746_v57 }
 0x2cf   :  { %v754_v36 = vmul.f32 %v1352_v41, %v750_v9  ;;  %v847_v32 = vpop.permute.xlu2 %846 }
 0x2d1   :  { %909 = vmatpush.bf16.msrb.mxu0 %v894_v16  ;;  %v758_v27 = vmul.f32 %v1344_v5, %v754_v36 }
 0x2d3   :  { %v768_v34 = vpack.c.bf16 %v758_v27, %v758_v27 }
 0x2d5   :  { %910 = vmatpush.bf16.msrb.mxu0 %v892_v10  ;;  %804 = vmatmul.bf16.vlgmr.msrb.gmra.mxu3 %v768_v34 }
 0x2d6   :  { %848 = vrot.lane.b32.xlu1 %v1934_v63, %s1424_s4 }
 0x2d7   :  { %883 = vrot.lane.b32.xlu0 %v1945_v23, %s1424_s4  ;;  %v886_v37 = vpop.permute.xlu2 %885 }
 0x2d9   :  { %911 = vmatpush.bf16.msrb.mxu0 %v890_v24 }
 0x2dd   :  { %912 = vmatpush.bf16.msrb.mxu0 %v888_v29  ;;  %v1369_v29 = vld [vmem:[%s2096_s20] sm:$0xff] }
 0x2e1   :  { %913 = vmatpush.bf16.msrb.mxu0 %v886_v37  ;;  %v1426_v37 = vmov 32.0  }
 0x2ef   :  { %v737_v35 = vpop.xlane.xlu0 %736 }
 0x2f0   :  { %1353 = vrcp.f32 %v737_v35 }
 0x2f6   :  { %v1354_v38 = vpop.eup %1353 }
 0x2f7   :  { %v747_v39 = vmul.f32 %v1354_v38, %v737_v35 }
 0x2f9   :  { %v751_v40 = vsub.f32 2.0, %v747_v39 }
 0x2fb   :  { %v755_v11 = vmul.f32 %v1354_v38, %v751_v40 }
 0x2fd   :  { %v759_v42 = vmul.f32 %v1346_v53, %v755_v11  ;;  %v1314_v53 = vld [vmem:[%s2077_s7] sm:$0xff] }
 0x2fe   :  { %975 = vmatpush.bf16.msrb.mxu2 %v1314_v53 }
 0x2ff   :  { %v769_v43 = vpack.c.bf16 %v759_v42, %v759_v42 }
 0x301   :  { %841 = vmatmul.bf16.vlgmr.msra.gmra.mxu0 %v769_v43 }
 0x330   :  { %v739_v45 = vpop.xlane.xlu1 %738 }
 0x331   :  { %1355 = vrcp.f32 %v739_v45 }
 0x336   :  { %v741_v47 = vpop.xlane.xlu0 %740 }
 0x337   :  { %v1356_v63 = vpop.eup %1355  ;;  %1357 = vrcp.f32 %v741_v47 }
 0x338   :  { %v748_v4 = vmul.f32 %v1356_v63, %v739_v45  ;;  %1359 = vrcp.f32 %v1426_v37 }
 0x33a   :  { %v752_v48 = vsub.f32 2.0, %v748_v4 }
 0x33c   :  { %v756_v23 = vmul.f32 %v1356_v63, %v752_v48 }
 0x33d   :  { %v1358_v49 = vpop.eup %1357 }
 0x33e   :  { %v760_v52 = vmul.f32 %v1348_v22, %v756_v23  ;;  %v749_v54 = vmul.f32 %v1358_v49, %v741_v47  ;;  %v1360_v35 = vpop.eup %1359 }
 0x33f   :  { %v993_v38 = vmul.f32 32.0, %v1360_v35  ;;  %vm997_vm2 = vweird.f32 %v1360_v35 }
 0x340   :  { %v762_v14 = vadd.f32 %v760_v52, %v758_v27  ;;  %v753_v46 = vsub.f32 2.0, %v749_v54  ;;  %v770_v3 = vpack.c.bf16 %v760_v52, %v760_v52  ;;  %v1370_v27 = vld [vmem:[%s2096_s20 + $0x8] sm:$0xff] }
 0x341   :  { %v994_v39 = vsub.f32 1.0, %v993_v38 }
 0x342   :  { %v764_v55 = vmul.f32 0.5, %v762_v14  ;;  %v757_v56 = vmul.f32 %v1358_v49, %v753_v46  ;;  %v1317_v14 = vld [vmem:[%s2079_s9 + $0x8] sm:$0xff] }
 0x343   :  { %v995_v40 = vmul.f32 %v1360_v35, %v994_v39 }
 0x344   :  { %766 = vst [vmem:[#allocation4] sm:$0xff] %v764_v55  ;;  %v761_v58 = vmul.f32 %v1350_v26, %v757_v56  ;;  %v1336_v26 = vld [vmem:[%s2078_s8] ss:$0 sm:$0xff] }
 0x345   :  { %v996_v11 = vadd.f32 %v1360_v35, %v995_v40 }
 0x346   :  { %v763_v60 = vadd.f32 %v761_v58, %v759_v42  ;;  %v771_v1 = vpack.c.bf16 %v761_v58, %v761_v58  ;;  %v1316_v58 = vld [vmem:[%s2079_s9] sm:$0xff]  ;;  %s1208_s9 = sshll.u32 %s2087_s17, 4  ;;  %s1209_s9 = int_to_ptr.hbm [resolvable:$true] %s1208_s9 }
 0x347   :  { %v2003_v42 = vsel %vm997_vm2, %v1360_v35, %v996_v11 }
 0x348   :  { %v765_v61 = vmul.f32 0.5, %v763_v60  ;;  %v849_v51 = vpop.permute.xlu1 %848  ;;  %v1321_v60 = vld [vmem:[%s2081_s11 + $0x18] sm:$0xff] }
 0x349   :  { %876 = vmatpush.bf16.msra.mxu3 %v849_v51  ;;  %v884_v62 = vpop.permute.xlu0 %883 }
 0x34a   :  { %767 = vst [vmem:[#allocation4 + $0x8] sm:$0xff] %v765_v61  ;;  %914 = vmatpush.bf16.msrb.mxu0 %v884_v62 }
 0x34d   :  { %877 = vmatpush.bf16.msra.mxu3 %v847_v32  ;;  %915 = vmatmul.bf16.vlgmr.msrb.gmra.mxu0 %v771_v1 }
 0x34e   :  { %1132 = vmatpush.bf16.msra.mxu0 %v1321_v60 }
 0x350   :  { %878 = vmatmul.bf16.vlgmr.msra.gmra.mxu3 %v770_v3 }
 0x351   :  { %1077 = vmatpush.bf16.msrb.mxu3 %v1317_v14 }
 0x355   :  { %1078 = vmatpush.bf16.msrb.mxu3 %v1316_v58 }
 0x358   :  { %v805_v33 = vpop.f32.mrf.mxu3 }
 0x359   :  { %v920_v50 = vpack.c.bf16 %v805_v33, %v805_v33 }
 0x360   :  { %v807_v20 = vpop.f32.mrf.mxu3 }
 0x37e   :  { %v842_v6 = vpop.f32.mrf.mxu0 }
 0x37f   :  { %v921_v18 = vpack.c.bf16 %v842_v6, %v842_v6 }
 0x386   :  { %v844_v7 = vpop.f32.mrf.mxu0 }
 0x3ca   :  { %v916_v8 = vpop.f32.mrf.mxu0 }
 0x3cb   :  { %v923_v2 = vpack.c.bf16 %v916_v8, %v916_v8 }
 0x3cd   :  { %v927_v5 = vunpack.c.l.b16 %v923_v2 }
 0x3cf   :  { %v929_v44 = vpack.c.b16 %v927_v5, %v927_v5 }
 0x3d1   :  { %932 = vrot.lane.b32.xlu2 %v929_v44, %s1425_s23 }
 0x3d2   :  { %v918_v25 = vpop.f32.mrf.mxu0 }
 0x3d3   :  { %v879_v12 = vpop.f32.mrf.mxu3 }
 0x3d4   :  { %v922_v13 = vpack.c.bf16 %v879_v12, %v879_v12 }
 0x3d6   :  { %v926_v10 = vunpack.c.l.b16 %v922_v13  ;;  %v1337_v13 = vld [vmem:[%s2083_s13] ss:$0 sm:$0xff] }
 0x3d8   :  { %v928_v59 = vpack.c.b16 %v926_v10, %v926_v10 }
 0x3da   :  { %930 = vrot.lane.b32.xlu1 %v928_v59, %s1425_s23 }
 0x3db   :  { %v881_v0 = vpop.f32.mrf.mxu3 }
 0x42b   :  { %v933_v16 = vpop.permute.xlu2 %932 }
 0x42c   :  { %v939_v17 = vsel %vm469_vm1, %v921_v18, %v933_v16 }
 0x42d   :  { %v951_v21 = vunpack.c.l.b16 %v939_v17 }
 0x44c   :  { %v931_v19 = vpop.permute.xlu1 %930 }
 0x44d   :  { %v936_v31 = vsel %vm469_vm1, %v920_v50, %v931_v19 }
 0x44e   :  { %v950_v22 = vunpack.c.l.b16 %v936_v31  ;;  %v1320_v31 = vld [vmem:[%s2081_s11 + $0x10] sm:$0xff] }
 0x44f   :  { %1133 = vmatpush.bf16.msra.mxu0 %v1320_v31 }
 0x450   :  { %v952_v24 = vpack.c.b16 %v951_v21, %v950_v22  ;;  %v1319_v21 = vld [vmem:[%s2081_s11 + $0x8] sm:$0xff]  ;;  %v1318_v22 = vld [vmem:[%s2081_s11] sm:$0xff] }
 0x452   :  { %1283 = vmatmul.msk.bf16.vlgmr.msrb.gmra.mxu2 %vm116_vm0, %v952_v24 }
 0x453   :  { %1134 = vmatpush.bf16.msra.mxu0 %v1319_v21 }
 0x457   :  { %1135 = vmatpush.bf16.msra.mxu0 %v1318_v22 }
 0x4d5   :  { %v977_v28 = vpop.f32.mrf.mxu2 }
 0x4d6   :  { %v978_v30 = vadd.f32 %v1336_v26, %v977_v28 }
 0x4d8   :  { %v982_v41 = vadd.f32 %v1369_v29, %v978_v30 }
 0x4da   :  { %v986_v57 = vsel %vm116_vm0, %v982_v41, 0.0 }
 0x4db   :  { %987 = vadd.xlane.f32.xlu1 %v986_v57 }
 0x4dd   :  { %v979_v9 = vpop.f32.mrf.mxu2 }
 0x4de   :  { %v980_v36 = vadd.f32 %v1336_v26, %v979_v9  ;;  %v1339_v26 = vld [vmem:[%s2080_s10] ss:$0 sm:$0xff]  ;;  %s1427_s10 = smov [#allocation4]  }
 0x4df   :  { %s1219_s11 = sshll.u32 %s1427_s10, 4  ;;  %s1220_s11 = int_to_ptr.vmem [resolvable:$true] %s1219_s11 }
 0x4e0   :  { %v983_v32 = vadd.f32 %v1370_v27, %v980_v36  ;;  %v1340_v36 = vld [vmem:[%s2082_s12] ss:$0 sm:$0xff] }
 0x4e1   :  { %1227 = dma.vmem_to_hbm [thread:$0]  %s1220_s11, 256, %s1222_s27, [#allocation5], %s1428_s28, %s1428_s28, %s1429_s1  }
 0x4e2   :  { %v989_v34 = vsel %vm116_vm0, %v983_v32, 0.0 }
 0x4e3   :  { %990 = vadd.xlane.f32.xlu2 %v989_v34 }
 0x54e   :  { %v988_v43 = vpop.xlane.xlu1 %987 }
 0x54f   :  { %v999_v45 = vmul.f32 %v2003_v42, %v988_v43 }
 0x551   :  { %v1001_v47 = vsub.f32 %v982_v41, %v999_v45 }
 0x553   :  { %v1003_v63 = vmul.f32 %v1001_v47, %v1001_v47 }
 0x555   :  { %v1005_v4 = vsel %vm116_vm0, %v1003_v63, 0.0 }
 0x556   :  { %v991_v48 = vpop.xlane.xlu2 %990  ;;  %1006 = vadd.xlane.f32.xlu0 %v1005_v4 }
 0x557   :  { %v1000_v23 = vmul.f32 %v2003_v42, %v991_v48 }
 0x559   :  { %v1002_v49 = vsub.f32 %v983_v32, %v1000_v23 }
 0x55b   :  { %v1004_v52 = vmul.f32 %v1002_v49, %v1002_v49 }
 0x55d   :  { %v1008_v54 = vsel %vm116_vm0, %v1004_v52, 0.0 }
 0x55e   :  { %1009 = vadd.xlane.f32.xlu2 %v1008_v54 }
 0x5c9   :  { %v1007_v46 = vpop.xlane.xlu0 %1006 }
 0x5ca   :  { %v1011_v55 = vmul.f32 %v1007_v46, %v2003_v42 }
 0x5cc   :  { %v1013_v56 = vadd.f32 1e-05, %v1011_v55 }
 0x5ce   :  { %1361 = vrsqrt.f32 %v1013_v56  ;;  %vm1021_vm4 = vweird.f32 %v1013_v56 }
 0x5d1   :  { %v1010_v61 = vpop.xlane.xlu2 %1009 }
 0x5d2   :  { %v1012_v51 = vmul.f32 %v1010_v61, %v2003_v42 }
 0x5d4   :  { %v1362_v62 = vpop.eup %1361  ;;  %v1014_v1 = vadd.f32 1e-05, %v1012_v51 }
 0x5d5   :  { %v1016_v3 = vmul.f32 %v1362_v62, %v1013_v56  ;;  %vm1022_vm3 = vweird.f32 %v1362_v62 }
 0x5d6   :  { %1363 = vrsqrt.f32 %v1014_v1  ;;  %vm1023_vm5 = vmor %vm1021_vm4, %vm1022_vm3  ;;  %vm1031_vm7 = vweird.f32 %v1014_v1 }
 0x5d7   :  { %v1017_v33 = vmul.f32 %v1362_v62, %v1016_v3 }
 0x5d9   :  { %v1018_v20 = vmul.f32 0.5, %v1017_v33 }
 0x5db   :  { %v1019_v6 = vsub.f32 1.5, %v1018_v20 }
 0x5dc   :  { %v1364_v7 = vpop.eup %1363 }
 0x5dd   :  { %v1020_v8 = vmul.f32 %v1362_v62, %v1019_v6  ;;  %v1026_v2 = vmul.f32 %v1364_v7, %v1014_v1  ;;  %vm1032_vm6 = vweird.f32 %v1364_v7  ;;  %v1341_v6 = vld [vmem:[%s2085_s15] ss:$0 sm:$0xff]  ;;  %s1430_s15 = smov [#allocation2]  }
 0x5de   :  { %vm1033_vm8 = vmor %vm1031_vm7, %vm1032_vm6  ;;  %s1206_s30 = sshll.u32 %s1430_s15, 4  ;;  %s1207_s30 = int_to_ptr.vmem [resolvable:$true] %s1206_s30 }
 0x5df   :  { %v1027_v5 = vmul.f32 %v1364_v7, %v1026_v2  ;;  %v1024_v44 = vsel %vm1023_vm5, %v1362_v62, %v1020_v8  ;;  %v1342_v2 = vld [vmem:[%s2086_s16] ss:$0 sm:$0xff] }
 0x5e0   :  { %v1035_v10 = vmul.f32 %v1024_v44, %v1001_v47 }
 0x5e1   :  { %v1028_v25 = vmul.f32 0.5, %v1027_v5 }
 0x5e2   :  { %v1040_v53 = vmul.f32 %v1337_v13, %v1035_v10 }
 0x5e3   :  { %v1029_v12 = vsub.f32 1.5, %v1028_v25 }
 0x5e4   :  { %v1045_v50 = vadd.f32 %v1338_v15, %v1040_v53 }
 0x5e5   :  { %v1030_v59 = vmul.f32 %v1364_v7, %v1029_v12 }
 0x5e7   :  { %v1034_v0 = vsel %vm1033_vm8, %v1364_v7, %v1030_v59 }
 0x5e8   :  { %v1036_v16 = vmul.f32 %v1034_v0, %v1002_v49 }
 0x5ea   :  { %v1041_v18 = vmul.f32 %v1337_v13, %v1036_v16 }
 0x5ec   :  { %v1046_v17 = vadd.f32 %v1338_v15, %v1041_v18 }
 0x5ee   :  { %v1047_v19 = vpack.c.bf16 %v1046_v17, %v1045_v50 }
 0x5f0   :  { %1292 = vmatmul.msk.bf16.vlgmr.msrb.gmra.mxu3 %vm116_vm0, %v1047_v19 }
 0x673   :  { %v1080_v24 = vpop.f32.mrf.mxu3 }
 0x674   :  { %v1081_v28 = vadd.f32 %v1339_v26, %v1080_v24 }
 0x676   :  { %v1085_v41 = vmax.f32 %v1081_v28, 0.0 }
 0x67b   :  { %v1082_v30 = vpop.f32.mrf.mxu3 }
 0x67c   :  { %v1083_v29 = vadd.f32 %v1339_v26, %v1082_v30 }
 0x67e   :  { %v1086_v57 = vmax.f32 %v1083_v29, 0.0 }
 0x680   :  { %v1087_v9 = vpack.c.bf16 %v1086_v57, %v1085_v41 }
 0x682   :  { %1309 = vmatmul.msk.bf16.vlgmr.msra.gmra.mxu0 %vm1124_vm9, %v1087_v9 }
 0x6ff   :  { %v1137_v27 = vpop.f32.mrf.mxu0 }
 0x700   :  { %v1138_v32 = vadd.f32 %v1340_v36, %v1137_v27 }
 0x702   :  { %v1142_v34 = vadd.f32 %v1138_v32, %v1045_v50 }
 0x704   :  { %v1146_v37 = vsel %vm116_vm0, %v1142_v34, 0.0 }
 0x705   :  { %1147 = vadd.xlane.f32.xlu1 %v1146_v37 }
 0x707   :  { %v1139_v35 = vpop.f32.mrf.mxu0 }
 0x708   :  { %v1140_v38 = vadd.f32 %v1340_v36, %v1139_v35 }
 0x70a   :  { %v1143_v39 = vadd.f32 %v1140_v38, %v1046_v17 }
 0x70c   :  { %v1149_v40 = vsel %vm116_vm0, %v1143_v39, 0.0 }
 0x70d   :  { %1150 = vadd.xlane.f32.xlu2 %v1149_v40 }
 0x778   :  { %v1148_v11 = vpop.xlane.xlu1 %1147 }
 0x779   :  { %v1152_v43 = vmul.f32 %v1148_v11, %v2003_v42 }
 0x77b   :  { %v1154_v45 = vsub.f32 %v1142_v34, %v1152_v43 }
 0x77d   :  { %v1156_v47 = vmul.f32 %v1154_v45, %v1154_v45 }
 0x77f   :  { %v1158_v63 = vsel %vm116_vm0, %v1156_v47, 0.0 }
 0x780   :  { %v1151_v4 = vpop.xlane.xlu2 %1150  ;;  %1159 = vadd.xlane.f32.xlu1 %v1158_v63 }
 0x781   :  { %v1153_v48 = vmul.f32 %v1151_v4, %v2003_v42 }
 0x783   :  { %v1155_v23 = vsub.f32 %v1143_v39, %v1153_v48 }
 0x785   :  { %v1157_v49 = vmul.f32 %v1155_v23, %v1155_v23 }
 0x787   :  { %v1161_v52 = vsel %vm116_vm0, %v1157_v49, 0.0 }
 0x788   :  { %1162 = vadd.xlane.f32.xlu0 %v1161_v52 }
 0x7f3   :  { %v1160_v54 = vpop.xlane.xlu1 %1159 }
 0x7f4   :  { %v1164_v14 = vmul.f32 %v1160_v54, %v2003_v42 }
 0x7f6   :  { %v1166_v46 = vadd.f32 1e-05, %v1164_v14 }
 0x7f8   :  { %1365 = vrsqrt.f32 %v1166_v46  ;;  %vm1174_vm11 = vweird.f32 %v1166_v46 }
 0x7fb   :  { %v1163_v55 = vpop.xlane.xlu0 %1162 }
 0x7fc   :  { %v1165_v56 = vmul.f32 %v1163_v55, %v2003_v42 }
 0x7fe   :  { %v1366_v58 = vpop.eup %1365  ;;  %v1167_v60 = vadd.f32 1e-05, %v1165_v56 }
 0x7ff   :  { %v1169_v61 = vmul.f32 %v1366_v58, %v1166_v46  ;;  %vm1175_vm10 = vweird.f32 %v1366_v58 }
 0x800   :  { %1367 = vrsqrt.f32 %v1167_v60  ;;  %vm1176_vm12 = vmor %vm1174_vm11, %vm1175_vm10  ;;  %vm1184_vm14 = vweird.f32 %v1167_v60 }
 0x801   :  { %v1170_v51 = vmul.f32 %v1366_v58, %v1169_v61 }
 0x803   :  { %v1171_v62 = vmul.f32 0.5, %v1170_v51 }
 0x805   :  { %v1172_v1 = vsub.f32 1.5, %v1171_v62 }
 0x806   :  { %v1368_v3 = vpop.eup %1367 }
 0x807   :  { %v1173_v33 = vmul.f32 %v1366_v58, %v1172_v1  ;;  %v1179_v20 = vmul.f32 %v1368_v3, %v1167_v60  ;;  %vm1185_vm13 = vweird.f32 %v1368_v3 }
 0x808   :  { %vm1186_vm15 = vmor %vm1184_vm14, %vm1185_vm13 }
 0x809   :  { %v1177_v7 = vsel %vm1176_vm12, %v1366_v58, %v1173_v33  ;;  %v1180_v8 = vmul.f32 %v1368_v3, %v1179_v20 }
 0x80a   :  { %v1188_v42 = vmul.f32 %v1177_v7, %v1154_v45 }
 0x80b   :  { %v1181_v5 = vmul.f32 0.5, %v1180_v8 }
 0x80c   :  { %v1193_v44 = vmul.f32 %v1341_v6, %v1188_v42 }
 0x80d   :  { %v1182_v25 = vsub.f32 1.5, %v1181_v5 }
 0x80e   :  { %v1198_v12 = vadd.f32 %v1342_v2, %v1193_v44 }
 0x80f   :  { %v1183_v13 = vmul.f32 %v1368_v3, %v1182_v25 }
 0x810   :  { %1200 = vst.msk [vmem:[#allocation2] sm:$0xff] %vm116_vm0, %v1198_v12 }
 0x811   :  { %v1187_v10 = vsel %vm1186_vm15, %v1368_v3, %v1183_v13 }
 0x812   :  { %v1189_v59 = vmul.f32 %v1187_v10, %v1155_v23 }
 0x814   :  { %v1194_v0 = vmul.f32 %v1341_v6, %v1189_v59 }
 0x816   :  { %v1199_v15 = vadd.f32 %v1342_v2, %v1194_v0 }
 0x818   :  { %1201 = vst.msk [vmem:[#allocation2 + $0x8] sm:$0xff] %vm116_vm0, %v1199_v15 }
 0x819   :  { %1214 = dma.vmem_to_hbm [thread:$0]  %s1207_s30, 256, %s1209_s9, [#allocation3], %s1428_s28, %s1428_s28, %s1429_s1  }
 0x81a   :  { %1419 = dma.done.wait [#allocation3], 256  }
 0x81b   :  { %1420 = vsyncadd [#allocation3], 4294967040 }
 0x81c   :  { %1421 = dma.done.wait [#allocation5], 256  }
 0x81d   :  { %1422 = vsyncadd [#allocation5], 4294967040 }
 0x81e   :  { %1236 = vsyncpa [#allocation3], 1 }
 0x81f   :  { %1237 = vsyncpa [#allocation5], 1 }

// kernel: tpu_custom_call.1
= control target key start
LH: loop header
LB: loop body
LE: loop exit
PB: predicated region body
PF: predicated region fallthrough
CT: control target
= control target key end

     0   :  { %s2070_s0 = inlined_call_operand.vmem [shape: f32[2,8,32], index: 0, kind: input, shape index: {}]   ;;  %s2071_s1 = inlined_call_operand.vmem [shape: f32[2,128,32], index: 1, kind: input, shape index: {}]   ;;  %s2072_s2 = inlined_call_operand.vmem [shape: f32[2,1,128], index: 2, kind: input, shape index: {}]   ;;  %s2073_s3 = inlined_call_operand.vmem [shape: bf16[32,32], index: 3, kind: input, shape index: {}]   ;;  %s2074_s4 = inlined_call_operand.vmem [shape: f32[1,32], index: 4, kind: input, shape index: {}]   ;;  %s2075_s5 = inlined_call_operand.vmem [shape: bf16[32,64], index: 5, kind: input, shape index: {}]   ;;  %s2076_s6 = inlined_call_operand.vmem [shape: f32[1,64], index: 6, kind: input, shape index: {}]   ;;  %s2077_s7 = inlined_call_operand.vmem [shape: bf16[32,32], index: 7, kind: input, shape index: {}]   ;;  %s2078_s8 = inlined_call_operand.vmem [shape: f32[1,32], index: 8, kind: input, shape index: {}]   ;;  %s2079_s9 = inlined_call_operand.vmem [shape: bf16[32,64], index: 9, kind: input, shape index: {}]   ;;  %s2080_s10 = inlined_call_operand.vmem [shape: f32[1,64], index: 10, kind: input, shape index: {}]   ;;  %s2081_s11 = inlined_call_operand.vmem [shape: bf16[64,32], index: 11, kind: input, shape index: {}]   ;;  %s2082_s12 = inlined_call_operand.vmem [shape: f32[1,32], index: 12, kind: input, shape index: {}]   ;;  %s2083_s13 = inlined_call_operand.vmem [shape: f32[1,32], index: 13, kind: input, shape index: {}]   ;;  %s2084_s14 = inlined_call_operand.vmem [shape: f32[1,32], index: 14, kind: input, shape index: {}]   ;;  %s2085_s15 = inlined_call_operand.vmem [shape: f32[1,32], index: 15, kind: input, shape index: {}]   ;;  %s2086_s16 = inlined_call_operand.vmem [shape: f32[1,32], index: 16, kind: input, shape index: {}]   ;;  %s2087_s17 = inlined_call_operand.hbm [shape: f32[2,8,32], index: 17, kind: output, shape index: {0}]   ;;  %s2088_s18 = inlined_call_operand.hbm [shape: f32[2,8,128], index: 18, kind: output, shape index: {1}]  }
   0x1   :  { %2092 = sst [smem:[#allocation8_spill]] %s2070_s0 }
   0x2   :  { %2093 = sst [smem:[#allocation9_spill]] %s2071_s1 }
   0x3   :  { %2094 = sst [smem:[#allocation10_spill]] %s2072_s2 }
   0x4   :  { %24 = vsyncpa [#allocation3], 0  ;;  %v1313_v0 = vld [vmem:[%s2075_s5 + $0x8] sm:$0xff]  ;;  %v1312_v1 = vld [vmem:[%s2075_s5] sm:$0xff]  ;;  %s2095_s1 = sld [smem:[#allocation9_spill]]  ;;  %vm116_vm0 = vcmask 261120  }
   0x5   :  { %224 = vmatpush.bf16.msra.mxu1 %v1313_v0  ;;  %1322 = vmatpush.bf16.msra.mxu2 %v1313_v0 }
   0x9   :  { %225 = vmatpush.bf16.msra.mxu1 %v1312_v1  ;;  %1323 = vmatpush.bf16.msra.mxu2 %v1312_v1 }
   0xa   :  { %v63_v2 = vld [vmem:[%s2095_s1] sm:$0xff]  ;;  %v64_v3 = vld [vmem:[%s2095_s1 + $0x8] sm:$0xff]  ;;  %v85_v4 = vld [vmem:[%s2095_s1 + $0xb0] sm:$0xff] }
   0xb   :  { %v86_v5 = vld [vmem:[%s2095_s1 + $0xb8] sm:$0xff]  ;;  %v134_v6 = vpack.c.bf16 %v64_v3, %v63_v2 }
   0xc   :  { %v145_v7 = vpack.c.bf16 %v86_v5, %v85_v4 }
   0xd   :  { %25 = vsyncpa [#allocation5], 0  ;;  %1255 = vmatmul.msk.bf16.vlgmr.msra.gmra.mxu1 %vm116_vm0, %v134_v6  ;;  %v65_v8 = vld [vmem:[%s2095_s1 + $0x10] sm:$0xff]  ;;  %v66_v9 = vld [vmem:[%s2095_s1 + $0x18] sm:$0xff]  ;;  %s2096_s20 = sld [smem:[#allocation8_spill]]  ;;  %vm469_vm1 = vcmask 130048  }
   0xe   :  { %1266 = vmatmul.msk.bf16.vlgmr.msra.gmra.mxu2 %vm116_vm0, %v145_v7  ;;  %v87_v10 = vld [vmem:[%s2095_s1 + $0xc0] sm:$0xff]  ;;  %v88_v11 = vld [vmem:[%s2095_s1 + $0xc8] sm:$0xff]  ;;  %v135_v12 = vpack.c.bf16 %v66_v9, %v65_v8  ;;  %v89_v16 = vld [vmem:[%s2095_s1 + $0xd0] sm:$0xff]  ;;  %s2097_s21 = sld [smem:[#allocation10_spill]]  ;;  %s1425_s23 = smov 16   ;;  %vm1124_vm9 = vcmask 523264  }
   0xf   :  { %v146_v13 = vpack.c.bf16 %v88_v11, %v87_v10  ;;  %v67_v14 = vld [vmem:[%s2095_s1 + $0x20] sm:$0xff]  ;;  %v68_v15 = vld [vmem:[%s2095_s1 + $0x28] sm:$0xff]  ;;  %v90_v17 = vld [vmem:[%s2095_s1 + $0xd8] sm:$0xff]  ;;  %s1221_s27 = sshll.u32 %s2088_s18, 4  ;;  %s1428_s28 = smov 128   ;;  %s1222_s27 = int_to_ptr.hbm [resolvable:$true] %s1221_s27 }
  0x10   :  { %v136_v18 = vpack.c.bf16 %v68_v15, %v67_v14  ;;  %v147_v19 = vpack.c.bf16 %v90_v17, %v89_v16  ;;  %v69_v20 = vld [vmem:[%s2095_s1 + $0x30] sm:$0xff]  ;;  %v70_v21 = vld [vmem:[%s2095_s1 + $0x38] sm:$0xff]  ;;  %v91_v22 = vld [vmem:[%s2095_s1 + $0xe0] sm:$0xff] }
  0x11   :  { %v92_v23 = vld [vmem:[%s2095_s1 + $0xe8] sm:$0xff]  ;;  %v137_v24 = vpack.c.bf16 %v70_v21, %v69_v20  ;;  %v71_v26 = vld [vmem:[%s2095_s1 + $0x40] sm:$0xff]  ;;  %v93_v28 = vld [vmem:[%s2095_s1 + $0xf0] sm:$0xff] }
  0x12   :  { %v148_v25 = vpack.c.bf16 %v92_v23, %v91_v22  ;;  %v72_v27 = vld [vmem:[%s2095_s1 + $0x48] sm:$0xff]  ;;  %v94_v29 = vld [vmem:[%s2095_s1 + $0xf8] sm:$0xff]  ;;  %v73_v32 = vld [vmem:[%s2095_s1 + $0x50] sm:$0xff] }
  0x13   :  { %v138_v30 = vpack.c.bf16 %v72_v27, %v71_v26  ;;  %v149_v31 = vpack.c.bf16 %v94_v29, %v93_v28  ;;  %v74_v33 = vld [vmem:[%s2095_s1 + $0x58] sm:$0xff]  ;;  %v75_v35 = vld [vmem:[%s2095_s1 + $0x60] sm:$0xff]  ;;  %v76_v36 = vld [vmem:[%s2095_s1 + $0x68] sm:$0xff] }
  0x14   :  { %v139_v34 = vpack.c.bf16 %v74_v33, %v73_v32  ;;  %v140_v37 = vpack.c.bf16 %v76_v36, %v75_v35  ;;  %v77_v38 = vld [vmem:[%s2095_s1 + $0x70] sm:$0xff]  ;;  %v78_v39 = vld [vmem:[%s2095_s1 + $0x78] sm:$0xff]  ;;  %v1311_v41 = vld [vmem:[%s2073_s3 + $0x8] sm:$0xff] }
  0x15   :  { %v141_v40 = vpack.c.bf16 %v78_v39, %v77_v38  ;;  %126 = vmatpush.bf16.msra.mxu0 %v1311_v41  ;;  %v79_v42 = vld [vmem:[%s2095_s1 + $0x80] sm:$0xff]  ;;  %v80_v43 = vld [vmem:[%s2095_s1 + $0x88] sm:$0xff]  ;;  %v81_v58 = vld [vmem:[%s2095_s1 + $0x90] sm:$0xff] }
  0x16   :  { %v1310_v44 = vld [vmem:[%s2073_s3] sm:$0xff]  ;;  %v62_v46 = vld [vmem:[%s2096_s20 + $0x8] sm:$0xff]  ;;  %v142_v47 = vpack.c.bf16 %v80_v43, %v79_v42  ;;  %v82_v59 = vld [vmem:[%s2095_s1 + $0x98] sm:$0xff] }
  0x17   :  { %v61_v45 = vld [vmem:[%s2096_s20] sm:$0xff]  ;;  %v143_v1 = vpack.c.bf16 %v82_v59, %v81_v58  ;;  %v84_v16 = vld [vmem:[%s2095_s1 + $0xa8] sm:$0xff] }
  0x18   :  { %v95_v48 = vpack.c.bf16 %v62_v46, %v61_v45  ;;  %v1644_v50 = vld [vmem:[%s2076_s6] ss:$0 sm:$0xff] }
  0x19   :  { %127 = vmatpush.bf16.msra.mxu0 %v1310_v44  ;;  %v83_v15 = vld [vmem:[%s2095_s1 + $0xa0] sm:$0xff]  ;;  %s1423_s1 = smov 112  }
  0x1a   :  { %v144_v22 = vpack.c.bf16 %v84_v16, %v83_v15 }
  0x1c   :  { %1246 = vmatmul.msk.bf16.vlgmr.msra.gmra.mxu0 %vm116_vm0, %v95_v48 }
  0x1d   :  { %1256 = vmatmul.msk.bf16.gmra.mxu1 %vm116_vm0, %v135_v12 }
  0x1e   :  { %1267 = vmatmul.msk.bf16.gmra.mxu2 %vm116_vm0, %v146_v13 }
  0x2d   :  { %1257 = vmatmul.msk.bf16.gmra.mxu1 %vm116_vm0, %v136_v18 }
  0x2e   :  { %1268 = vmatmul.msk.bf16.gmra.mxu2 %vm116_vm0, %v147_v19 }
  0x3d   :  { %1258 = vmatmul.msk.bf16.gmra.mxu1 %vm116_vm0, %v137_v24 }
  0x3e   :  { %1269 = vmatmul.msk.bf16.gmra.mxu2 %vm116_vm0, %v148_v25 }
  0x4d   :  { %1259 = vmatmul.msk.bf16.gmra.mxu1 %vm116_vm0, %v138_v30 }
  0x4e   :  { %1270 = vmatmul.msk.bf16.gmra.mxu2 %vm116_vm0, %v149_v31 }
  0x5d   :  { %1260 = vmatmul.msk.bf16.gmra.mxu1 %vm116_vm0, %v139_v34 }
  0x6d   :  { %1261 = vmatmul.msk.bf16.gmra.mxu1 %vm116_vm0, %v140_v37 }
  0x7d   :  { %1262 = vmatmul.msk.bf16.gmra.mxu1 %vm116_vm0, %v141_v40 }
  0x8a   :  { %v227_v49 = vpop.f32.mrf.mxu1 }
  0x8b   :  { %v228_v51 = vadd.f32 %v1644_v50, %v227_v49 }
  0x8d   :  { %1263 = vmatmul.msk.bf16.gmra.mxu1 %vm116_vm0, %v142_v47  ;;  %v1649_v54 = vpack.c.bf16 %v228_v51, %v228_v51 }
  0x8f   :  { %v445_v60 = vunpack.c.l.b16 %v1649_v54 }
  0x91   :  { %v282_v52 = vpop.f32.mrf.mxu2 }
  0x92   :  { %v229_v53 = vpop.f32.mrf.mxu1  ;;  %v283_v56 = vadd.f32 %v1644_v50, %v282_v52 }
  0x93   :  { %v230_v55 = vadd.f32 %v1644_v50, %v229_v53 }
  0x94   :  { %v1663_v63 = vpack.c.bf16 %v283_v56, %v283_v56 }
  0x95   :  { %v1653_v57 = vpack.c.bf16 %v230_v55, %v230_v55 }
  0x96   :  { %v516_v5 = vunpack.c.l.b16 %v1663_v63 }
  0x97   :  { %v446_v61 = vunpack.c.l.b16 %v1653_v57 }
  0x99   :  { %v284_v62 = vpop.f32.mrf.mxu2  ;;  %v1666_v2 = vpack.c.b16 %v446_v61, %v445_v60 }
  0x9a   :  { %v285_v0 = vadd.f32 %v1644_v50, %v284_v62  ;;  %v232_v3 = vpop.f32.mrf.mxu1 }
  0x9b   :  { %v233_v7 = vadd.f32 %v1644_v50, %v232_v3 }
  0x9c   :  { %v1668_v4 = vpack.c.bf16 %v285_v0, %v285_v0 }
  0x9d   :  { %1264 = vmatmul.msk.bf16.gmra.mxu1 %vm116_vm0, %v143_v1  ;;  %v1676_v11 = vpack.c.bf16 %v233_v7, %v233_v7 }
  0x9e   :  { %v517_v6 = vunpack.c.l.b16 %v1668_v4 }
  0x9f   :  { %v447_v17 = vunpack.c.l.b16 %v1676_v11 }
  0xa0   :  { %v1674_v9 = vpack.c.b16 %v517_v6, %v516_v5 }
  0xa1   :  { %v287_v8 = vpop.f32.mrf.mxu2 }
  0xa2   :  { %v234_v10 = vpop.f32.mrf.mxu1  ;;  %v288_v13 = vadd.f32 %v1644_v50, %v287_v8 }
  0xa3   :  { %v235_v12 = vadd.f32 %v1644_v50, %v234_v10 }
  0xa4   :  { %v1690_v20 = vpack.c.bf16 %v288_v13, %v288_v13 }
  0xa5   :  { %v1680_v14 = vpack.c.bf16 %v235_v12, %v235_v12 }
  0xa6   :  { %v518_v26 = vunpack.c.l.b16 %v1690_v20 }
  0xa7   :  { %v448_v18 = vunpack.c.l.b16 %v1680_v14 }
  0xa9   :  { %v289_v19 = vpop.f32.mrf.mxu2  ;;  %v1693_v23 = vpack.c.b16 %v448_v18, %v447_v17 }
  0xaa   :  { %v290_v21 = vadd.f32 %v1644_v50, %v289_v19  ;;  %v237_v24 = vpop.f32.mrf.mxu1 }
  0xab   :  { %v238_v28 = vadd.f32 %v1644_v50, %v237_v24 }
  0xac   :  { %v1695_v25 = vpack.c.bf16 %v290_v21, %v290_v21 }
  0xad   :  { %1265 = vmatmul.msk.bf16.gmra.mxu1 %vm116_vm0, %v144_v22  ;;  %v1704_v33 = vpack.c.bf16 %v238_v28, %v238_v28 }
  0xae   :  { %v519_v27 = vunpack.c.l.b16 %v1695_v25 }
  0xaf   :  { %v449_v37 = vunpack.c.l.b16 %v1704_v33 }
  0xb0   :  { %v1702_v31 = vpack.c.b16 %v519_v27, %v518_v26 }
  0xb1   :  { %v292_v29 = vpop.f32.mrf.mxu2 }
  0xb2   :  { %v293_v30 = vadd.f32 %v1644_v50, %v292_v29  ;;  %v239_v32 = vpop.f32.mrf.mxu1 }
  0xb3   :  { %v240_v35 = vadd.f32 %v1644_v50, %v239_v32 }
  0xb4   :  { %v1706_v34 = vpack.c.bf16 %v293_v30, %v293_v30 }
  0xb5   :  { %v1709_v36 = vpack.c.bf16 %v240_v35, %v240_v35 }
  0xb6   :  { %433 = vrot.lane.b32.xlu1 %v1706_v34, %s1423_s1  ;;  %v520_v22 = vunpack.c.l.b16 %v1706_v34 }
  0xb7   :  { %v450_v38 = vunpack.c.l.b16 %v1709_v36 }
  0xb9   :  { %v294_v39 = vpop.f32.mrf.mxu2  ;;  %v1716_v41 = vpack.c.b16 %v450_v38, %v449_v37  ;;  %v550_v38 = vsel %vm469_vm1, %v1702_v31, 0 }
  0xba   :  { %v295_v40 = vadd.f32 %v1644_v50, %v294_v39  ;;  %v242_v42 = vpop.f32.mrf.mxu1 }
  0xbb   :  { %v243_v19 = vadd.f32 %v1644_v50, %v242_v42 }
  0xbc   :  { %v338_v43 = vpack.c.bf16 %v295_v40, %v295_v40 }
  0xbd   :  { %v1753_v27 = vpack.c.bf16 %v243_v19, %v243_v19 }
  0xbe   :  { %435 = vrot.lane.b32.xlu2 %v338_v43, %s1423_s1  ;;  %v521_v24 = vunpack.c.l.b16 %v338_v43  ;;  %v547_v43 = vsel %vm469_vm1, %v1674_v9, 0 }
  0xbf   :  { %v451_v19 = vunpack.c.l.b16 %v1753_v27 }
  0xc0   :  { %v1758_v30 = vpack.c.b16 %v521_v24, %v520_v22 }
  0xc1   :  { %v297_v44 = vpop.f32.mrf.mxu2 }
  0xc2   :  { %v298_v45 = vadd.f32 %v1644_v50, %v297_v44  ;;  %v1720_v46 = vpop.f32.mrf.mxu1  ;;  %v553_v32 = vsel %vm469_vm1, %v1758_v30, 0 }
  0xc4   :  { %v339_v47 = vpack.c.bf16 %v298_v45, %v298_v45 }
  0xc6   :  { %437 = vrot.lane.b32.xlu0 %v339_v47, %s1423_s1  ;;  %v522_v6 = vunpack.c.l.b16 %v339_v47 }
  0xc9   :  { %v299_v48 = vpop.f32.mrf.mxu2 }
  0xca   :  { %v300_v49 = vadd.f32 %v1644_v50, %v299_v48  ;;  %v1724_v51 = vpop.f32.mrf.mxu1 }
  0xcc   :  { %v340_v52 = vpack.c.bf16 %v300_v49, %v300_v49 }
  0xce   :  { %439 = vrot.lane.b32.xlu1 %v340_v52, %s1423_s1  ;;  %v523_v7 = vunpack.c.l.b16 %v340_v52 }
  0xd0   :  { %v1744_v17 = vpack.c.b16 %v523_v7, %v522_v6 }
  0xd1   :  { %v302_v53 = vpop.f32.mrf.mxu2 }
  0xd2   :  { %v303_v55 = vadd.f32 %v1644_v50, %v302_v53  ;;  %v249_v56 = vpop.f32.mrf.mxu1  ;;  %v556_v21 = vsel %vm469_vm1, %v1744_v17, 0 }
  0xd3   :  { %v250_v8 = vadd.f32 %v1644_v50, %v249_v56 }
  0xd4   :  { %v341_v58 = vpack.c.bf16 %v303_v55, %v303_v55 }
  0xd5   :  { %v1741_v15 = vpack.c.bf16 %v250_v8, %v250_v8 }
  0xd6   :  { %441 = vrot.lane.b32.xlu1 %v341_v58, %s1423_s1  ;;  %v524_v62 = vunpack.c.l.b16 %v341_v58 }
  0xd9   :  { %v304_v59 = vpop.f32.mrf.mxu2 }
  0xda   :  { %v305_v60 = vadd.f32 %v1644_v50, %v304_v59  ;;  %v252_v61 = vpop.f32.mrf.mxu1 }
  0xdb   :  { %v253_v1 = vadd.f32 %v1644_v50, %v252_v61 }
  0xdc   :  { %v342_v0 = vpack.c.bf16 %v305_v60, %v305_v60 }
  0xdd   :  { %v1731_v5 = vpack.c.bf16 %v253_v1, %v253_v1 }
  0xde   :  { %v525_v3 = vunpack.c.l.b16 %v342_v0  ;;  %443 = vrot.lane.b32.xlu1 %v342_v0, %s1423_s1 }
  0xdf   :  { %401 = vrot.lane.b32.xlu2 %v1731_v5, %s1423_s1 }
  0xe0   :  { %v1737_v10 = vpack.c.b16 %v525_v3, %v524_v62  ;;  %v455_v62 = vunpack.c.l.b16 %v1731_v5  ;;  %v454_v3 = vunpack.c.l.b16 %v1741_v15 }
  0xe2   :  { %v559_v12 = vsel %vm469_vm1, %v1737_v10, 0  ;;  %v254_v13 = vpop.f32.mrf.mxu1 }
  0xe3   :  { %561 = vmatpush.bf16.xpose.msra.mxu3 %v559_v12  ;;  %v255_v16 = vadd.f32 %v1644_v50, %v254_v13  ;;  %v129_v12 = vpop.f32.mrf.mxu0 }
  0xe5   :  { %v322_v18 = vpack.c.bf16 %v255_v16, %v255_v16 }
  0xe6   :  { %399 = vrot.lane.b32.xlu1 %v1741_v15, %s1423_s1 }
  0xe7   :  { %403 = vrot.lane.b32.xlu0 %v322_v18, %s1423_s1  ;;  %v456_v61 = vunpack.c.l.b16 %v322_v18 }
  0xe9   :  { %v1798_v0 = vpack.c.b16 %v456_v61, %v455_v62 }
  0xea   :  { %v257_v26 = vpop.f32.mrf.mxu1 }
  0xeb   :  { %562 = vmatpush.bf16.xpose.msra.mxu3 %v556_v21  ;;  %v258_v28 = vadd.f32 %v1644_v50, %v257_v26  ;;  %v489_v6 = vsel %vm469_vm1, %v1798_v0, 0 }
  0xed   :  { %v323_v29 = vpack.c.bf16 %v258_v28, %v258_v28 }
  0xee   :  { %393 = vrot.lane.b32.xlu1 %v1753_v27, %s1423_s1 }
  0xef   :  { %405 = vrot.lane.b32.xlu2 %v323_v29, %s1423_s1  ;;  %v457_v58 = vunpack.c.l.b16 %v323_v29 }
  0xf2   :  { %v259_v35 = vpop.f32.mrf.mxu1 }
  0xf3   :  { %563 = vmatpush.bf16.xpose.msra.mxu3 %v553_v32  ;;  %v260_v34 = vadd.f32 %v1644_v50, %v259_v35  ;;  %v480_v32 = vsel %vm469_vm1, %v1716_v41, 0 }
  0xf5   :  { %v324_v37 = vpack.c.bf16 %v260_v34, %v260_v34 }
  0xf6   :  { %427 = vrot.lane.b32.xlu1 %v1668_v4, %s1423_s1  ;;  %v245_v4 = vadd.f32 %v1644_v50, %v1720_v46 }
  0xf7   :  { %407 = vrot.lane.b32.xlu2 %v324_v37, %s1423_s1  ;;  %v458_v53 = vunpack.c.l.b16 %v324_v37 }
  0xf8   :  { %v318_v47 = vpack.c.bf16 %v245_v4, %v245_v4 }
  0xf9   :  { %v1791_v59 = vpack.c.b16 %v458_v53, %v457_v58 }
  0xfa   :  { %v262_v39 = vpop.f32.mrf.mxu1  ;;  %v452_v15 = vunpack.c.l.b16 %v318_v47 }
  0xfb   :  { %564 = vmatpush.bf16.xpose.msra.mxu3 %v550_v38  ;;  %v263_v40 = vadd.f32 %v1644_v50, %v262_v39 }
  0xfd   :  { %v325_v42 = vpack.c.bf16 %v263_v40, %v263_v40 }
  0xfe   :  { %387 = vrot.lane.b32.xlu1 %v1680_v14, %s1423_s1  ;;  %v248_v14 = vadd.f32 %v1644_v50, %v1724_v51  ;;  %v492_v51 = vsel %vm469_vm1, %v1791_v59, 0 }
  0xff   :  { %409 = vrot.lane.b32.xlu0 %v325_v42, %s1423_s1  ;;  %429 = vrot.lane.b32.xlu2 %v1690_v20, %s1423_s1  ;;  %v459_v49 = vunpack.c.l.b16 %v325_v42 }
 0x100   :  { %v319_v56 = vpack.c.bf16 %v248_v14, %v248_v14 }
 0x102   :  { %v264_v44 = vpop.f32.mrf.mxu1  ;;  %v453_v7 = vunpack.c.l.b16 %v319_v56 }
 0x103   :  { %565 = vmatpush.bf16.xpose.msra.mxu3 %v547_v43  ;;  %v265_v45 = vadd.f32 %v1644_v50, %v264_v44  ;;  %v477_v44 = vsel %vm469_vm1, %v1693_v23, 0 }
 0x104   :  { %v1807_v5 = vpack.c.b16 %v454_v3, %v453_v7 }
 0x105   :  { %v326_v48 = vpack.c.bf16 %v265_v45, %v265_v45 }
 0x106   :  { %v486_v16 = vsel %vm469_vm1, %v1807_v5, 0 }
 0x107   :  { %v460_v52 = vunpack.c.l.b16 %v326_v48  ;;  %411 = vrot.lane.b32.xlu0 %v326_v48, %s1423_s1  ;;  %395 = vrot.lane.b32.xlu2 %v318_v47, %s1423_s1 }
 0x109   :  { %v1784_v20 = vpack.c.b16 %v460_v52, %v459_v49 }
 0x10a   :  { %v267_v46 = vpop.f32.mrf.mxu1 }
 0x10b   :  { %v495_v55 = vsel %vm469_vm1, %v1784_v20, 0  ;;  %v268_v42 = vadd.f32 %v1644_v50, %v267_v46 }
 0x10c   :  { %497 = vmatpush.bf16.xpose.msrb.mxu2 %v495_v55  ;;  %v474_v55 = vsel %vm469_vm1, %v1666_v2, 0 }
 0x10d   :  { %v327_v52 = vpack.c.bf16 %v268_v42, %v268_v42 }
 0x10f   :  { %397 = vrot.lane.b32.xlu0 %v319_v56, %s1423_s1  ;;  %389 = vrot.lane.b32.xlu2 %v1704_v33, %s1423_s1  ;;  %v510_v56 = vunpack.c.l.b16 %v327_v52 }
 0x112   :  { %v269_v60 = vpop.f32.mrf.mxu1 }
 0x113   :  { %v270_v4 = vadd.f32 %v1644_v50, %v269_v60 }
 0x114   :  { %498 = vmatpush.bf16.xpose.msrb.mxu2 %v492_v51 }
 0x117   :  { %431 = vrot.lane.b32.xlu0 %v1695_v25, %s1423_s1  ;;  %v1333_v25 = vld [vmem:[%s2074_s4] ss:$0 sm:$0xff]  ;;  %s1424_s4 = smov 96  }
 0x118   :  { %v130_v18 = vadd.f32 %v1333_v25, %v129_v12  ;;  %v1834_v39 = vpop.permute.xlu2 %435 }
 0x11a   :  { %v272_v1 = vpop.f32.mrf.mxu1  ;;  %v307_v21 = vmul.f32 0.25, %v130_v18 }
 0x11b   :  { %v273_v33 = vadd.f32 %v1644_v50, %v272_v1 }
 0x11c   :  { %499 = vmatpush.bf16.xpose.msrb.mxu2 %v489_v6  ;;  %v309_v28 = vpack.c.bf16 %v307_v21, %v307_v21 }
 0x11d   :  { %v329_v8 = vpack.c.bf16 %v273_v33, %v273_v33 }
 0x11f   :  { %425 = vrot.lane.b32.xlu0 %v1663_v63, %s1423_s1  ;;  %417 = vrot.lane.b32.xlu2 %v329_v8, %s1423_s1  ;;  %v1819_v63 = vpack.c.b16 %v452_v15, %v451_v19  ;;  %v512_v45 = vunpack.c.l.b16 %v329_v8 }
 0x121   :  { %v483_v26 = vsel %vm469_vm1, %v1819_v63, 0 }
 0x122   :  { %v274_v13 = vpop.f32.mrf.mxu1 }
 0x124   :  { %500 = vmatpush.bf16.xpose.msrb.mxu2 %v486_v16 }
 0x127   :  { %391 = vrot.lane.b32.xlu0 %v1709_v36, %s1423_s1  ;;  %383 = vrot.lane.b32.xlu2 %v1653_v57, %s1423_s1  ;;  %v275_v57 = vadd.f32 %v1644_v50, %v274_v13 }
 0x128   :  { %v1832_v38 = vpop.permute.xlu1 %433 }
 0x129   :  { %v330_v35 = vpack.c.bf16 %v275_v57, %v275_v57  ;;  %v648_v15 = vunpack.c.l.b16 %v1832_v38 }
 0x12a   :  { %v277_v22 = vpop.f32.mrf.mxu1 }
 0x12b   :  { %v278_v24 = vadd.f32 %v1644_v50, %v277_v22  ;;  %v513_v47 = vunpack.c.l.b16 %v330_v35 }
 0x12c   :  { %501 = vmatpush.bf16.xpose.msrb.mxu2 %v483_v26 }
 0x12d   :  { %v331_v29 = vpack.c.bf16 %v278_v24, %v278_v24 }
 0x12f   :  { %421 = vrot.lane.b32.xlu1 %v331_v29, %s1423_s1  ;;  %385 = vrot.lane.b32.xlu0 %v1676_v11, %s1423_s1  ;;  %v514_v34 = vunpack.c.l.b16 %v331_v29  ;;  %v131_v11 = vpop.f32.mrf.mxu0 }
 0x130   :  { %345 = vrot.lane.b32.xlu2 %v309_v28, %s1423_s1  ;;  %v132_v49 = vadd.f32 %v1333_v25, %v131_v11 }
 0x132   :  { %v279_v36 = vpop.f32.mrf.mxu1  ;;  %v308_v46 = vmul.f32 0.25, %v132_v49 }
 0x133   :  { %v280_v27 = vadd.f32 %v1644_v50, %v279_v36  ;;  %v1847_v50 = vpack.c.b16 %v513_v47, %v512_v45 }
 0x134   :  { %502 = vmatpush.bf16.xpose.msrb.mxu2 %v480_v32  ;;  %v310_v60 = vpack.c.bf16 %v308_v46, %v308_v46 }
 0x135   :  { %v332_v37 = vpack.c.bf16 %v280_v27, %v280_v27  ;;  %v541_v61 = vsel %vm469_vm1, %v1847_v50, 0 }
 0x137   :  { %v515_v40 = vunpack.c.l.b16 %v332_v37  ;;  %419 = vrot.lane.b32.xlu0 %v330_v35, %s1423_s1  ;;  %381 = vrot.lane.b32.xlu1 %v1649_v54, %s1423_s1  ;;  %v328_v54 = vpack.c.bf16 %v270_v4, %v270_v4 }
 0x138   :  { %423 = vrot.lane.b32.xlu2 %v332_v37, %s1423_s1  ;;  %v438_v6 = vpop.permute.xlu0 %437 }
 0x139   :  { %v528_v43 = vpack.c.b16 %v515_v40, %v514_v34  ;;  %v1851_v53 = vpop.permute.xlu2 %401  ;;  %v511_v58 = vunpack.c.l.b16 %v328_v54 }
 0x13a   :  { %v584_v29 = vunpack.c.l.b16 %v1851_v53 }
 0x13b   :  { %v544_v48 = vsel %vm469_vm1, %v528_v43, 0 }
 0x13c   :  { %503 = vmatpush.bf16.xpose.msrb.mxu2 %v477_v44  ;;  %566 = vmatpush.bf16.xpose.msra.mxu3 %v544_v48 }
 0x13f   :  { %413 = vrot.lane.b32.xlu0 %v327_v52, %s1423_s1  ;;  %415 = vrot.lane.b32.xlu1 %v328_v54, %s1423_s1 }
 0x140   :  { %v440_v14 = vpop.permute.xlu1 %439  ;;  %784 = vrot.lane.b32.xlu2 %v1791_v59, %s1424_s4  ;;  %v1860_v59 = vpack.c.b16 %v511_v58, %v510_v56 }
 0x141   :  { %v651_v7 = vunpack.c.l.b16 %v440_v14 }
 0x142   :  { %v538_v1 = vsel %vm469_vm1, %v1860_v59, 0 }
 0x144   :  { %504 = vmatpush.bf16.xpose.msrb.mxu2 %v474_v55  ;;  %567 = vmatpush.bf16.xpose.msra.mxu3 %v541_v61 }
 0x147   :  { %786 = vrot.lane.b32.xlu1 %v1784_v20, %s1424_s4  ;;  %347 = vrot.lane.b32.xlu0 %v310_v60, %s1423_s1  ;;  %s1429_s1 = smov 8  }
 0x148   :  { %v442_v51 = vpop.permute.xlu1 %441  ;;  %780 = vrot.lane.b32.xlu2 %v1807_v5, %s1424_s4  ;;  %v650_v5 = vunpack.c.l.b16 %v438_v6 }
 0x149   :  { %v406_v62 = vpop.permute.xlu2 %405  ;;  %v652_v3 = vunpack.c.l.b16 %v442_v51 }
 0x14a   :  { %v660_v13 = vpack.c.b16 %v651_v7, %v650_v5  ;;  %v586_v27 = vunpack.c.l.b16 %v406_v62 }
 0x14b   :  { %1271 = vmatmul.msk.bf16.vlgmr.msrb.gmra.mxu2 %vm469_vm1, %v309_v28 }
 0x14c   :  { %568 = vmatpush.bf16.xpose.msra.mxu3 %v538_v1 }
 0x14f   :  { %782 = vrot.lane.b32.xlu1 %v1798_v0, %s1424_s4  ;;  %823 = vrot.lane.b32.xlu0 %v1737_v10, %s1424_s4  ;;  %v684_v10 = vsel %vm469_vm1, %v660_v13, 0  ;;  %v649_v0 = vunpack.c.l.b16 %v1834_v39 }
 0x150   :  { %v444_v33 = vpop.permute.xlu1 %443  ;;  %778 = vrot.lane.b32.xlu2 %v1819_v63, %s1424_s4 }
 0x151   :  { %v653_v20 = vunpack.c.l.b16 %v444_v33  ;;  %v408_v25 = vpop.permute.xlu2 %407  ;;  %v659_v18 = vpack.c.b16 %v649_v0, %v648_v15 }
 0x153   :  { %v661_v8 = vpack.c.b16 %v653_v20, %v652_v3  ;;  %1272 = vmatmul.msk.bf16.vlgmr.msra.gmra.mxu3 %vm469_vm1, %v310_v60 }
 0x155   :  { %v687_v12 = vsel %vm469_vm1, %v661_v8, 0 }
 0x156   :  { %689 = vmatpush.bf16.xpose.msra.mxu2 %v687_v12 }
 0x157   :  { %821 = vrot.lane.b32.xlu0 %v1744_v17, %s1424_s4  ;;  %897 = vrot.lane.b32.xlu1 %v661_v8, %s1424_s4  ;;  %v681_v17 = vsel %vm469_vm1, %v659_v18, 0 }
 0x158   :  { %817 = vrot.lane.b32.xlu2 %v1702_v31, %s1424_s4  ;;  %v400_v28 = vpop.permute.xlu1 %399 }
 0x159   :  { %v430_v16 = vpop.permute.xlu2 %429  ;;  %v404_v31 = vpop.permute.xlu0 %403 }
 0x15a   :  { %v585_v22 = vunpack.c.l.b16 %v404_v31  ;;  %v646_v40 = vunpack.c.l.b16 %v430_v16 }
 0x15c   :  { %v595_v36 = vpack.c.b16 %v585_v22, %v584_v29 }
 0x15e   :  { %690 = vmatpush.bf16.xpose.msra.mxu2 %v684_v10  ;;  %v617_v47 = vsel %vm469_vm1, %v595_v36, 0 }
 0x15f   :  { %819 = vrot.lane.b32.xlu0 %v1758_v30, %s1424_s4 }
 0x160   :  { %776 = vrot.lane.b32.xlu2 %v1716_v41, %s1424_s4  ;;  %v394_v37 = vpop.permute.xlu1 %393 }
 0x161   :  { %v396_v19 = vpop.permute.xlu2 %395  ;;  %v580_v60 = vunpack.c.l.b16 %v394_v37 }
 0x162   :  { %v581_v55 = vunpack.c.l.b16 %v396_v19 }
 0x164   :  { %v593_v1 = vpack.c.b16 %v581_v55, %v580_v60 }
 0x166   :  { %691 = vmatpush.bf16.xpose.msra.mxu2 %v681_v17  ;;  %v611_v33 = vsel %vm469_vm1, %v593_v1, 0 }
 0x167   :  { %813 = vrot.lane.b32.xlu0 %v528_v43, %s1424_s4  ;;  %v583_v43 = vunpack.c.l.b16 %v400_v28 }
 0x168   :  { %815 = vrot.lane.b32.xlu2 %v1674_v9, %s1424_s4  ;;  %v587_v9 = vunpack.c.l.b16 %v408_v25  ;;  %v428_v49 = vpop.permute.xlu1 %427 }
 0x169   :  { %v1893_v63 = vpop.permute.xlu2 %389  ;;  %v645_v54 = vunpack.c.l.b16 %v428_v49  ;;  %v1335_v49 = vld [vmem:[%s2097_s21 + $0x1] ss:$0 sm:$0xff] }
 0x16a   :  { %v596_v34 = vpack.c.b16 %v587_v9, %v586_v27  ;;  %v578_v20 = vunpack.c.l.b16 %v1893_v63 }
 0x16c   :  { %v620_v38 = vsel %vm469_vm1, %v596_v34, 0 }
 0x170   :  { %774 = vrot.lane.b32.xlu2 %v1693_v23, %s1424_s4  ;;  %v388_v61 = vpop.permute.xlu1 %387 }
 0x171   :  { %v410_v30 = vpop.permute.xlu0 %409  ;;  %v577_v15 = vunpack.c.l.b16 %v388_v61 }
 0x172   :  { %v588_v24 = vunpack.c.l.b16 %v410_v30 }
 0x178   :  { %895 = vrot.lane.b32.xlu2 %v660_v13, %s1424_s4 }
 0x179   :  { %v412_v21 = vpop.permute.xlu0 %411  ;;  %v1896_v41 = vpop.permute.xlu2 %417 }
 0x17a   :  { %v589_v26 = vunpack.c.l.b16 %v412_v21  ;;  %v640_v17 = vunpack.c.l.b16 %v1896_v41 }
 0x17c   :  { %v597_v57 = vpack.c.b16 %v589_v26, %v588_v24 }
 0x17e   :  { %860 = vrot.lane.b32.xlu0 %v597_v57, %s1424_s4  ;;  %v623_v23 = vsel %vm469_vm1, %v597_v57, 0 }
 0x17f   :  { %625 = vmatpush.bf16.xpose.msrb.mxu0 %v623_v23 }
 0x180   :  { %856 = vrot.lane.b32.xlu2 %v595_v36, %s1424_s4 }
 0x181   :  { %v398_v32 = vpop.permute.xlu0 %397  ;;  %v1902_v35 = vpop.permute.xlu2 %383 }
 0x182   :  { %v582_v11 = vunpack.c.l.b16 %v398_v32  ;;  %v575_v26 = vunpack.c.l.b16 %v1902_v35 }
 0x184   :  { %v594_v45 = vpack.c.b16 %v583_v43, %v582_v11  ;;  %v1334_v43 = vld [vmem:[%s2097_s21] ss:$0 sm:$0xff] }
 0x186   :  { %893 = vrot.lane.b32.xlu0 %v659_v18, %s1424_s4  ;;  %v614_v56 = vsel %vm469_vm1, %v594_v45, 0 }
 0x187   :  { %626 = vmatpush.bf16.xpose.msrb.mxu0 %v620_v38 }
 0x188   :  { %858 = vrot.lane.b32.xlu2 %v596_v34, %s1424_s4 }
 0x189   :  { %v432_v39 = vpop.permute.xlu0 %431 }
 0x18a   :  { %v647_v42 = vunpack.c.l.b16 %v432_v39  ;;  %v1907_v4 = vpop.permute.xlu2 %345 }
 0x18c   :  { %v1909_v44 = vpack.c.b16 %v647_v42, %v646_v40 }
 0x18e   :  { %v678_v48 = vsel %vm469_vm1, %v1909_v44, 0 }
 0x18f   :  { %627 = vmatpush.bf16.xpose.msrb.mxu0 %v617_v47  ;;  %692 = vmatpush.bf16.xpose.msra.mxu2 %v678_v48 }
 0x190   :  { %854 = vrot.lane.b32.xlu2 %v594_v45, %s1424_s4 }
 0x191   :  { %v426_v52 = vpop.permute.xlu0 %425 }
 0x192   :  { %v644_v14 = vunpack.c.l.b16 %v426_v52  ;;  %v424_v46 = vpop.permute.xlu2 %423 }
 0x193   :  { %v643_v8 = vunpack.c.l.b16 %v424_v46 }
 0x194   :  { %v1915_v53 = vpack.c.b16 %v645_v54, %v644_v14 }
 0x196   :  { %v675_v58 = vsel %vm469_vm1, %v1915_v53, 0 }
 0x197   :  { %628 = vmatpush.bf16.xpose.msrb.mxu0 %v614_v56  ;;  %693 = vmatpush.bf16.xpose.msra.mxu2 %v675_v58 }
 0x198   :  { %811 = vrot.lane.b32.xlu2 %v1847_v50, %s1424_s4 }
 0x199   :  { %v392_v51 = vpop.permute.xlu0 %391 }
 0x19a   :  { %v785_v62 = vpop.permute.xlu2 %784  ;;  %v579_v3 = vunpack.c.l.b16 %v392_v51 }
 0x19c   :  { %v1925_v12 = vpack.c.b16 %v579_v3, %v578_v20 }
 0x19e   :  { %v608_v10 = vsel %vm469_vm1, %v1925_v12, 0 }
 0x19f   :  { %629 = vmatpush.bf16.xpose.msrb.mxu0 %v611_v33 }
 0x1a0   :  { %852 = vrot.lane.b32.xlu2 %v593_v1, %s1424_s4 }
 0x1a1   :  { %v422_v6 = vpop.permute.xlu1 %421  ;;  %v386_v7 = vpop.permute.xlu0 %385 }
 0x1a2   :  { %v642_v5 = vunpack.c.l.b16 %v422_v6  ;;  %v781_v25 = vpop.permute.xlu2 %780  ;;  %v576_v13 = vunpack.c.l.b16 %v386_v7 }
 0x1a4   :  { %v1927_v50 = vpack.c.b16 %v643_v8, %v642_v5  ;;  %v1934_v63 = vpack.c.b16 %v577_v15, %v576_v13 }
 0x1a6   :  { %v672_v0 = vsel %vm469_vm1, %v1927_v50, 0  ;;  %v605_v22 = vsel %vm469_vm1, %v1934_v63, 0 }
 0x1a7   :  { %630 = vmatpush.bf16.xpose.msrb.mxu0 %v608_v10  ;;  %694 = vmatpush.bf16.xpose.msra.mxu2 %v672_v0 }
 0x1a9   :  { %v420_v16 = vpop.permute.xlu0 %419  ;;  %v382_v18 = vpop.permute.xlu1 %381 }
 0x1aa   :  { %v641_v19 = vunpack.c.l.b16 %v420_v16  ;;  %v779_v31 = vpop.permute.xlu2 %778  ;;  %v574_v21 = vunpack.c.l.b16 %v382_v18 }
 0x1ac   :  { %v1936_v30 = vpack.c.b16 %v641_v19, %v640_v17  ;;  %v1943_v36 = vpack.c.b16 %v575_v26, %v574_v21 }
 0x1ae   :  { %v669_v24 = vsel %vm469_vm1, %v1936_v30, 0  ;;  %v602_v27 = vsel %vm469_vm1, %v1943_v36, 0 }
 0x1af   :  { %631 = vmatpush.bf16.xpose.msrb.mxu0 %v605_v22  ;;  %695 = vmatpush.bf16.xpose.msra.mxu2 %v669_v24 }
 0x1b1   :  { %v414_v28 = vpop.permute.xlu0 %413  ;;  %v416_v29 = vpop.permute.xlu1 %415 }
 0x1b2   :  { %v638_v41 = vunpack.c.l.b16 %v414_v28  ;;  %v639_v57 = vunpack.c.l.b16 %v416_v29  ;;  %v818_v9 = vpop.permute.xlu2 %817 }
 0x1b4   :  { %v1945_v23 = vpack.c.b16 %v639_v57, %v638_v41 }
 0x1b6   :  { %v666_v32 = vsel %vm469_vm1, %v1945_v23, 0 }
 0x1b7   :  { %632 = vmatpush.bf16.xpose.msrb.mxu0 %v602_v27  ;;  %696 = vmatpush.bf16.xpose.msra.mxu2 %v666_v32 }
 0x1b9   :  { %v787_v34 = vpop.permute.xlu1 %786  ;;  %v348_v37 = vpop.permute.xlu0 %347 }
 0x1ba   :  { %v777_v35 = vpop.permute.xlu2 %776  ;;  %796 = vmatpush.bf16.msrb.mxu3 %v787_v34 }
 0x1be   :  { %1273 = vmatmul.msk.bf16.vlgmr.msrb.gmra.mxu0 %vm469_vm1, %v1907_v4  ;;  %1274 = vmatmul.msk.bf16.vlgmr.msra.gmra.mxu2 %vm469_vm1, %v348_v37 }
 0x1bf   :  { %797 = vmatpush.bf16.msrb.mxu3 %v785_v62 }
 0x1c1   :  { %v783_v38 = vpop.permute.xlu1 %782  ;;  %v824_v39 = vpop.permute.xlu0 %823 }
 0x1c2   :  { %v816_v40 = vpop.permute.xlu2 %815  ;;  %833 = vmatpush.bf16.msra.mxu0 %v824_v39 }
 0x1c3   :  { %798 = vmatpush.bf16.msrb.mxu3 %v783_v38 }
 0x1c7   :  { %799 = vmatpush.bf16.msrb.mxu3 %v781_v25 }
 0x1c9   :  { %v822_v11 = vpop.permute.xlu0 %821  ;;  %v898_v62 = vpop.permute.xlu1 %897 }
 0x1ca   :  { %v775_v42 = vpop.permute.xlu2 %774  ;;  %834 = vmatpush.bf16.msra.mxu0 %v822_v11 }
 0x1cb   :  { %800 = vmatpush.bf16.msrb.mxu3 %v779_v31 }
 0x1ce   :  { %v506_v45 = vpop.f32.mrf.mxu2 }
 0x1cf   :  { %v710_v47 = vadd.f32 %v1334_v43, %v506_v45  ;;  %801 = vmatpush.bf16.msrb.mxu3 %v777_v35 }
 0x1d1   :  { %v820_v4 = vpop.permute.xlu0 %819  ;;  %714 = vmax.xlane.f32.xlu1 %v710_v47 }
 0x1d2   :  { %v1957_v48 = vpop.permute.xlu2 %895  ;;  %835 = vmatpush.bf16.msra.mxu0 %v820_v4 }
 0x1d3   :  { %802 = vmatpush.bf16.msrb.mxu3 %v775_v42 }
 0x1d6   :  { %v570_v52 = vpop.f32.mrf.mxu3  ;;  %836 = vmatpush.bf16.msra.mxu0 %v818_v9  ;;  %v508_v54 = vpop.f32.mrf.mxu2 }
 0x1d7   :  { %v711_v14 = vadd.f32 %v1335_v49, %v570_v52 }
 0x1d9   :  { %716 = vmax.xlane.f32.xlu2 %v711_v14  ;;  %v814_v55 = vpop.permute.xlu0 %813 }
 0x1da   :  { %v857_v46 = vpop.permute.xlu2 %856  ;;  %837 = vmatpush.bf16.msra.mxu0 %v816_v40 }
 0x1de   :  { %838 = vmatpush.bf16.msra.mxu0 %v814_v55  ;;  %v572_v56 = vpop.f32.mrf.mxu3 }
 0x1e2   :  { %v859_v58 = vpop.permute.xlu2 %858 }
 0x1ea   :  { %v855_v60 = vpop.permute.xlu2 %854  ;;  %772 = vrot.lane.b32.xlu1 %v1666_v2, %s1424_s4 }
 0x1f1   :  { %891 = vrot.lane.b32.xlu2 %v1909_v44, %s1424_s4 }
 0x1f2   :  { %v812_v61 = vpop.permute.xlu2 %811 }
 0x1f3   :  { %839 = vmatpush.bf16.msra.mxu0 %v812_v61 }
 0x1f9   :  { %850 = vrot.lane.b32.xlu2 %v1925_v12, %s1424_s4  ;;  %v861_v12 = vpop.permute.xlu0 %860 }
 0x1fa   :  { %v853_v44 = vpop.permute.xlu2 %852 }
 0x201   :  { %v894_v16 = vpop.permute.xlu0 %893 }
 0x23b   :  { %v634_v51 = vpop.f32.mrf.mxu0 }
 0x23c   :  { %v712_v1 = vadd.f32 %v1334_v43, %v634_v51 }
 0x23e   :  { %718 = vmax.xlane.f32.xlu0 %v712_v1 }
 0x241   :  { %v698_v3 = vpop.f32.mrf.mxu2 }
 0x242   :  { %v713_v33 = vadd.f32 %v1335_v49, %v698_v3 }
 0x243   :  { %v636_v20 = vpop.f32.mrf.mxu0 }
 0x244   :  { %v715_v6 = vpop.xlane.xlu1 %714  ;;  %720 = vmax.xlane.f32.xlu2 %v713_v33 }
 0x245   :  { %v722_v7 = vsub.f32 %v710_v47, %v715_v6 }
 0x247   :  { %v726_v8 = vmul.f32 1.442695, %v722_v7 }
 0x249   :  { %1343 = vpow2.f32 %v726_v8  ;;  %v700_v2 = vpop.f32.mrf.mxu2 }
 0x24c   :  { %v717_v13 = vpop.xlane.xlu2 %716 }
 0x24f   :  { %v1344_v5 = vpop.eup %1343 }
 0x250   :  { %734 = vadd.xlane.f32.xlu1 %v1344_v5 }
 0x252   :  { %809 = vrot.lane.b32.xlu0 %v1860_v59, %s1424_s4  ;;  %v723_v59 = vsub.f32 %v711_v14, %v717_v13 }
 0x254   :  { %v892_v10 = vpop.permute.xlu2 %891  ;;  %v728_v0 = vmul.f32 1.442695, %v723_v59 }
 0x256   :  { %1345 = vpow2.f32 %v728_v0 }
 0x25c   :  { %v773_v25 = vpop.permute.xlu1 %772  ;;  %889 = vrot.lane.b32.xlu2 %v1915_v53, %s1424_s4  ;;  %v851_v15 = vpop.permute.xlu2 %850 }
 0x25d   :  { %803 = vmatpush.bf16.msrb.mxu3 %v773_v25  ;;  %v1346_v53 = vpop.eup %1345 }
 0x261   :  { %870 = vmatpush.bf16.msra.mxu3 %v861_v12 }
 0x264   :  { %887 = vrot.lane.b32.xlu2 %v1927_v50, %s1424_s4 }
 0x265   :  { %871 = vmatpush.bf16.msra.mxu3 %v859_v58 }
 0x269   :  { %872 = vmatpush.bf16.msra.mxu3 %v857_v46 }
 0x26c   :  { %846 = vrot.lane.b32.xlu2 %v1943_v36, %s1424_s4 }
 0x26d   :  { %873 = vmatpush.bf16.msra.mxu3 %v855_v60 }
 0x271   :  { %874 = vmatpush.bf16.msra.mxu3 %v853_v44 }
 0x274   :  { %885 = vrot.lane.b32.xlu2 %v1936_v30, %s1424_s4 }
 0x275   :  { %875 = vmatpush.bf16.msra.mxu3 %v851_v15  ;;  %v1315_v15 = vld [vmem:[%s2077_s7 + $0x8] sm:$0xff] }
 0x276   :  { %974 = vmatpush.bf16.msrb.mxu2 %v1315_v15  ;;  %v1338_v15 = vld [vmem:[%s2084_s14] ss:$0 sm:$0xff] }
 0x27c   :  { %736 = vadd.xlane.f32.xlu0 %v1346_v53 }
 0x2b1   :  { %v719_v18 = vpop.xlane.xlu0 %718 }
 0x2b2   :  { %v724_v50 = vsub.f32 %v712_v1, %v719_v18 }
 0x2b4   :  { %v730_v17 = vmul.f32 1.442695, %v724_v50 }
 0x2b6   :  { %1347 = vpow2.f32 %v730_v17 }
 0x2b7   :  { %v721_v19 = vpop.xlane.xlu2 %720 }
 0x2b8   :  { %v725_v31 = vsub.f32 %v713_v33, %v721_v19 }
 0x2ba   :  { %v732_v21 = vmul.f32 1.442695, %v725_v31 }
 0x2bc   :  { %v1348_v22 = vpop.eup %1347  ;;  %1349 = vpow2.f32 %v732_v21 }
 0x2bd   :  { %738 = vadd.xlane.f32.xlu1 %v1348_v22 }
 0x2bf   :  { %v890_v24 = vpop.permute.xlu2 %889 }
 0x2c2   :  { %v1350_v26 = vpop.eup %1349 }
 0x2c3   :  { %v735_v28 = vpop.xlane.xlu1 %734  ;;  %740 = vadd.xlane.f32.xlu0 %v1350_v26 }
 0x2c4   :  { %1351 = vrcp.f32 %v735_v28  ;;  %v810_v30 = vpop.permute.xlu0 %809 }
 0x2c5   :  { %840 = vmatpush.bf16.msra.mxu0 %v810_v30 }
 0x2c7   :  { %v888_v29 = vpop.permute.xlu2 %887 }
 0x2c9   :  { %907 = vmatpush.bf16.msrb.mxu0 %v898_v62 }
 0x2ca   :  { %v1352_v41 = vpop.eup %1351 }
 0x2cb   :  { %v746_v57 = vmul.f32 %v1352_v41, %v735_v28 }
 0x2cd   :  { %908 = vmatpush.bf16.msrb.mxu0 %v1957_v48  ;;  %v750_v9 = vsub.f32 2.0, %v746_v57 }
 0x2cf   :  { %v754_v36 = vmul.f32 %v1352_v41, %v750_v9  ;;  %v847_v32 = vpop.permute.xlu2 %846 }
 0x2d1   :  { %909 = vmatpush.bf16.msrb.mxu0 %v894_v16  ;;  %v758_v27 = vmul.f32 %v1344_v5, %v754_v36 }
 0x2d3   :  { %v768_v34 = vpack.c.bf16 %v758_v27, %v758_v27 }
 0x2d5   :  { %910 = vmatpush.bf16.msrb.mxu0 %v892_v10  ;;  %804 = vmatmul.bf16.vlgmr.msrb.gmra.mxu3 %v768_v34 }
 0x2d6   :  { %848 = vrot.lane.b32.xlu1 %v1934_v63, %s1424_s4 }
 0x2d7   :  { %883 = vrot.lane.b32.xlu0 %v1945_v23, %s1424_s4  ;;  %v886_v37 = vpop.permute.xlu2 %885 }
 0x2d9   :  { %911 = vmatpush.bf16.msrb.mxu0 %v890_v24 }
 0x2dd   :  { %912 = vmatpush.bf16.msrb.mxu0 %v888_v29  ;;  %v1369_v29 = vld [vmem:[%s2096_s20] sm:$0xff] }
 0x2e1   :  { %913 = vmatpush.bf16.msrb.mxu0 %v886_v37  ;;  %v1426_v37 = vmov 32.0  }
 0x2ef   :  { %v737_v35 = vpop.xlane.xlu0 %736 }
 0x2f0   :  { %1353 = vrcp.f32 %v737_v35 }
 0x2f6   :  { %v1354_v38 = vpop.eup %1353 }
 0x2f7   :  { %v747_v39 = vmul.f32 %v1354_v38, %v737_v35 }
 0x2f9   :  { %v751_v40 = vsub.f32 2.0, %v747_v39 }
 0x2fb   :  { %v755_v11 = vmul.f32 %v1354_v38, %v751_v40 }
 0x2fd   :  { %v759_v42 = vmul.f32 %v1346_v53, %v755_v11  ;;  %v1314_v53 = vld [vmem:[%s2077_s7] sm:$0xff] }
 0x2fe   :  { %975 = vmatpush.bf16.msrb.mxu2 %v1314_v53 }
 0x2ff   :  { %v769_v43 = vpack.c.bf16 %v759_v42, %v759_v42 }
 0x301   :  { %841 = vmatmul.bf16.vlgmr.msra.gmra.mxu0 %v769_v43 }
 0x330   :  { %v739_v45 = vpop.xlane.xlu1 %738 }
 0x331   :  { %1355 = vrcp.f32 %v739_v45 }
 0x336   :  { %v741_v47 = vpop.xlane.xlu0 %740 }
 0x337   :  { %v1356_v63 = vpop.eup %1355  ;;  %1357 = vrcp.f32 %v741_v47 }
 0x338   :  { %v748_v4 = vmul.f32 %v1356_v63, %v739_v45  ;;  %1359 = vrcp.f32 %v1426_v37 }
 0x33a   :  { %v752_v48 = vsub.f32 2.0, %v748_v4 }
 0x33c   :  { %v756_v23 = vmul.f32 %v1356_v63, %v752_v48 }
 0x33d   :  { %v1358_v49 = vpop.eup %1357 }
 0x33e   :  { %v760_v52 = vmul.f32 %v1348_v22, %v756_v23  ;;  %v749_v54 = vmul.f32 %v1358_v49, %v741_v47  ;;  %v1360_v35 = vpop.eup %1359 }
 0x33f   :  { %v993_v38 = vmul.f32 32.0, %v1360_v35  ;;  %vm997_vm2 = vweird.f32 %v1360_v35 }
 0x340   :  { %v762_v14 = vadd.f32 %v760_v52, %v758_v27  ;;  %v753_v46 = vsub.f32 2.0, %v749_v54  ;;  %v770_v3 = vpack.c.bf16 %v760_v52, %v760_v52  ;;  %v1370_v27 = vld [vmem:[%s2096_s20 + $0x8] sm:$0xff] }
 0x341   :  { %v994_v39 = vsub.f32 1.0, %v993_v38 }
 0x342   :  { %v764_v55 = vmul.f32 0.5, %v762_v14  ;;  %v757_v56 = vmul.f32 %v1358_v49, %v753_v46  ;;  %v1317_v14 = vld [vmem:[%s2079_s9 + $0x8] sm:$0xff] }
 0x343   :  { %v995_v40 = vmul.f32 %v1360_v35, %v994_v39 }
 0x344   :  { %766 = vst [vmem:[#allocation4] sm:$0xff] %v764_v55  ;;  %v761_v58 = vmul.f32 %v1350_v26, %v757_v56  ;;  %v1336_v26 = vld [vmem:[%s2078_s8] ss:$0 sm:$0xff] }
 0x345   :  { %v996_v11 = vadd.f32 %v1360_v35, %v995_v40 }
 0x346   :  { %v763_v60 = vadd.f32 %v761_v58, %v759_v42  ;;  %v771_v1 = vpack.c.bf16 %v761_v58, %v761_v58  ;;  %v1316_v58 = vld [vmem:[%s2079_s9] sm:$0xff]  ;;  %s1208_s9 = sshll.u32 %s2087_s17, 4  ;;  %s1209_s9 = int_to_ptr.hbm [resolvable:$true] %s1208_s9 }
 0x347   :  { %v2003_v42 = vsel %vm997_vm2, %v1360_v35, %v996_v11 }
 0x348   :  { %v765_v61 = vmul.f32 0.5, %v763_v60  ;;  %v849_v51 = vpop.permute.xlu1 %848  ;;  %v1321_v60 = vld [vmem:[%s2081_s11 + $0x18] sm:$0xff] }
 0x349   :  { %876 = vmatpush.bf16.msra.mxu3 %v849_v51  ;;  %v884_v62 = vpop.permute.xlu0 %883 }
 0x34a   :  { %767 = vst [vmem:[#allocation4 + $0x8] sm:$0xff] %v765_v61  ;;  %914 = vmatpush.bf16.msrb.mxu0 %v884_v62 }
 0x34d   :  { %877 = vmatpush.bf16.msra.mxu3 %v847_v32  ;;  %915 = vmatmul.bf16.vlgmr.msrb.gmra.mxu0 %v771_v1 }
 0x34e   :  { %1132 = vmatpush.bf16.msra.mxu0 %v1321_v60 }
 0x350   :  { %878 = vmatmul.bf16.vlgmr.msra.gmra.mxu3 %v770_v3 }
 0x351   :  { %1077 = vmatpush.bf16.msrb.mxu3 %v1317_v14 }
 0x355   :  { %1078 = vmatpush.bf16.msrb.mxu3 %v1316_v58 }
 0x358   :  { %v805_v33 = vpop.f32.mrf.mxu3 }
 0x359   :  { %v920_v50 = vpack.c.bf16 %v805_v33, %v805_v33 }
 0x360   :  { %v807_v20 = vpop.f32.mrf.mxu3 }
 0x37e   :  { %v842_v6 = vpop.f32.mrf.mxu0 }
 0x37f   :  { %v921_v18 = vpack.c.bf16 %v842_v6, %v842_v6 }
 0x386   :  { %v844_v7 = vpop.f32.mrf.mxu0 }
 0x3ca   :  { %v916_v8 = vpop.f32.mrf.mxu0 }
 0x3cb   :  { %v923_v2 = vpack.c.bf16 %v916_v8, %v916_v8 }
 0x3cd   :  { %v927_v5 = vunpack.c.l.b16 %v923_v2 }
 0x3cf   :  { %v929_v44 = vpack.c.b16 %v927_v5, %v927_v5 }
 0x3d1   :  { %932 = vrot.lane.b32.xlu2 %v929_v44, %s1425_s23 }
 0x3d2   :  { %v918_v25 = vpop.f32.mrf.mxu0 }
 0x3d3   :  { %v879_v12 = vpop.f32.mrf.mxu3 }
 0x3d4   :  { %v922_v13 = vpack.c.bf16 %v879_v12, %v879_v12 }
 0x3d6   :  { %v926_v10 = vunpack.c.l.b16 %v922_v13  ;;  %v1337_v13 = vld [vmem:[%s2083_s13] ss:$0 sm:$0xff] }
 0x3d8   :  { %v928_v59 = vpack.c.b16 %v926_v10, %v926_v10 }
 0x3da   :  { %930 = vrot.lane.b32.xlu1 %v928_v59, %s1425_s23 }
 0x3db   :  { %v881_v0 = vpop.f32.mrf.mxu3 }
 0x42b   :  { %v933_v16 = vpop.permute.xlu2 %932 }
 0x42c   :  { %v939_v17 = vsel %vm469_vm1, %v921_v18, %v933_v16 }
 0x42d   :  { %v951_v21 = vunpack.c.l.b16 %v939_v17 }
 0x44c   :  { %v931_v19 = vpop.permute.xlu1 %930 }
 0x44d   :  { %v936_v31 = vsel %vm469_vm1, %v920_v50, %v931_v19 }
 0x44e   :  { %v950_v22 = vunpack.c.l.b16 %v936_v31  ;;  %v1320_v31 = vld [vmem:[%s2081_s11 + $0x10] sm:$0xff] }
 0x44f   :  { %1133 = vmatpush.bf16.msra.mxu0 %v1320_v31 }
 0x450   :  { %v952_v24 = vpack.c.b16 %v951_v21, %v950_v22  ;;  %v1319_v21 = vld [vmem:[%s2081_s11 + $0x8] sm:$0xff]  ;;  %v1318_v22 = vld [vmem:[%s2081_s11] sm:$0xff] }
 0x452   :  { %1283 = vmatmul.msk.bf16.vlgmr.msrb.gmra.mxu2 %vm116_vm0, %v952_v24 }
 0x453   :  { %1134 = vmatpush.bf16.msra.mxu0 %v1319_v21 }
 0x457   :  { %1135 = vmatpush.bf16.msra.mxu0 %v1318_v22 }
 0x4d5   :  { %v977_v28 = vpop.f32.mrf.mxu2 }
 0x4d6   :  { %v978_v30 = vadd.f32 %v1336_v26, %v977_v28 }
 0x4d8   :  { %v982_v41 = vadd.f32 %v1369_v29, %v978_v30 }
 0x4da   :  { %v986_v57 = vsel %vm116_vm0, %v982_v41, 0.0 }
 0x4db   :  { %987 = vadd.xlane.f32.xlu1 %v986_v57 }
 0x4dd   :  { %v979_v9 = vpop.f32.mrf.mxu2 }
 0x4de   :  { %v980_v36 = vadd.f32 %v1336_v26, %v979_v9  ;;  %v1339_v26 = vld [vmem:[%s2080_s10] ss:$0 sm:$0xff]  ;;  %s1427_s10 = smov [#allocation4]  }
 0x4df   :  { %s1219_s11 = sshll.u32 %s1427_s10, 4  ;;  %s1220_s11 = int_to_ptr.vmem [resolvable:$true] %s1219_s11 }
 0x4e0   :  { %v983_v32 = vadd.f32 %v1370_v27, %v980_v36  ;;  %v1340_v36 = vld [vmem:[%s2082_s12] ss:$0 sm:$0xff] }
 0x4e1   :  { %1227 = dma.vmem_to_hbm [thread:$0]  %s1220_s11, 256, %s1222_s27, [#allocation5], %s1428_s28, %s1428_s28, %s1429_s1  }
 0x4e2   :  { %v989_v34 = vsel %vm116_vm0, %v983_v32, 0.0 }
 0x4e3   :  { %990 = vadd.xlane.f32.xlu2 %v989_v34 }
 0x54e   :  { %v988_v43 = vpop.xlane.xlu1 %987 }
 0x54f   :  { %v999_v45 = vmul.f32 %v2003_v42, %v988_v43 }
 0x551   :  { %v1001_v47 = vsub.f32 %v982_v41, %v999_v45 }
 0x553   :  { %v1003_v63 = vmul.f32 %v1001_v47, %v1001_v47 }
 0x555   :  { %v1005_v4 = vsel %vm116_vm0, %v1003_v63, 0.0 }
 0x556   :  { %v991_v48 = vpop.xlane.xlu2 %990  ;;  %1006 = vadd.xlane.f32.xlu0 %v1005_v4 }
 0x557   :  { %v1000_v23 = vmul.f32 %v2003_v42, %v991_v48 }
 0x559   :  { %v1002_v49 = vsub.f32 %v983_v32, %v1000_v23 }
 0x55b   :  { %v1004_v52 = vmul.f32 %v1002_v49, %v1002_v49 }
 0x55d   :  { %v1008_v54 = vsel %vm116_vm0, %v1004_v52, 0.0 }
 0x55e   :  { %1009 = vadd.xlane.f32.xlu2 %v1008_v54 }
 0x5c9   :  { %v1007_v46 = vpop.xlane.xlu0 %1006 }
 0x5ca   :  { %v1011_v55 = vmul.f32 %v1007_v46, %v2003_v42 }
 0x5cc   :  { %v1013_v56 = vadd.f32 1e-05, %v1011_v55 }
 0x5ce   :  { %1361 = vrsqrt.f32 %v1013_v56  ;;  %vm1021_vm4 = vweird.f32 %v1013_v56 }
 0x5d1   :  { %v1010_v61 = vpop.xlane.xlu2 %1009 }
 0x5d2   :  { %v1012_v51 = vmul.f32 %v1010_v61, %v2003_v42 }
 0x5d4   :  { %v1362_v62 = vpop.eup %1361  ;;  %v1014_v1 = vadd.f32 1e-05, %v1012_v51 }
 0x5d5   :  { %v1016_v3 = vmul.f32 %v1362_v62, %v1013_v56  ;;  %vm1022_vm3 = vweird.f32 %v1362_v62 }
 0x5d6   :  { %1363 = vrsqrt.f32 %v1014_v1  ;;  %vm1023_vm5 = vmor %vm1021_vm4, %vm1022_vm3  ;;  %vm1031_vm7 = vweird.f32 %v1014_v1 }
 0x5d7   :  { %v1017_v33 = vmul.f32 %v1362_v62, %v1016_v3 }
 0x5d9   :  { %v1018_v20 = vmul.f32 0.5, %v1017_v33 }
 0x5db   :  { %v1019_v6 = vsub.f32 1.5, %v1018_v20 }
 0x5dc   :  { %v1364_v7 = vpop.eup %1363 }
 0x5dd   :  { %v1020_v8 = vmul.f32 %v1362_v62, %v1019_v6  ;;  %v1026_v2 = vmul.f32 %v1364_v7, %v1014_v1  ;;  %vm1032_vm6 = vweird.f32 %v1364_v7  ;;  %v1341_v6 = vld [vmem:[%s2085_s15] ss:$0 sm:$0xff]  ;;  %s1430_s15 = smov [#allocation2]  }
 0x5de   :  { %vm1033_vm8 = vmor %vm1031_vm7, %vm1032_vm6  ;;  %s1206_s30 = sshll.u32 %s1430_s15, 4  ;;  %s1207_s30 = int_to_ptr.vmem [resolvable:$true] %s1206_s30 }
 0x5df   :  { %v1027_v5 = vmul.f32 %v1364_v7, %v1026_v2  ;;  %v1024_v44 = vsel %vm1023_vm5, %v1362_v62, %v1020_v8  ;;  %v1342_v2 = vld [vmem:[%s2086_s16] ss:$0 sm:$0xff] }
 0x5e0   :  { %v1035_v10 = vmul.f32 %v1024_v44, %v1001_v47 }
 0x5e1   :  { %v1028_v25 = vmul.f32 0.5, %v1027_v5 }
 0x5e2   :  { %v1040_v53 = vmul.f32 %v1337_v13, %v1035_v10 }
 0x5e3   :  { %v1029_v12 = vsub.f32 1.5, %v1028_v25 }
 0x5e4   :  { %v1045_v50 = vadd.f32 %v1338_v15, %v1040_v53 }
 0x5e5   :  { %v1030_v59 = vmul.f32 %v1364_v7, %v1029_v12 }
 0x5e7   :  { %v1034_v0 = vsel %vm1033_vm8, %v1364_v7, %v1030_v59 }
 0x5e8   :  { %v1036_v16 = vmul.f32 %v1034_v0, %v1002_v49 }
 0x5ea   :  { %v1041_v18 = vmul.f32 %v1337_v13, %v1036_v16 }
 0x5ec   :  { %v1046_v17 = vadd.f32 %v1338_v15, %v1041_v18 }
 0x5ee   :  { %v1047_v19 = vpack.c.bf16 %v1046_v17, %v1045_v50 }
 0x5f0   :  { %1292 = vmatmul.msk.bf16.vlgmr.msrb.gmra.mxu3 %vm116_vm0, %v1047_v19 }
 0x673   :  { %v1080_v24 = vpop.f32.mrf.mxu3 }
 0x674   :  { %v1081_v28 = vadd.f32 %v1339_v26, %v1080_v24 }
 0x676   :  { %v1085_v41 = vmax.f32 %v1081_v28, 0.0 }
 0x67b   :  { %v1082_v30 = vpop.f32.mrf.mxu3 }
 0x67c   :  { %v1083_v29 = vadd.f32 %v1339_v26, %v1082_v30 }
 0x67e   :  { %v1086_v57 = vmax.f32 %v1083_v29, 0.0 }
 0x680   :  { %v1087_v9 = vpack.c.bf16 %v1086_v57, %v1085_v41 }
 0x682   :  { %1309 = vmatmul.msk.bf16.vlgmr.msra.gmra.mxu0 %vm1124_vm9, %v1087_v9 }
 0x6ff   :  { %v1137_v27 = vpop.f32.mrf.mxu0 }
 0x700   :  { %v1138_v32 = vadd.f32 %v1340_v36, %v1137_v27 }
 0x702   :  { %v1142_v34 = vadd.f32 %v1138_v32, %v1045_v50 }
 0x704   :  { %v1146_v37 = vsel %vm116_vm0, %v1142_v34, 0.0 }
 0x705   :  { %1147 = vadd.xlane.f32.xlu1 %v1146_v37 }
 0x707   :  { %v1139_v35 = vpop.f32.mrf.mxu0 }
 0x708   :  { %v1140_v38 = vadd.f32 %v1340_v36, %v1139_v35 }
 0x70a   :  { %v1143_v39 = vadd.f32 %v1140_v38, %v1046_v17 }
 0x70c   :  { %v1149_v40 = vsel %vm116_vm0, %v1143_v39, 0.0 }
 0x70d   :  { %1150 = vadd.xlane.f32.xlu2 %v1149_v40 }
 0x778   :  { %v1148_v11 = vpop.xlane.xlu1 %1147 }
 0x779   :  { %v1152_v43 = vmul.f32 %v1148_v11, %v2003_v42 }
 0x77b   :  { %v1154_v45 = vsub.f32 %v1142_v34, %v1152_v43 }
 0x77d   :  { %v1156_v47 = vmul.f32 %v1154_v45, %v1154_v45 }
 0x77f   :  { %v1158_v63 = vsel %vm116_vm0, %v1156_v47, 0.0 }
 0x780   :  { %v1151_v4 = vpop.xlane.xlu2 %1150  ;;  %1159 = vadd.xlane.f32.xlu1 %v1158_v63 }
 0x781   :  { %v1153_v48 = vmul.f32 %v1151_v4, %v2003_v42 }
 0x783   :  { %v1155_v23 = vsub.f32 %v1143_v39, %v1153_v48 }
 0x785   :  { %v1157_v49 = vmul.f32 %v1155_v23, %v1155_v23 }
 0x787   :  { %v1161_v52 = vsel %vm116_vm0, %v1157_v49, 0.0 }
 0x788   :  { %1162 = vadd.xlane.f32.xlu0 %v1161_v52 }
 0x7f3   :  { %v1160_v54 = vpop.xlane.xlu1 %1159 }
 0x7f4   :  { %v1164_v14 = vmul.f32 %v1160_v54, %v2003_v42 }
 0x7f6   :  { %v1166_v46 = vadd.f32 1e-05, %v1164_v14 }
 0x7f8   :  { %1365 = vrsqrt.f32 %v1166_v46  ;;  %vm1174_vm11 = vweird.f32 %v1166_v46 }
 0x7fb   :  { %v1163_v55 = vpop.xlane.xlu0 %1162 }
 0x7fc   :  { %v1165_v56 = vmul.f32 %v1163_v55, %v2003_v42 }
 0x7fe   :  { %v1366_v58 = vpop.eup %1365  ;;  %v1167_v60 = vadd.f32 1e-05, %v1165_v56 }
 0x7ff   :  { %v1169_v61 = vmul.f32 %v1366_v58, %v1166_v46  ;;  %vm1175_vm10 = vweird.f32 %v1366_v58 }
 0x800   :  { %1367 = vrsqrt.f32 %v1167_v60  ;;  %vm1176_vm12 = vmor %vm1174_vm11, %vm1175_vm10  ;;  %vm1184_vm14 = vweird.f32 %v1167_v60 }
 0x801   :  { %v1170_v51 = vmul.f32 %v1366_v58, %v1169_v61 }
 0x803   :  { %v1171_v62 = vmul.f32 0.5, %v1170_v51 }
 0x805   :  { %v1172_v1 = vsub.f32 1.5, %v1171_v62 }
 0x806   :  { %v1368_v3 = vpop.eup %1367 }
 0x807   :  { %v1173_v33 = vmul.f32 %v1366_v58, %v1172_v1  ;;  %v1179_v20 = vmul.f32 %v1368_v3, %v1167_v60  ;;  %vm1185_vm13 = vweird.f32 %v1368_v3 }
 0x808   :  { %vm1186_vm15 = vmor %vm1184_vm14, %vm1185_vm13 }
 0x809   :  { %v1177_v7 = vsel %vm1176_vm12, %v1366_v58, %v1173_v33  ;;  %v1180_v8 = vmul.f32 %v1368_v3, %v1179_v20 }
 0x80a   :  { %v1188_v42 = vmul.f32 %v1177_v7, %v1154_v45 }
 0x80b   :  { %v1181_v5 = vmul.f32 0.5, %v1180_v8 }
 0x80c   :  { %v1193_v44 = vmul.f32 %v1341_v6, %v1188_v42 }
 0x80d   :  { %v1182_v25 = vsub.f32 1.5, %v1181_v5 }
 0x80e   :  { %v1198_v12 = vadd.f32 %v1342_v2, %v1193_v44 }
 0x80f   :  { %v1183_v13 = vmul.f32 %v1368_v3, %v1182_v25 }
 0x810   :  { %1200 = vst.msk [vmem:[#allocation2] sm:$0xff] %vm116_vm0, %v1198_v12 }
 0x811   :  { %v1187_v10 = vsel %vm1186_vm15, %v1368_v3, %v1183_v13 }
 0x812   :  { %v1189_v59 = vmul.f32 %v1187_v10, %v1155_v23 }
 0x814   :  { %v1194_v0 = vmul.f32 %v1341_v6, %v1189_v59 }
 0x816   :  { %v1199_v15 = vadd.f32 %v1342_v2, %v1194_v0 }
 0x818   :  { %1201 = vst.msk [vmem:[#allocation2 + $0x8] sm:$0xff] %vm116_vm0, %v1199_v15 }
 0x819   :  { %1214 = dma.vmem_to_hbm [thread:$0]  %s1207_s30, 256, %s1209_s9, [#allocation3], %s1428_s28, %s1428_s28, %s1429_s1  }
 0x81a   :  { %1419 = dma.done.wait [#allocation3], 256  }
 0x81b   :  { %1420 = vsyncadd [#allocation3], 4294967040 }
 0x81c   :  { %1421 = dma.done.wait [#allocation5], 256  }
 0x81d   :  { %1422 = vsyncadd [#allocation5], 4294967040 }
 0x81e   :  { %1236 = vsyncpa [#allocation3], 1 }
 0x81f   :  { %1237 = vsyncpa [#allocation5], 1 }

</bundles_post_ra>
